<compile_context>
chip_gen: v7x
topology: tpu7x:2x2x1
jax: 0.10.0
libtpu: 0.0.40
codegen_flags: <defaults>
</compile_context>

<pallas_src>
import numpy as np
import jax
import jax.numpy as jnp
from jax.experimental import pallas as pl
from jax.experimental.pallas import tpu as pltpu

_MXU_DTYPE = jnp.bfloat16       # MXU operand dtype (accumulation is always f32)
_BN_EPS = 1e-5
_INV_SQRT2 = 0.7071067811865476


# ---------------------------------------------------------------------------
# In-kernel exact GELU (PyTorch nn.GELU default = erf form).  erf uses the
# Abramowitz–Stegun 7.1.26 polynomial (|err| < 1.5e-7); the divide goes to the
# otherwise-idle EUP via pl.reciprocal(approx=True).
# ---------------------------------------------------------------------------
def _erf(v):
    z = jnp.abs(v)
    t = pl.reciprocal(1.0 + 0.3275911 * z, approx=True)
    poly = ((((1.061405429 * t - 1.453152027) * t + 1.421413741) * t
             - 0.284496736) * t + 0.254829592) * t
    y = 1.0 - poly * jnp.exp(-z * z)
    return jnp.where(v < 0.0, -y, y)


def _gelu(v):
    return 0.5 * v * (1.0 + _erf(v * _INV_SQRT2))


# ---------------------------------------------------------------------------
# Trace-time (numpy) align_corners=True bilinear matrix: n_in -> n_in*scale.
# ---------------------------------------------------------------------------
def _bilinear_matrix(n_in, scale=2):
    n_out = n_in * scale
    m = np.zeros((n_out, n_in), dtype=np.float64)
    if n_in == 1:
        m[:, 0] = 1.0
        return m
    src = np.arange(n_out) * (n_in - 1) / (n_out - 1)
    i0 = np.clip(np.floor(src).astype(np.int64), 0, n_in - 1)
    i1 = np.minimum(i0 + 1, n_in - 1)
    w1 = src - i0
    m[np.arange(n_out), i0] += 1.0 - w1
    m[np.arange(n_out), i1] += w1
    return m


def _upsample_matrix_padded(H, W):
    """(L, 4HW) operator, L=(H+2)*(W+2):  out[c, u*2W+v] = conv_padflat[c] @ U.

    Columns of kron(Uh, Uw) are scattered onto padded-flattened coordinates
    i = (y+1)*(W+2) + (x+1); all border/garbage positions get zero rows, so it
    also masks the padded-coordinate conv junk for free.
    """
    Uh = _bilinear_matrix(H)                       # (2H, H)
    Uw = _bilinear_matrix(W)                       # (2W, W)
    Hp, Wp = H + 2, W + 2
    L = Hp * Wp
    k2 = np.kron(Uh, Uw)                           # (4HW, HW)
    cols = ((np.arange(H)[:, None] + 1) * Wp
            + (np.arange(W)[None, :] + 1)).ravel()
    up = np.zeros((4 * H * W, L), dtype=np.float64)
    up[:, cols] = k2
    return up.T                                    # (L, 4HW)


# ---------------------------------------------------------------------------
# Parameters: Conv2d(in_ch, out_ch, 3, 1, 1) weight/bias + BatchNorm2d(out_ch).
# ---------------------------------------------------------------------------
def init_params(key, in_ch, out_ch):
    k1, k2, k3, k4, k5, k6 = jax.random.split(key, 6)
    w = jax.random.normal(k1, (out_ch, in_ch, 3, 3), jnp.float32) / np.sqrt(in_ch * 9)
    b = 0.05 * jax.random.normal(k2, (out_ch,), jnp.float32)
    gamma = 1.0 + 0.1 * jax.random.normal(k3, (out_ch,), jnp.float32)
    beta = 0.1 * jax.random.normal(k4, (out_ch,), jnp.float32)
    mean = 0.1 * jax.random.normal(k5, (out_ch,), jnp.float32)          # running_mean
    var = jax.random.uniform(k6, (out_ch,), jnp.float32,
                             minval=0.5, maxval=1.5)                    # running_var
    return {'w': w, 'b': b, 'gamma': gamma, 'beta': beta, 'mean': mean, 'var': var}


# ---------------------------------------------------------------------------
# Forward pass of LS_Fusion: one fused Pallas kernel.
# ---------------------------------------------------------------------------
def ls_fusion_forward(params, rgb, x):
    N, Cin, H, W = rgb.shape
    w = params['w']
    Cout = w.shape[0]
    Hp, Wp = H + 2, W + 2
    L = Hp * Wp                     # flattened padded spatial size
    M = Wp + 1                      # max |tap offset| in flattened padded coords
    Lm = L + 2 * M                  # margined lane length of the input block
    P4 = 4 * H * W                  # upsampled pixels per channel (lane-dense out)

    # Fold eval-mode BatchNorm + conv bias:
    #   y = (conv_nobias(s) * scale) + bias_eff
    #   scale = gamma / sqrt(var+eps)   (folded into the weights)
    #   bias_eff = beta + (conv_bias - mean) * scale
    # TODO(synk): training-mode BatchNorm (batch statistics) is not implemented.
    scale = params['gamma'] / jnp.sqrt(params['var'] + _BN_EPS)
    bias = (params['beta'] + (params['b'] - params['mean']) * scale).reshape(Cout, 1)
    w_eff = w * scale[:, None, None, None]                               # (Cout,Cin,3,3)
    w_taps = jnp.transpose(w_eff, (2, 3, 0, 1)).reshape(9, Cout, Cin).astype(_MXU_DTYPE)

    # XLA prologue (one tiny fusion, NO 9x im2col): add, 1-px zero pad, flatten
    # the padded spatial grid, add a +/-(Wp+1) zero lane margin, cast to bf16.
    s = rgb + x
    sp = jnp.pad(s, ((0, 0), (0, 0), (1, 1), (1, 1))).reshape(N, Cin, L)
    sp = jnp.pad(sp, ((0, 0), (0, 0), (M, M))).astype(_MXU_DTYPE)        # (N, Cin, Lm)

    up_t = jnp.asarray(_upsample_matrix_padded(H, W), _MXU_DTYPE)        # (L, P4)

    # Batch block: process as many images per grid step as fit a modest VMEM
    # budget (amortizes per-step pipeline overhead at small problem sizes).
    def step_bytes(nb):
        return (2 * nb * Cin * Lm * 2            # double-buffered bf16 input
                + 2 * nb * Cout * P4 * 4         # double-buffered f32 output
                + 9 * Cout * Cin * 2 + Cout * 4 + L * P4 * 2)
    nb = N
    while nb > 1 and (N % nb or step_bytes(nb) > (24 << 20)):
        nb -= 1

    def kernel(sp_ref, w_ref, b_ref, u_ref, o_ref):
        for n in range(nb):
            # 3x3 conv as 9 accumulated (Cout,Cin)@(Cin,L) MXU matmuls over
            # shifted flattened views (padded-coordinate trick; border junk is
            # zeroed later by the all-zero rows of u_ref).
            acc = jnp.zeros((Cout, L), jnp.float32)
            for dy in range(3):
                for dx in range(3):
                    st = M + (dy - 1) * Wp + (dx - 1)
                    acc = acc + jnp.dot(w_ref[dy * 3 + dx],
                                        sp_ref[n, :, st:st + L],
                                        preferred_element_type=jnp.float32)
            # BN scale already folded into weights -> epilogue is bias + GELU.
            h = _gelu(acc + b_ref[...])
            # Bilinear x2 upsample (align_corners=True) as ONE well-shaped MXU
            # matmul; output block is lane-dense (last dim = 4*H*W).
            o_ref[n] = jnp.dot(h.astype(_MXU_DTYPE), u_ref[...],
                               preferred_element_type=jnp.float32)

    out_flat = pl.pallas_call(
        kernel,
        out_shape=jax.ShapeDtypeStruct((N, Cout, P4), jnp.float32),
        grid=(N // nb,),
        in_specs=[pl.BlockSpec((nb, Cin, Lm), lambda b: (b, 0, 0)),
                  pl.BlockSpec((9, Cout, Cin), lambda b: (0, 0, 0)),
                  pl.BlockSpec((Cout, 1), lambda b: (0, 0)),
                  pl.BlockSpec((L, P4), lambda b: (0, 0))],
        out_specs=pl.BlockSpec((nb, Cout, P4), lambda b: (b, 0, 0)),
        compiler_params=pltpu.CompilerParams(dimension_semantics=("parallel",)),
    )(sp, w_taps, bias.astype(jnp.float32), up_t)

    # Free reshape (row-major identical): (N, Cout, 4HW) -> (N, Cout, 2H, 2W).
    return out_flat.reshape(N, Cout, 2 * H, 2 * W)


# ---------------------------------------------------------------------------
# Pure-JAX (XLA, f32) reference for tolerance checking.
# ---------------------------------------------------------------------------
def ls_fusion_reference(params, rgb, x):
    s = rgb + x
    g = jax.lax.conv_general_dilated(
        s, params['w'], window_strides=(1, 1), padding=((1, 1), (1, 1)),
        dimension_numbers=('NCHW', 'OIHW', 'NCHW'))
    g = g + params['b'][None, :, None, None]
    scale = params['gamma'] / jnp.sqrt(params['var'] + _BN_EPS)
    g = (g - params['mean'][None, :, None, None]) * scale[None, :, None, None] \
        + params['beta'][None, :, None, None]
    g = jax.nn.gelu(g, approximate=False)
    H, W = rgb.shape[2], rgb.shape[3]
    uh = jnp.asarray(_bilinear_matrix(H), jnp.float32)
    uw = jnp.asarray(_bilinear_matrix(W), jnp.float32)
    return jnp.einsum('uh,nchw,vw->ncuv', uh, g, uw)


if __name__ == "__main__":
    N, in_ch, out_ch, H, W = 2, 4, 8, 16, 16
    key = jax.random.PRNGKey(0)
    k_rgb, k_x, k_p = jax.random.split(key, 3)
    rgb = jax.random.normal(k_rgb, (N, in_ch, H, W), jnp.float32)
    x = jax.random.normal(k_x, (N, in_ch, H, W), jnp.float32)
    params = init_params(k_p, in_ch, out_ch)

    fwd = jax.jit(lambda a, b: ls_fusion_forward(params, a, b))
    out = fwd(rgb, x)
    jax.block_until_ready(out)

    assert out.shape == (N, out_ch, 2 * H, 2 * W), out.shape
    assert bool(jnp.all(jnp.isfinite(out)))

    # Tolerance check vs f32 XLA reference; error budget dominated by bf16 MXU
    # operand casts (erf polynomial + approx reciprocal add < ~1e-3 rel).
    ref = ls_fusion_reference(params, rgb, x)
    rel_err = jnp.sqrt(jnp.sum((out - ref) ** 2) / jnp.sum(ref ** 2))
    assert float(rel_err) < 2e-2, float(rel_err)

    print("KERNEL_OK")
</pallas_src>

<mosaic_0001>
module attributes {stable_mosaic.version = 11 : i64} {
  func.func @kernel(%arg0: i32, %arg1: memref<2x4x362xbf16, #tpu.memory_space<vmem>>, %arg2: memref<9x8x4xbf16, #tpu.memory_space<vmem>>, %arg3: memref<8x1xf32, #tpu.memory_space<vmem>>, %arg4: memref<324x1024xbf16, #tpu.memory_space<vmem>>, %arg5: memref<2x8x1024xf32, #tpu.memory_space<vmem>>) attributes {dimension_semantics = [#tpu.dimension_semantics<parallel>], iteration_bounds = array<i64: 1>, scalar_prefetch = 0 : i64, scratch_operands = 0 : i64, tpu.core_type = #tpu.core_type<tc>, window_params = [{transform_indices = @transform_0, window_bounds = array<i64: 2, 4, 362>}, {pipeline_mode = #tpu.pipeline_mode<synchronous>, transform_indices = @transform_1, window_bounds = array<i64: 9, 8, 4>}, {pipeline_mode = #tpu.pipeline_mode<synchronous>, transform_indices = @transform_2, window_bounds = array<i64: 8, 1>}, {pipeline_mode = #tpu.pipeline_mode<synchronous>, transform_indices = @transform_3, window_bounds = array<i64: 324, 1024>}, {transform_indices = @transform_4, window_bounds = array<i64: 2, 8, 1024>}]} {
    %cst = arith.constant 0.000000e+00 : f32
    %0 = vector.broadcast %cst : f32 to vector<8x324xf32>
    %c0 = arith.constant 0 : index
    %c0_0 = arith.constant 0 : index
    %c0_1 = arith.constant 0 : index
    %1 = vector.load %arg2[%c0, %c0_0, %c0_1] : memref<9x8x4xbf16, #tpu.memory_space<vmem>>, vector<1x8x4xbf16>
    %2 = vector.shape_cast %1 : vector<1x8x4xbf16> to vector<8x4xbf16>
    %c0_2 = arith.constant 0 : index
    %c0_3 = arith.constant 0 : index
    %c0_4 = arith.constant 0 : index
    %3 = vector.load %arg1[%c0_2, %c0_3, %c0_4] : memref<2x4x362xbf16, #tpu.memory_space<vmem>>, vector<1x4x324xbf16>
    %4 = vector.shape_cast %3 : vector<1x4x324xbf16> to vector<4x324xbf16>
    %cst_5 = arith.constant dense<0.000000e+00> : vector<8x324xf32>
    %5 = tpu.matmul %2, %4, %cst_5 {dimension_numbers = #tpu.dot_dimension_numbers<[1], [0], [0], [1], [0, 0, 1, 1], [], []>} : vector<8x4xbf16>, vector<4x324xbf16>, vector<8x324xf32> -> vector<8x324xf32>
    %6 = arith.addf %0, %5 : vector<8x324xf32>
    %c1 = arith.constant 1 : index
    %c0_6 = arith.constant 0 : index
    %c0_7 = arith.constant 0 : index
    %7 = vector.load %arg2[%c1, %c0_6, %c0_7] : memref<9x8x4xbf16, #tpu.memory_space<vmem>>, vector<1x8x4xbf16>
    %8 = vector.shape_cast %7 : vector<1x8x4xbf16> to vector<8x4xbf16>
    %c0_8 = arith.constant 0 : index
    %c0_9 = arith.constant 0 : index
    %c1_10 = arith.constant 1 : index
    %9 = vector.load %arg1[%c0_8, %c0_9, %c1_10] : memref<2x4x362xbf16, #tpu.memory_space<vmem>>, vector<1x4x324xbf16>
    %10 = vector.shape_cast %9 : vector<1x4x324xbf16> to vector<4x324xbf16>
    %cst_11 = arith.constant dense<0.000000e+00> : vector<8x324xf32>
    %11 = tpu.matmul %8, %10, %cst_11 {dimension_numbers = #tpu.dot_dimension_numbers<[1], [0], [0], [1], [0, 0, 1, 1], [], []>} : vector<8x4xbf16>, vector<4x324xbf16>, vector<8x324xf32> -> vector<8x324xf32>
    %12 = arith.addf %6, %11 : vector<8x324xf32>
    %c2 = arith.constant 2 : index
    %c0_12 = arith.constant 0 : index
    %c0_13 = arith.constant 0 : index
    %13 = vector.load %arg2[%c2, %c0_12, %c0_13] : memref<9x8x4xbf16, #tpu.memory_space<vmem>>, vector<1x8x4xbf16>
    %14 = vector.shape_cast %13 : vector<1x8x4xbf16> to vector<8x4xbf16>
    %c0_14 = arith.constant 0 : index
    %c0_15 = arith.constant 0 : index
    %c2_16 = arith.constant 2 : index
    %15 = vector.load %arg1[%c0_14, %c0_15, %c2_16] : memref<2x4x362xbf16, #tpu.memory_space<vmem>>, vector<1x4x324xbf16>
    %16 = vector.shape_cast %15 : vector<1x4x324xbf16> to vector<4x324xbf16>
    %cst_17 = arith.constant dense<0.000000e+00> : vector<8x324xf32>
    %17 = tpu.matmul %14, %16, %cst_17 {dimension_numbers = #tpu.dot_dimension_numbers<[1], [0], [0], [1], [0, 0, 1, 1], [], []>} : vector<8x4xbf16>, vector<4x324xbf16>, vector<8x324xf32> -> vector<8x324xf32>
    %18 = arith.addf %12, %17 : vector<8x324xf32>
    %c3 = arith.constant 3 : index
    %c0_18 = arith.constant 0 : index
    %c0_19 = arith.constant 0 : index
    %19 = vector.load %arg2[%c3, %c0_18, %c0_19] : memref<9x8x4xbf16, #tpu.memory_space<vmem>>, vector<1x8x4xbf16>
    %20 = vector.shape_cast %19 : vector<1x8x4xbf16> to vector<8x4xbf16>
    %c0_20 = arith.constant 0 : index
    %c0_21 = arith.constant 0 : index
    %c18 = arith.constant 18 : index
    %21 = vector.load %arg1[%c0_20, %c0_21, %c18] : memref<2x4x362xbf16, #tpu.memory_space<vmem>>, vector<1x4x324xbf16>
    %22 = vector.shape_cast %21 : vector<1x4x324xbf16> to vector<4x324xbf16>
    %cst_22 = arith.constant dense<0.000000e+00> : vector<8x324xf32>
    %23 = tpu.matmul %20, %22, %cst_22 {dimension_numbers = #tpu.dot_dimension_numbers<[1], [0], [0], [1], [0, 0, 1, 1], [], []>} : vector<8x4xbf16>, vector<4x324xbf16>, vector<8x324xf32> -> vector<8x324xf32>
    %24 = arith.addf %18, %23 : vector<8x324xf32>
    %c4 = arith.constant 4 : index
    %c0_23 = arith.constant 0 : index
    %c0_24 = arith.constant 0 : index
    %25 = vector.load %arg2[%c4, %c0_23, %c0_24] : memref<9x8x4xbf16, #tpu.memory_space<vmem>>, vector<1x8x4xbf16>
    %26 = vector.shape_cast %25 : vector<1x8x4xbf16> to vector<8x4xbf16>
    %c0_25 = arith.constant 0 : index
    %c0_26 = arith.constant 0 : index
    %c19 = arith.constant 19 : index
    %27 = vector.load %arg1[%c0_25, %c0_26, %c19] : memref<2x4x362xbf16, #tpu.memory_space<vmem>>, vector<1x4x324xbf16>
    %28 = vector.shape_cast %27 : vector<1x4x324xbf16> to vector<4x324xbf16>
    %cst_27 = arith.constant dense<0.000000e+00> : vector<8x324xf32>
    %29 = tpu.matmul %26, %28, %cst_27 {dimension_numbers = #tpu.dot_dimension_numbers<[1], [0], [0], [1], [0, 0, 1, 1], [], []>} : vector<8x4xbf16>, vector<4x324xbf16>, vector<8x324xf32> -> vector<8x324xf32>
    %30 = arith.addf %24, %29 : vector<8x324xf32>
    %c5 = arith.constant 5 : index
    %c0_28 = arith.constant 0 : index
    %c0_29 = arith.constant 0 : index
    %31 = vector.load %arg2[%c5, %c0_28, %c0_29] : memref<9x8x4xbf16, #tpu.memory_space<vmem>>, vector<1x8x4xbf16>
    %32 = vector.shape_cast %31 : vector<1x8x4xbf16> to vector<8x4xbf16>
    %c0_30 = arith.constant 0 : index
    %c0_31 = arith.constant 0 : index
    %c20 = arith.constant 20 : index
    %33 = vector.load %arg1[%c0_30, %c0_31, %c20] : memref<2x4x362xbf16, #tpu.memory_space<vmem>>, vector<1x4x324xbf16>
    %34 = vector.shape_cast %33 : vector<1x4x324xbf16> to vector<4x324xbf16>
    %cst_32 = arith.constant dense<0.000000e+00> : vector<8x324xf32>
    %35 = tpu.matmul %32, %34, %cst_32 {dimension_numbers = #tpu.dot_dimension_numbers<[1], [0], [0], [1], [0, 0, 1, 1], [], []>} : vector<8x4xbf16>, vector<4x324xbf16>, vector<8x324xf32> -> vector<8x324xf32>
    %36 = arith.addf %30, %35 : vector<8x324xf32>
    %c6 = arith.constant 6 : index
    %c0_33 = arith.constant 0 : index
    %c0_34 = arith.constant 0 : index
    %37 = vector.load %arg2[%c6, %c0_33, %c0_34] : memref<9x8x4xbf16, #tpu.memory_space<vmem>>, vector<1x8x4xbf16>
    %38 = vector.shape_cast %37 : vector<1x8x4xbf16> to vector<8x4xbf16>
    %c0_35 = arith.constant 0 : index
    %c0_36 = arith.constant 0 : index
    %c36 = arith.constant 36 : index
    %39 = vector.load %arg1[%c0_35, %c0_36, %c36] : memref<2x4x362xbf16, #tpu.memory_space<vmem>>, vector<1x4x324xbf16>
    %40 = vector.shape_cast %39 : vector<1x4x324xbf16> to vector<4x324xbf16>
    %cst_37 = arith.constant dense<0.000000e+00> : vector<8x324xf32>
    %41 = tpu.matmul %38, %40, %cst_37 {dimension_numbers = #tpu.dot_dimension_numbers<[1], [0], [0], [1], [0, 0, 1, 1], [], []>} : vector<8x4xbf16>, vector<4x324xbf16>, vector<8x324xf32> -> vector<8x324xf32>
    %42 = arith.addf %36, %41 : vector<8x324xf32>
    %c7 = arith.constant 7 : index
    %c0_38 = arith.constant 0 : index
    %c0_39 = arith.constant 0 : index
    %43 = vector.load %arg2[%c7, %c0_38, %c0_39] : memref<9x8x4xbf16, #tpu.memory_space<vmem>>, vector<1x8x4xbf16>
    %44 = vector.shape_cast %43 : vector<1x8x4xbf16> to vector<8x4xbf16>
    %c0_40 = arith.constant 0 : index
    %c0_41 = arith.constant 0 : index
    %c37 = arith.constant 37 : index
    %45 = vector.load %arg1[%c0_40, %c0_41, %c37] : memref<2x4x362xbf16, #tpu.memory_space<vmem>>, vector<1x4x324xbf16>
    %46 = vector.shape_cast %45 : vector<1x4x324xbf16> to vector<4x324xbf16>
    %cst_42 = arith.constant dense<0.000000e+00> : vector<8x324xf32>
    %47 = tpu.matmul %44, %46, %cst_42 {dimension_numbers = #tpu.dot_dimension_numbers<[1], [0], [0], [1], [0, 0, 1, 1], [], []>} : vector<8x4xbf16>, vector<4x324xbf16>, vector<8x324xf32> -> vector<8x324xf32>
    %48 = arith.addf %42, %47 : vector<8x324xf32>
    %c8 = arith.constant 8 : index
    %c0_43 = arith.constant 0 : index
    %c0_44 = arith.constant 0 : index
    %49 = vector.load %arg2[%c8, %c0_43, %c0_44] : memref<9x8x4xbf16, #tpu.memory_space<vmem>>, vector<1x8x4xbf16>
    %50 = vector.shape_cast %49 : vector<1x8x4xbf16> to vector<8x4xbf16>
    %c0_45 = arith.constant 0 : index
    %c0_46 = arith.constant 0 : index
    %c38 = arith.constant 38 : index
    %51 = vector.load %arg1[%c0_45, %c0_46, %c38] : memref<2x4x362xbf16, #tpu.memory_space<vmem>>, vector<1x4x324xbf16>
    %52 = vector.shape_cast %51 : vector<1x4x324xbf16> to vector<4x324xbf16>
    %cst_47 = arith.constant dense<0.000000e+00> : vector<8x324xf32>
    %53 = tpu.matmul %50, %52, %cst_47 {dimension_numbers = #tpu.dot_dimension_numbers<[1], [0], [0], [1], [0, 0, 1, 1], [], []>} : vector<8x4xbf16>, vector<4x324xbf16>, vector<8x324xf32> -> vector<8x324xf32>
    %54 = arith.addf %48, %53 : vector<8x324xf32>
    %c0_48 = arith.constant 0 : index
    %c0_49 = arith.constant 0 : index
    %55 = vector.load %arg3[%c0_48, %c0_49] : memref<8x1xf32, #tpu.memory_space<vmem>>, vector<8x1xf32>
    %56 = vector.broadcast %55 : vector<8x1xf32> to vector<8x324xf32>
    %57 = arith.addf %54, %56 : vector<8x324xf32>
    %cst_50 = arith.constant 5.000000e-01 : f32
    %58 = vector.broadcast %cst_50 : f32 to vector<8x324xf32>
    %59 = arith.mulf %58, %57 : vector<8x324xf32>
    %cst_51 = arith.constant 0.707106769 : f32
    %60 = vector.broadcast %cst_51 : f32 to vector<8x324xf32>
    %61 = arith.mulf %57, %60 : vector<8x324xf32>
    %62 = math.absf %61 : vector<8x324xf32>
    %cst_52 = arith.constant 0.327591091 : f32
    %63 = vector.broadcast %cst_52 : f32 to vector<8x324xf32>
    %64 = arith.mulf %63, %62 : vector<8x324xf32>
    %cst_53 = arith.constant 1.000000e+00 : f32
    %65 = vector.broadcast %cst_53 : f32 to vector<8x324xf32>
    %66 = arith.addf %65, %64 : vector<8x324xf32>
    %67 = tpu.reciprocal %66 {approx = true} : vector<8x324xf32> -> vector<8x324xf32>
    %cst_54 = arith.constant 1.06140542 : f32
    %68 = vector.broadcast %cst_54 : f32 to vector<8x324xf32>
    %69 = arith.mulf %68, %67 : vector<8x324xf32>
    %cst_55 = arith.constant 1.45315206 : f32
    %70 = vector.broadcast %cst_55 : f32 to vector<8x324xf32>
    %71 = arith.subf %69, %70 : vector<8x324xf32>
    %72 = arith.mulf %71, %67 : vector<8x324xf32>
    %cst_56 = arith.constant 1.42141378 : f32
    %73 = vector.broadcast %cst_56 : f32 to vector<8x324xf32>
    %74 = arith.addf %72, %73 : vector<8x324xf32>
    %75 = arith.mulf %74, %67 : vector<8x324xf32>
    %cst_57 = arith.constant 0.284496725 : f32
    %76 = vector.broadcast %cst_57 : f32 to vector<8x324xf32>
    %77 = arith.subf %75, %76 : vector<8x324xf32>
    %78 = arith.mulf %77, %67 : vector<8x324xf32>
    %cst_58 = arith.constant 0.254829586 : f32
    %79 = vector.broadcast %cst_58 : f32 to vector<8x324xf32>
    %80 = arith.addf %78, %79 : vector<8x324xf32>
    %81 = arith.mulf %80, %67 : vector<8x324xf32>
    %cst_59 = arith.constant 0.000000e+00 : f32
    %82 = vector.broadcast %cst_59 : f32 to vector<8x324xf32>
    %83 = arith.subf %82, %62 : vector<8x324xf32>
    %84 = arith.mulf %83, %62 : vector<8x324xf32>
    %85 = math.exp %84 : vector<8x324xf32>
    %86 = arith.mulf %81, %85 : vector<8x324xf32>
    %cst_60 = arith.constant 1.000000e+00 : f32
    %87 = vector.broadcast %cst_60 : f32 to vector<8x324xf32>
    %88 = arith.subf %87, %86 : vector<8x324xf32>
    %cst_61 = arith.constant 0.000000e+00 : f32
    %89 = vector.broadcast %cst_61 : f32 to vector<8x324xf32>
    %90 = arith.cmpf olt, %61, %89 : vector<8x324xf32>
    %cst_62 = arith.constant 0.000000e+00 : f32
    %91 = vector.broadcast %cst_62 : f32 to vector<8x324xf32>
    %92 = arith.subf %91, %88 : vector<8x324xf32>
    %93 = arith.select %90, %92, %88 : vector<8x324xi1>, vector<8x324xf32>
    %cst_63 = arith.constant 1.000000e+00 : f32
    %94 = vector.broadcast %cst_63 : f32 to vector<8x324xf32>
    %95 = arith.addf %94, %93 : vector<8x324xf32>
    %96 = arith.mulf %59, %95 : vector<8x324xf32>
    %97 = arith.truncf %96 : vector<8x324xf32> to vector<8x324xbf16>
    %c0_64 = arith.constant 0 : index
    %c0_65 = arith.constant 0 : index
    %98 = vector.load %arg4[%c0_64, %c0_65] : memref<324x1024xbf16, #tpu.memory_space<vmem>>, vector<324x1024xbf16>
    %cst_66 = arith.constant dense<0.000000e+00> : vector<8x1024xf32>
    %99 = tpu.matmul %97, %98, %cst_66 {dimension_numbers = #tpu.dot_dimension_numbers<[1], [0], [0], [1], [0, 0, 1, 1], [], []>} : vector<8x324xbf16>, vector<324x1024xbf16>, vector<8x1024xf32> -> vector<8x1024xf32>
    %c0_67 = arith.constant 0 : index
    %c0_68 = arith.constant 0 : index
    %c0_69 = arith.constant 0 : index
    %100 = vector.load %arg5[%c0_67, %c0_68, %c0_69] : memref<2x8x1024xf32, #tpu.memory_space<vmem>>, vector<1x8x1024xf32>
    %101 = vector.shape_cast %100 : vector<1x8x1024xf32> to vector<8x1024xf32>
    %102 = vector.shape_cast %99 : vector<8x1024xf32> to vector<1x8x1024xf32>
    tpu.vector_store %arg5[%c0_67, %c0_68, %c0_69], %102 {strides = array<i32>} : memref<2x8x1024xf32, #tpu.memory_space<vmem>>, vector<1x8x1024xf32>,
    %cst_70 = arith.constant 0.000000e+00 : f32
    %103 = vector.broadcast %cst_70 : f32 to vector<8x324xf32>
    %c0_71 = arith.constant 0 : index
    %c0_72 = arith.constant 0 : index
    %c0_73 = arith.constant 0 : index
    %104 = vector.load %arg2[%c0_71, %c0_72, %c0_73] : memref<9x8x4xbf16, #tpu.memory_space<vmem>>, vector<1x8x4xbf16>
    %105 = vector.shape_cast %104 : vector<1x8x4xbf16> to vector<8x4xbf16>
    %c1_74 = arith.constant 1 : index
    %c0_75 = arith.constant 0 : index
    %c0_76 = arith.constant 0 : index
    %106 = vector.load %arg1[%c1_74, %c0_75, %c0_76] : memref<2x4x362xbf16, #tpu.memory_space<vmem>>, vector<1x4x324xbf16>
    %107 = vector.shape_cast %106 : vector<1x4x324xbf16> to vector<4x324xbf16>
    %cst_77 = arith.constant dense<0.000000e+00> : vector<8x324xf32>
    %108 = tpu.matmul %105, %107, %cst_77 {dimension_numbers = #tpu.dot_dimension_numbers<[1], [0], [0], [1], [0, 0, 1, 1], [], []>} : vector<8x4xbf16>, vector<4x324xbf16>, vector<8x324xf32> -> vector<8x324xf32>
    %109 = arith.addf %103, %108 : vector<8x324xf32>
    %c1_78 = arith.constant 1 : index
    %c0_79 = arith.constant 0 : index
    %c0_80 = arith.constant 0 : index
    %110 = vector.load %arg2[%c1_78, %c0_79, %c0_80] : memref<9x8x4xbf16, #tpu.memory_space<vmem>>, vector<1x8x4xbf16>
    %111 = vector.shape_cast %110 : vector<1x8x4xbf16> to vector<8x4xbf16>
    %c1_81 = arith.constant 1 : index
    %c0_82 = arith.constant 0 : index
    %c1_83 = arith.constant 1 : index
    %112 = vector.load %arg1[%c1_81, %c0_82, %c1_83] : memref<2x4x362xbf16, #tpu.memory_space<vmem>>, vector<1x4x324xbf16>
    %113 = vector.shape_cast %112 : vector<1x4x324xbf16> to vector<4x324xbf16>
    %cst_84 = arith.constant dense<0.000000e+00> : vector<8x324xf32>
    %114 = tpu.matmul %111, %113, %cst_84 {dimension_numbers = #tpu.dot_dimension_numbers<[1], [0], [0], [1], [0, 0, 1, 1], [], []>} : vector<8x4xbf16>, vector<4x324xbf16>, vector<8x324xf32> -> vector<8x324xf32>
    %115 = arith.addf %109, %114 : vector<8x324xf32>
    %c2_85 = arith.constant 2 : index
    %c0_86 = arith.constant 0 : index
    %c0_87 = arith.constant 0 : index
    %116 = vector.load %arg2[%c2_85, %c0_86, %c0_87] : memref<9x8x4xbf16, #tpu.memory_space<vmem>>, vector<1x8x4xbf16>
    %117 = vector.shape_cast %116 : vector<1x8x4xbf16> to vector<8x4xbf16>
    %c1_88 = arith.constant 1 : index
    %c0_89 = arith.constant 0 : index
    %c2_90 = arith.constant 2 : index
    %118 = vector.load %arg1[%c1_88, %c0_89, %c2_90] : memref<2x4x362xbf16, #tpu.memory_space<vmem>>, vector<1x4x324xbf16>
    %119 = vector.shape_cast %118 : vector<1x4x324xbf16> to vector<4x324xbf16>
    %cst_91 = arith.constant dense<0.000000e+00> : vector<8x324xf32>
    %120 = tpu.matmul %117, %119, %cst_91 {dimension_numbers = #tpu.dot_dimension_numbers<[1], [0], [0], [1], [0, 0, 1, 1], [], []>} : vector<8x4xbf16>, vector<4x324xbf16>, vector<8x324xf32> -> vector<8x324xf32>
    %121 = arith.addf %115, %120 : vector<8x324xf32>
    %c3_92 = arith.constant 3 : index
    %c0_93 = arith.constant 0 : index
    %c0_94 = arith.constant 0 : index
    %122 = vector.load %arg2[%c3_92, %c0_93, %c0_94] : memref<9x8x4xbf16, #tpu.memory_space<vmem>>, vector<1x8x4xbf16>
    %123 = vector.shape_cast %122 : vector<1x8x4xbf16> to vector<8x4xbf16>
    %c1_95 = arith.constant 1 : index
    %c0_96 = arith.constant 0 : index
    %c18_97 = arith.constant 18 : index
    %124 = vector.load %arg1[%c1_95, %c0_96, %c18_97] : memref<2x4x362xbf16, #tpu.memory_space<vmem>>, vector<1x4x324xbf16>
    %125 = vector.shape_cast %124 : vector<1x4x324xbf16> to vector<4x324xbf16>
    %cst_98 = arith.constant dense<0.000000e+00> : vector<8x324xf32>
    %126 = tpu.matmul %123, %125, %cst_98 {dimension_numbers = #tpu.dot_dimension_numbers<[1], [0], [0], [1], [0, 0, 1, 1], [], []>} : vector<8x4xbf16>, vector<4x324xbf16>, vector<8x324xf32> -> vector<8x324xf32>
    %127 = arith.addf %121, %126 : vector<8x324xf32>
    %c4_99 = arith.constant 4 : index
    %c0_100 = arith.constant 0 : index
    %c0_101 = arith.constant 0 : index
    %128 = vector.load %arg2[%c4_99, %c0_100, %c0_101] : memref<9x8x4xbf16, #tpu.memory_space<vmem>>, vector<1x8x4xbf16>
    %129 = vector.shape_cast %128 : vector<1x8x4xbf16> to vector<8x4xbf16>
    %c1_102 = arith.constant 1 : index
    %c0_103 = arith.constant 0 : index
    %c19_104 = arith.constant 19 : index
    %130 = vector.load %arg1[%c1_102, %c0_103, %c19_104] : memref<2x4x362xbf16, #tpu.memory_space<vmem>>, vector<1x4x324xbf16>
    %131 = vector.shape_cast %130 : vector<1x4x324xbf16> to vector<4x324xbf16>
    %cst_105 = arith.constant dense<0.000000e+00> : vector<8x324xf32>
    %132 = tpu.matmul %129, %131, %cst_105 {dimension_numbers = #tpu.dot_dimension_numbers<[1], [0], [0], [1], [0, 0, 1, 1], [], []>} : vector<8x4xbf16>, vector<4x324xbf16>, vector<8x324xf32> -> vector<8x324xf32>
    %133 = arith.addf %127, %132 : vector<8x324xf32>
    %c5_106 = arith.constant 5 : index
    %c0_107 = arith.constant 0 : index
    %c0_108 = arith.constant 0 : index
    %134 = vector.load %arg2[%c5_106, %c0_107, %c0_108] : memref<9x8x4xbf16, #tpu.memory_space<vmem>>, vector<1x8x4xbf16>
    %135 = vector.shape_cast %134 : vector<1x8x4xbf16> to vector<8x4xbf16>
    %c1_109 = arith.constant 1 : index
    %c0_110 = arith.constant 0 : index
    %c20_111 = arith.constant 20 : index
    %136 = vector.load %arg1[%c1_109, %c0_110, %c20_111] : memref<2x4x362xbf16, #tpu.memory_space<vmem>>, vector<1x4x324xbf16>
    %137 = vector.shape_cast %136 : vector<1x4x324xbf16> to vector<4x324xbf16>
    %cst_112 = arith.constant dense<0.000000e+00> : vector<8x324xf32>
    %138 = tpu.matmul %135, %137, %cst_112 {dimension_numbers = #tpu.dot_dimension_numbers<[1], [0], [0], [1], [0, 0, 1, 1], [], []>} : vector<8x4xbf16>, vector<4x324xbf16>, vector<8x324xf32> -> vector<8x324xf32>
    %139 = arith.addf %133, %138 : vector<8x324xf32>
    %c6_113 = arith.constant 6 : index
    %c0_114 = arith.constant 0 : index
    %c0_115 = arith.constant 0 : index
    %140 = vector.load %arg2[%c6_113, %c0_114, %c0_115] : memref<9x8x4xbf16, #tpu.memory_space<vmem>>, vector<1x8x4xbf16>
    %141 = vector.shape_cast %140 : vector<1x8x4xbf16> to vector<8x4xbf16>
    %c1_116 = arith.constant 1 : index
    %c0_117 = arith.constant 0 : index
    %c36_118 = arith.constant 36 : index
    %142 = vector.load %arg1[%c1_116, %c0_117, %c36_118] : memref<2x4x362xbf16, #tpu.memory_space<vmem>>, vector<1x4x324xbf16>
    %143 = vector.shape_cast %142 : vector<1x4x324xbf16> to vector<4x324xbf16>
    %cst_119 = arith.constant dense<0.000000e+00> : vector<8x324xf32>
    %144 = tpu.matmul %141, %143, %cst_119 {dimension_numbers = #tpu.dot_dimension_numbers<[1], [0], [0], [1], [0, 0, 1, 1], [], []>} : vector<8x4xbf16>, vector<4x324xbf16>, vector<8x324xf32> -> vector<8x324xf32>
    %145 = arith.addf %139, %144 : vector<8x324xf32>
    %c7_120 = arith.constant 7 : index
    %c0_121 = arith.constant 0 : index
    %c0_122 = arith.constant 0 : index
    %146 = vector.load %arg2[%c7_120, %c0_121, %c0_122] : memref<9x8x4xbf16, #tpu.memory_space<vmem>>, vector<1x8x4xbf16>
    %147 = vector.shape_cast %146 : vector<1x8x4xbf16> to vector<8x4xbf16>
    %c1_123 = arith.constant 1 : index
    %c0_124 = arith.constant 0 : index
    %c37_125 = arith.constant 37 : index
    %148 = vector.load %arg1[%c1_123, %c0_124, %c37_125] : memref<2x4x362xbf16, #tpu.memory_space<vmem>>, vector<1x4x324xbf16>
    %149 = vector.shape_cast %148 : vector<1x4x324xbf16> to vector<4x324xbf16>
    %cst_126 = arith.constant dense<0.000000e+00> : vector<8x324xf32>
    %150 = tpu.matmul %147, %149, %cst_126 {dimension_numbers = #tpu.dot_dimension_numbers<[1], [0], [0], [1], [0, 0, 1, 1], [], []>} : vector<8x4xbf16>, vector<4x324xbf16>, vector<8x324xf32> -> vector<8x324xf32>
    %151 = arith.addf %145, %150 : vector<8x324xf32>
    %c8_127 = arith.constant 8 : index
    %c0_128 = arith.constant 0 : index
    %c0_129 = arith.constant 0 : index
    %152 = vector.load %arg2[%c8_127, %c0_128, %c0_129] : memref<9x8x4xbf16, #tpu.memory_space<vmem>>, vector<1x8x4xbf16>
    %153 = vector.shape_cast %152 : vector<1x8x4xbf16> to vector<8x4xbf16>
    %c1_130 = arith.constant 1 : index
    %c0_131 = arith.constant 0 : index
    %c38_132 = arith.constant 38 : index
    %154 = vector.load %arg1[%c1_130, %c0_131, %c38_132] : memref<2x4x362xbf16, #tpu.memory_space<vmem>>, vector<1x4x324xbf16>
    %155 = vector.shape_cast %154 : vector<1x4x324xbf16> to vector<4x324xbf16>
    %cst_133 = arith.constant dense<0.000000e+00> : vector<8x324xf32>
    %156 = tpu.matmul %153, %155, %cst_133 {dimension_numbers = #tpu.dot_dimension_numbers<[1], [0], [0], [1], [0, 0, 1, 1], [], []>} : vector<8x4xbf16>, vector<4x324xbf16>, vector<8x324xf32> -> vector<8x324xf32>
    %157 = arith.addf %151, %156 : vector<8x324xf32>
    %c0_134 = arith.constant 0 : index
    %c0_135 = arith.constant 0 : index
    %158 = vector.load %arg3[%c0_134, %c0_135] : memref<8x1xf32, #tpu.memory_space<vmem>>, vector<8x1xf32>
    %159 = vector.broadcast %158 : vector<8x1xf32> to vector<8x324xf32>
    %160 = arith.addf %157, %159 : vector<8x324xf32>
    %cst_136 = arith.constant 5.000000e-01 : f32
    %161 = vector.broadcast %cst_136 : f32 to vector<8x324xf32>
    %162 = arith.mulf %161, %160 : vector<8x324xf32>
    %cst_137 = arith.constant 0.707106769 : f32
    %163 = vector.broadcast %cst_137 : f32 to vector<8x324xf32>
    %164 = arith.mulf %160, %163 : vector<8x324xf32>
    %165 = math.absf %164 : vector<8x324xf32>
    %cst_138 = arith.constant 0.327591091 : f32
    %166 = vector.broadcast %cst_138 : f32 to vector<8x324xf32>
    %167 = arith.mulf %166, %165 : vector<8x324xf32>
    %cst_139 = arith.constant 1.000000e+00 : f32
    %168 = vector.broadcast %cst_139 : f32 to vector<8x324xf32>
    %169 = arith.addf %168, %167 : vector<8x324xf32>
    %170 = tpu.reciprocal %169 {approx = true} : vector<8x324xf32> -> vector<8x324xf32>
    %cst_140 = arith.constant 1.06140542 : f32
    %171 = vector.broadcast %cst_140 : f32 to vector<8x324xf32>
    %172 = arith.mulf %171, %170 : vector<8x324xf32>
    %cst_141 = arith.constant 1.45315206 : f32
    %173 = vector.broadcast %cst_141 : f32 to vector<8x324xf32>
    %174 = arith.subf %172, %173 : vector<8x324xf32>
    %175 = arith.mulf %174, %170 : vector<8x324xf32>
    %cst_142 = arith.constant 1.42141378 : f32
    %176 = vector.broadcast %cst_142 : f32 to vector<8x324xf32>
    %177 = arith.addf %175, %176 : vector<8x324xf32>
    %178 = arith.mulf %177, %170 : vector<8x324xf32>
    %cst_143 = arith.constant 0.284496725 : f32
    %179 = vector.broadcast %cst_143 : f32 to vector<8x324xf32>
    %180 = arith.subf %178, %179 : vector<8x324xf32>
    %181 = arith.mulf %180, %170 : vector<8x324xf32>
    %cst_144 = arith.constant 0.254829586 : f32
    %182 = vector.broadcast %cst_144 : f32 to vector<8x324xf32>
    %183 = arith.addf %181, %182 : vector<8x324xf32>
    %184 = arith.mulf %183, %170 : vector<8x324xf32>
    %cst_145 = arith.constant 0.000000e+00 : f32
    %185 = vector.broadcast %cst_145 : f32 to vector<8x324xf32>
    %186 = arith.subf %185, %165 : vector<8x324xf32>
    %187 = arith.mulf %186, %165 : vector<8x324xf32>
    %188 = math.exp %187 : vector<8x324xf32>
    %189 = arith.mulf %184, %188 : vector<8x324xf32>
    %cst_146 = arith.constant 1.000000e+00 : f32
    %190 = vector.broadcast %cst_146 : f32 to vector<8x324xf32>
    %191 = arith.subf %190, %189 : vector<8x324xf32>
    %cst_147 = arith.constant 0.000000e+00 : f32
    %192 = vector.broadcast %cst_147 : f32 to vector<8x324xf32>
    %193 = arith.cmpf olt, %164, %192 : vector<8x324xf32>
    %cst_148 = arith.constant 0.000000e+00 : f32
    %194 = vector.broadcast %cst_148 : f32 to vector<8x324xf32>
    %195 = arith.subf %194, %191 : vector<8x324xf32>
    %196 = arith.select %193, %195, %191 : vector<8x324xi1>, vector<8x324xf32>
    %cst_149 = arith.constant 1.000000e+00 : f32
    %197 = vector.broadcast %cst_149 : f32 to vector<8x324xf32>
    %198 = arith.addf %197, %196 : vector<8x324xf32>
    %199 = arith.mulf %162, %198 : vector<8x324xf32>
    %200 = arith.truncf %199 : vector<8x324xf32> to vector<8x324xbf16>
    %c0_150 = arith.constant 0 : index
    %c0_151 = arith.constant 0 : index
    %201 = vector.load %arg4[%c0_150, %c0_151] : memref<324x1024xbf16, #tpu.memory_space<vmem>>, vector<324x1024xbf16>
    %cst_152 = arith.constant dense<0.000000e+00> : vector<8x1024xf32>
    %202 = tpu.matmul %200, %201, %cst_152 {dimension_numbers = #tpu.dot_dimension_numbers<[1], [0], [0], [1], [0, 0, 1, 1], [], []>} : vector<8x324xbf16>, vector<324x1024xbf16>, vector<8x1024xf32> -> vector<8x1024xf32>
    %c1_153 = arith.constant 1 : index
    %c0_154 = arith.constant 0 : index
    %c0_155 = arith.constant 0 : index
    %203 = vector.load %arg5[%c1_153, %c0_154, %c0_155] : memref<2x8x1024xf32, #tpu.memory_space<vmem>>, vector<1x8x1024xf32>
    %204 = vector.shape_cast %203 : vector<1x8x1024xf32> to vector<8x1024xf32>
    %205 = vector.shape_cast %202 : vector<8x1024xf32> to vector<1x8x1024xf32>
    tpu.vector_store %arg5[%c1_153, %c0_154, %c0_155], %205 {strides = array<i32>} : memref<2x8x1024xf32, #tpu.memory_space<vmem>>, vector<1x8x1024xf32>,
    return
  }
  func.func @transform_0(%arg0: i32) -> (i32, i32, i32) {
    %c0_i32 = arith.constant 0 : i32
    %c0_i32_0 = arith.constant 0 : i32
    %c0_i32_1 = arith.constant 0 : i32
    return %arg0, %c0_i32, %c0_i32_0 : i32, i32, i32
  }
  func.func @transform_1(%arg0: i32) -> (i32, i32, i32) {
    %c0_i32 = arith.constant 0 : i32
    %c0_i32_0 = arith.constant 0 : i32
    %c0_i32_1 = arith.constant 0 : i32
    %c0_i32_2 = arith.constant 0 : i32
    return %c0_i32, %c0_i32_0, %c0_i32_1 : i32, i32, i32
  }
  func.func @transform_2(%arg0: i32) -> (i32, i32) {
    %c0_i32 = arith.constant 0 : i32
    %c0_i32_0 = arith.constant 0 : i32
    %c0_i32_1 = arith.constant 0 : i32
    return %c0_i32, %c0_i32_0 : i32, i32
  }
  func.func @transform_3(%arg0: i32) -> (i32, i32) {
    %c0_i32 = arith.constant 0 : i32
    %c0_i32_0 = arith.constant 0 : i32
    %c0_i32_1 = arith.constant 0 : i32
    return %c0_i32, %c0_i32_0 : i32, i32
  }
  func.func @transform_4(%arg0: i32) -> (i32, i32, i32) {
    %c0_i32 = arith.constant 0 : i32
    %c0_i32_0 = arith.constant 0 : i32
    %c0_i32_1 = arith.constant 0 : i32
    return %arg0, %c0_i32, %c0_i32_0 : i32, i32, i32
  }
}

</mosaic_0001>

<bundles_post_ra>
// kernel: _lambda_.1
= control target key start
LH: loop header
LB: loop body
LE: loop exit
PB: predicated region body
PF: predicated region fallthrough
CT: control target
= control target key end

     0   :  { %9 = vsyncpa [#allocation3], 0  ;;  %s5804_s15 = smov [#allocation2]   ;;  %s6534_s0 = inlined_call_operand.vmem [shape: bf16[2,4,362], index: 0, kind: input, shape index: {}]   ;;  %s6535_s1 = inlined_call_operand.vmem [shape: bf16[9,8,4], index: 1, kind: input, shape index: {}]   ;;  %s6536_s2 = inlined_call_operand.vmem [shape: f32[8,1], index: 2, kind: input, shape index: {}]   ;;  %s6537_s3 = inlined_call_operand.hbm [shape: bf16[324,1024], index: 3, kind: input, shape index: {}]   ;;  %s6538_s4 = inlined_call_operand.vmem [shape: f32[2,8,1024], index: 4, kind: output, shape index: {}]  }
   0x1   :  { %s21_s16 = sshll.u32 %s5804_s15, 4  ;;  %s5780_s19 = scalar_lea.hbm %s6537_s3, 20992  ;;  %s22_s16 = int_to_ptr.vmem [resolvable:$true] %s21_s16 }
   0x2   :  { %p5781_p0 = scmp.ne.s32.totalorder %s6537_s3, %s5780_s19  ;;  %p5784_p1 = scmp.lt.u32.totalorder %s5780_s19, %s6537_s3 }
   0x4   :  { %p5786_p2 = pnand %p5784_p1, %p5781_p0 }
   0x6   :  { %5789 = shalt.err (!%p5786_p2)
}
   0x7   :  { %s5790_s24 = scalar_lea.vmem %s22_s16, 20992  ;;  %p5795_p4 = scmp.lt.s32.totalorder %s22_s16, %s22_s16 }
   0x8   :  { %p5791_p3 = scmp.ne.s32.totalorder %s22_s16, %s5790_s24  ;;  %p5796_p5 = scmp.lt.s32.totalorder %s5790_s24, %s5790_s24 }
   0xa   :  { %p5797_p6 = por %p5796_p5, %p5795_p4 }
   0xc   :  { %p5798_p7 = pnand %p5797_p6, %p5791_p3 }
   0xe   :  { %5801 = shalt.err (!%p5798_p7)
}
   0xf   :  { %s5805_s25 = smov 512   ;;  %s5806_s26 = smov 32  }
  0x10   :  { %27 = dma.hbm_to_vmem [thread:$0]  %s6537_s3, 20992, %s22_s16, [#allocation3], %s5805_s25, %s5805_s25, %s5806_s26  }
  0x11   :  { %5802 = dma.done.wait [#allocation3], 20992  }
  0x12   :  { %5803 = vsyncadd [#allocation3], 4294946304  ;;  %v41_v0 = vlaneseq  ;;  %v5807_v1 = vmov 1983009808   ;;  %v5808_v4 = vmov 0.0   ;;  %vm5809_vm0 = vmmov 0  }
  0x13   :  { %v39_v2 = vunpack.c.l.s4 %v5807_v1  ;;  %5568 = vmatprep.subr.bf16.mxu1 %v5808_v4  ;;  %5570 = vmatprep.mubr.msk.bf16.mxu1 %vm5809_vm0, %v5808_v4  ;;  %v5810_v6 = vmov 0   ;;  %v33_v8 = vld [vmem:[%s6534_s0] sm:$0x3f]  ;;  %s5811_s6 = smov 127   ;;  %s5812_s9 = smov 126   ;;  %vm66_vm1 = vcmask 1041408  }
  0x14   :  { %v42_v3 = vshrl.u32 %v41_v0, 7  ;;  %108 = vmatprep.mubr.bf16.mxu0 %v5810_v6  ;;  %5723 = vset.pattern.permute.xlu0 %v5810_v6  ;;  %v37_v10 = vcombine.high %v33_v8, %v33_v8  ;;  %v252_v11 = vld [vmem:[%s6534_s0] sm:$0x3f]  ;;  %s5813_s12 = smov 110   ;;  %s5814_s15 = smov 109   ;;  %vm59_vm2 = vcmask 1039360  }
  0x15   :  { %v40_v5 = vunpack.c.0.s8 %v39_v2  ;;  %v254_v15 = vcombine.high %v252_v11, %v252_v11  ;;  %v377_v17 = vld [vmem:[%s6534_s0] sm:$0x3f]  ;;  %s5815_s18 = smov 108   ;;  %s5816_s21 = smov 92   ;;  %v5944_v49 = vld [vmem:[%s6534_s0 + $0x6] sm:$0x3f] }
  0x16   :  { %v379_v20 = vcombine.high %v377_v17, %v377_v17  ;;  %v502_v22 = vld [vmem:[%s6534_s0] sm:$0x3f]  ;;  %s5817_s24 = smov 91   ;;  %s5818_s25 = smov 90   ;;  %v5949_v50 = vld [vmem:[%s6534_s0 + $0x6] sm:$0x3f]  ;;  %v2568_v51 = vcombine.high %v5944_v49, %v5944_v49 }
  0x17   :  { %v5861_v7 = vsub.s32 %v40_v5, %v42_v3  ;;  %v504_v25 = vcombine.high %v502_v22, %v502_v22  ;;  %v627_v27 = vld [vmem:[%s6534_s0] sm:$0x3f]  ;;  %v5313_v55 = vld [vmem:[%s6534_s0 + $0x6] sm:$0x3f]  ;;  %vm62_vm3 = vcmask 31744   ;;  %vm276_vm4 = vcmask 1031168  }
  0x18   :  { %v629_v30 = vcombine.high %v627_v27, %v627_v27  ;;  %v752_v32 = vld [vmem:[%s6534_s0] sm:$0x3f]  ;;  %v2904_v57 = vcombine.high %v5313_v55, %v5313_v55  ;;  %v5974_v58 = vld [vmem:[%s6534_s0 + $0x6] sm:$0x3f]  ;;  %vm401_vm5 = vcmask 900096   ;;  %vm526_vm6 = vcmask 891904  }
  0x19   :  { %v5867_v9 = vrot.slane %v33_v8, %v5861_v7  ;;  %v5875_v12 = vrot.slane %v37_v10, %v5861_v7  ;;  %v261_v14 = vrot.slane %v252_v11, %v5861_v7  ;;  %v268_v18 = vrot.slane %v254_v15, %v5861_v7  ;;  %v877_v37 = vld [vmem:[%s6534_s0] sm:$0x3f]  ;;  %v5323_v62 = vld [vmem:[%s6534_s0 + $0x6] sm:$0x3f] }
  0x1a   :  { %v386_v19 = vrot.slane %v377_v17, %v5861_v7  ;;  %v393_v23 = vrot.slane %v379_v20, %v5861_v7  ;;  %v511_v24 = vrot.slane %v502_v22, %v5861_v7  ;;  %v518_v28 = vrot.slane %v504_v25, %v5861_v7  ;;  %v1002_v42 = vld [vmem:[%s6534_s0] sm:$0x3f]  ;;  %v5996_v1 = vld [vmem:[%s6534_s0 + $0x6] sm:$0x3f] }
  0x1b   :  { %53 = vrot.lane.b32.xlu0 %v5867_v9, %s5811_s6  ;;  %v5879_v13 = vcombine.high %v5867_v9, %v5867_v9  ;;  %57 = vrot.lane.b32.xlu1 %v5875_v12, %s5811_s6  ;;  %v269_v16 = vcombine.high %v261_v14, %v261_v14  ;;  %v636_v29 = vrot.slane %v627_v27, %v5861_v7  ;;  %v1125_v48 = vld [vmem:[%s6536_s2] sm:$0xff]  ;;  %v167_v25 = vsel %vm66_vm1, %v5875_v12, 0 }
  0x1c   :  { %v394_v21 = vcombine.high %v386_v19, %v386_v19  ;;  %v519_v26 = vcombine.high %v511_v24, %v511_v24  ;;  %v643_v33 = vrot.slane %v629_v30, %v5861_v7  ;;  %v761_v34 = vrot.slane %v752_v32, %v5861_v7  ;;  %v5333_v8 = vld [vmem:[%s6534_s0 + $0x6] sm:$0x3f] }
  0x1d   :  { %v644_v31 = vcombine.high %v636_v29, %v636_v29  ;;  %v754_v35 = vcombine.high %v752_v32, %v752_v32  ;;  %v886_v39 = vrot.slane %v877_v37, %v5861_v7  ;;  %v879_v40 = vcombine.high %v877_v37, %v877_v37  ;;  %v5082_v22 = vld [vmem:[%s6535_s1 + $0x4] sm:$0xf] }
  0x1e   :  { %v769_v36 = vcombine.high %v761_v34, %v761_v34  ;;  %v1011_v44 = vrot.slane %v1002_v42, %v5861_v7  ;;  %v1004_v45 = vcombine.high %v1002_v42, %v1002_v42  ;;  %v5955_v52 = vrot.slane %v5949_v50, %v5861_v7 }
  0x1f   :  { %55 = vrot.lane.b32.xlu0 %v5879_v13, %s5811_s6  ;;  %270 = vrot.lane.b32.xlu1 %v261_v14, %s5812_s9  ;;  %v768_v38 = vrot.slane %v754_v35, %v5861_v7  ;;  %v894_v41 = vcombine.high %v886_v39, %v886_v39  ;;  %v893_v43 = vrot.slane %v879_v40, %v5861_v7  ;;  %v6018_v14 = vld [vmem:[%s6534_s0 + $0x6] sm:$0x3f]  ;;  %vm651_vm7 = vcmask 883712  }
  0x20   :  { %v1019_v46 = vcombine.high %v1011_v44, %v1011_v44  ;;  %v1018_v47 = vrot.slane %v1004_v45, %v5861_v7  ;;  %v5958_v53 = vrot.slane %v2568_v51, %v5861_v7  ;;  %v2796_v54 = vcombine.high %v5955_v52, %v5955_v52 }
  0x21   :  { %v5969_v56 = vrot.slane %v5313_v55, %v5861_v7  ;;  %v2918_v59 = vrot.slane %v2904_v57, %v5861_v7  ;;  %v5981_v60 = vrot.slane %v5974_v58, %v5861_v7  ;;  %v5991_v63 = vrot.slane %v5323_v62, %v5861_v7 }
  0x22   :  { %v3150_v0 = vcombine.high %v5323_v62, %v5323_v62  ;;  %v6003_v3 = vrot.slane %v5996_v1, %v5861_v7  ;;  %v6013_v10 = vrot.slane %v5333_v8, %v5861_v7  ;;  %v3396_v11 = vcombine.high %v5333_v8, %v5333_v8  ;;  %v5097_v62 = vld [vmem:[%s6535_s1 + $0x10] sm:$0xf] }
  0x23   :  { %272 = vrot.lane.b32.xlu0 %v269_v16, %s5812_s9  ;;  %274 = vrot.lane.b32.xlu1 %v268_v18, %s5812_s9  ;;  %v3042_v61 = vcombine.high %v5981_v60, %v5981_v60  ;;  %v6025_v16 = vrot.slane %v6018_v14, %v5861_v7  ;;  %vm776_vm8 = vcmask 752640   ;;  %vm901_vm9 = vcmask 744448  }
  0x24   :  { %v3164_v2 = vrot.slane %v3150_v0, %v5861_v7  ;;  %v3288_v5 = vcombine.high %v6003_v3, %v6003_v3  ;;  %v3410_v15 = vrot.slane %v3396_v11, %v5861_v7  ;;  %vm1026_vm10 = vcmask 736256  }
  0x25   :  { %v3534_v17 = vcombine.high %v6025_v16, %v6025_v16  ;;  %vm2199_vm14 = vcmask 556032  }
  0x27   :  { %395 = vrot.lane.b32.xlu0 %v386_v19, %s5813_s12  ;;  %397 = vrot.lane.b32.xlu1 %v394_v21, %s5813_s12 }
  0x2b   :  { %399 = vrot.lane.b32.xlu0 %v393_v23, %s5813_s12  ;;  %520 = vrot.lane.b32.xlu1 %v511_v24, %s5814_s15 }
  0x2f   :  { %522 = vrot.lane.b32.xlu0 %v519_v26, %s5814_s15  ;;  %524 = vrot.lane.b32.xlu1 %v518_v28, %s5814_s15  ;;  %v161_v28 = vsel %vm66_vm1, %v5867_v9, 0  ;;  %v32_v9 = vld [vmem:[%s6535_s1] sm:$0xf] }
  0x33   :  { %645 = vrot.lane.b32.xlu0 %v636_v29, %s5815_s18  ;;  %647 = vrot.lane.b32.xlu1 %v644_v31, %s5815_s18 }
  0x37   :  { %649 = vrot.lane.b32.xlu0 %v643_v33, %s5815_s18  ;;  %770 = vrot.lane.b32.xlu1 %v761_v34, %s5816_s21 }
  0x3b   :  { %772 = vrot.lane.b32.xlu0 %v769_v36, %s5816_s21  ;;  %774 = vrot.lane.b32.xlu1 %v768_v38, %s5816_s21  ;;  %v5089_v38 = vld [vmem:[%s6535_s1 + $0x8] sm:$0xf] }
  0x3f   :  { %895 = vrot.lane.b32.xlu0 %v886_v39, %s5817_s24  ;;  %897 = vrot.lane.b32.xlu1 %v894_v41, %s5817_s24 }
  0x43   :  { %899 = vrot.lane.b32.xlu0 %v893_v43, %s5817_s24  ;;  %1020 = vrot.lane.b32.xlu1 %v1011_v44, %s5818_s25 }
  0x47   :  { %1022 = vrot.lane.b32.xlu0 %v1019_v46, %s5818_s25  ;;  %1024 = vrot.lane.b32.xlu1 %v1018_v47, %s5818_s25  ;;  %v5093_v47 = vld [vmem:[%s6535_s1 + $0xc] sm:$0xf] }
  0x4b   :  { %1128 = vperm.xlu0 %5723, %v1125_v48  }
  0x4f   :  { %2588 = vrot.lane.b32.xlu0 %v5958_v53, %s5811_s6 }
  0x53   :  { %2799 = vrot.lane.b32.xlu0 %v2796_v54, %s5812_s9 }
  0x57   :  { %2920 = vrot.lane.b32.xlu0 %v5969_v56, %s5813_s12 }
  0x5b   :  { %2924 = vrot.lane.b32.xlu0 %v2918_v59, %s5813_s12 }
  0x5f   :  { %3045 = vrot.lane.b32.xlu0 %v3042_v61, %s5814_s15 }
  0x63   :  { %3166 = vrot.lane.b32.xlu0 %v5991_v63, %s5815_s18 }
  0x67   :  { %3170 = vrot.lane.b32.xlu0 %v3164_v2, %s5815_s18 }
  0x6b   :  { %3291 = vrot.lane.b32.xlu0 %v3288_v5, %s5816_s21 }
  0x6f   :  { %3412 = vrot.lane.b32.xlu0 %v6013_v10, %s5817_s24 }
  0x73   :  { %3416 = vrot.lane.b32.xlu0 %v3410_v15, %s5817_s24 }
  0x77   :  { %3537 = vrot.lane.b32.xlu0 %v3534_v17, %s5818_s25 }
  0x7b   :  { %3642 = vperm.xlu0 %5723, %v1125_v48  }
  0x8d   :  { %v54_v18 = vpop.permute.xlu0 %53  ;;  %v58_v19 = vpop.permute.xlu1 %57 }
  0x8e   :  { %v74_v20 = vsel %vm66_vm1, %v58_v19, 0 }
  0x8f   :  { %5569 = vmatpush3.bf16.msra.mxu1 %v74_v20 }
  0x90   :  { %5574 = vmatprep.subr.bf16.mxu1 %v5808_v4 }
  0x91   :  { %v56_v21 = vpop.permute.xlu0 %55  ;;  %v271_v27 = vpop.permute.xlu1 %270 }
  0x92   :  { %v61_v23 = vsel %vm59_vm2, %v56_v21, %v58_v19  ;;  %v60_v24 = vsel %vm59_vm2, %v54_v18, %v56_v21  ;;  %5571 = vmatmul.mubr.msk.bf16.vlgmr.msra.gmra.mrb[0].mxu1 %vm62_vm3, %v5082_v22  ;;  %v5101_v18 = vld [vmem:[%s6535_s1 + $0x14] sm:$0xf] }
  0x93   :  { %5083 = vmatprep.subr.msk.bf16.mxu0 %vm66_vm1, %v61_v23  ;;  %v68_v26 = vsel %vm66_vm1, %v60_v24, 0  ;;  %5575 = vmatpush3.bf16.msra.mxu1 %v167_v25  ;;  %v5105_v25 = vld [vmem:[%s6535_s1 + $0x18] sm:$0xf] }
  0x94   :  { %77 = vmatpush1.bf16.msra.mxu0 %v68_v26  ;;  %5576 = vmatprep.mubr.msk.bf16.mxu1 %vm5809_vm0, %v5808_v4 }
  0x95   :  { %5086 = vmatprep.subr.msk.bf16.mxu0 %vm66_vm1, %v5879_v13  ;;  %v273_v29 = vpop.permute.xlu0 %272  ;;  %5580 = vmatprep.subr.bf16.mxu1 %v5808_v4  ;;  %v275_v12 = vpop.permute.xlu1 %274 }
  0x96   :  { %v278_v30 = vsel %vm276_vm4, %v273_v29, %v275_v12  ;;  %v277_v31 = vsel %vm276_vm4, %v271_v27, %v273_v29  ;;  %v289_v32 = vsel %vm66_vm1, %v275_v12, 0 }
  0x97   :  { %5084 = vmatmul.mubr.msk.bf16.vlgmr.msra.gmra.mrb[0].mxu0 %vm62_vm3, %v5082_v22  ;;  %v283_v34 = vsel %vm66_vm1, %v277_v31, 0 }
  0x98   :  { %170 = vmatpush1.bf16.msra.mxu0 %v161_v28  ;;  %201 = vmatprep.mubr.bf16.mxu0 %v5810_v6 }
  0x99   :  { %5090 = vmatprep.subr.msk.bf16.mxu0 %vm66_vm1, %v278_v30  ;;  %v396_v13 = vpop.permute.xlu0 %395  ;;  %v398_v33 = vpop.permute.xlu1 %397 }
  0x9a   :  { %5577 = vmatmul.mubr.msk.bf16.vlgmr.msra.gmra.mrb[4].mxu1 %vm62_vm3, %v32_v9  ;;  %v402_v40 = vsel %vm401_vm5, %v396_v13, %v398_v33 }
  0x9b   :  { %5581 = vmatpush3.bf16.msra.mxu1 %v289_v32  ;;  %5582 = vmatprep.mubr.msk.bf16.mxu1 %vm5809_vm0, %v5808_v4  ;;  %v408_v43 = vsel %vm66_vm1, %v402_v40, 0 }
  0x9c   :  { %5586 = vmatprep.subr.bf16.mxu1 %v5808_v4 }
  0x9d   :  { %v400_v35 = vpop.permute.xlu0 %399  ;;  %v521_v37 = vpop.permute.xlu1 %520 }
  0x9e   :  { %v403_v36 = vsel %vm401_vm5, %v398_v33, %v400_v35  ;;  %v414_v41 = vsel %vm66_vm1, %v400_v35, 0  ;;  %v5113_v33 = vld [vmem:[%s6535_s1 + $0x20] sm:$0xf] }
  0x9f   :  { %5087 = vmatmul.mubr.msk.bf16.vlgmr.msra.gmra.mrb[4].mxu0 %vm62_vm3, %v32_v9  ;;  %v5109_v9 = vld [vmem:[%s6535_s1 + $0x1c] sm:$0xf]  ;;  %v1219_v35 = vld [vmem:[#allocation2 + $0x20] sm:$0xff] }
  0xa0   :  { %292 = vmatpush1.bf16.msra.mxu0 %v283_v34  ;;  %323 = vmatprep.mubr.bf16.mxu0 %v5810_v6  ;;  %v1215_v34 = vld [vmem:[#allocation2] sm:$0xff] }
  0xa1   :  { %5094 = vmatprep.subr.msk.bf16.mxu0 %vm66_vm1, %v403_v36  ;;  %v523_v39 = vpop.permute.xlu0 %522  ;;  %v525_v42 = vpop.permute.xlu1 %524  ;;  %v1216_v36 = vld [vmem:[#allocation2 + $0x8] sm:$0xff] }
  0xa2   :  { %5583 = vmatmul.mubr.msk.bf16.vlgmr.msra.gmra.mrb[8].mxu1 %vm62_vm3, %v5089_v38  ;;  %v528_v45 = vsel %vm526_vm6, %v523_v39, %v525_v42  ;;  %v527_v48 = vsel %vm526_vm6, %v521_v37, %v523_v39  ;;  %v539_v51 = vsel %vm66_vm1, %v525_v42, 0  ;;  %v5124_v37 = vcombine.high %v1215_v34, %v1219_v35  ;;  %v1223_v42 = vld [vmem:[#allocation2 + $0x40] sm:$0xff] }
  0xa3   :  { %5587 = vmatpush3.bf16.msra.mxu1 %v414_v41  ;;  %5588 = vmatprep.mubr.msk.bf16.mxu1 %vm5809_vm0, %v5808_v4  ;;  %v533_v55 = vsel %vm66_vm1, %v527_v48, 0  ;;  %v5123_v39 = vcombine.low %v1215_v34, %v1219_v35  ;;  %v1263_v34 = vld [vmem:[#allocation2 + $0x180] sm:$0xff] }
  0xa4   :  { %5592 = vmatprep.subr.bf16.mxu1 %v5808_v4  ;;  %v1267_v35 = vld [vmem:[#allocation2 + $0x1a0] sm:$0xff] }
  0xa5   :  { %v646_v44 = vpop.permute.xlu0 %645  ;;  %v648_v46 = vpop.permute.xlu1 %647 }
  0xa6   :  { %v652_v0 = vsel %vm651_vm7, %v646_v44, %v648_v46  ;;  %v1224_v44 = vld [vmem:[#allocation2 + $0x48] sm:$0xff] }
  0xa7   :  { %5091 = vmatmul.mubr.msk.bf16.vlgmr.msra.gmra.mrb[8].mxu0 %vm62_vm3, %v5089_v38  ;;  %v658_v8 = vsel %vm66_vm1, %v652_v0, 0  ;;  %v1220_v38 = vld [vmem:[#allocation2 + $0x28] sm:$0xff] }
  0xa8   :  { %417 = vmatpush1.bf16.msra.mxu0 %v408_v43  ;;  %448 = vmatprep.mubr.bf16.mxu0 %v5810_v6  ;;  %v5125_v40 = vcombine.low %v1216_v36, %v1220_v38  ;;  %v5126_v41 = vcombine.high %v1216_v36, %v1220_v38  ;;  %v1227_v43 = vld [vmem:[#allocation2 + $0x60] sm:$0xff]  ;;  %v1264_v36 = vld [vmem:[#allocation2 + $0x188] sm:$0xff] }
  0xa9   :  { %5098 = vmatprep.subr.msk.bf16.mxu0 %vm66_vm1, %v528_v45  ;;  %v650_v54 = vpop.permute.xlu0 %649  ;;  %v771_v57 = vpop.permute.xlu1 %770  ;;  %v5132_v45 = vcombine.high %v1223_v42, %v1227_v43  ;;  %v1268_v38 = vld [vmem:[#allocation2 + $0x1a8] sm:$0xff] }
  0xaa   :  { %5589 = vmatmul.mubr.msk.bf16.vlgmr.msra.gmra.mrb[12].mxu1 %vm62_vm3, %v5093_v47  ;;  %v653_v59 = vsel %vm651_vm7, %v648_v46, %v650_v54  ;;  %v664_v2 = vsel %vm66_vm1, %v650_v54, 0  ;;  %v1228_v46 = vld [vmem:[#allocation2 + $0x68] sm:$0xff]  ;;  %v1231_v54 = vld [vmem:[#allocation2 + $0x80] sm:$0xff] }
  0xab   :  { %5593 = vmatpush3.bf16.msra.mxu1 %v539_v51  ;;  %5594 = vmatprep.mubr.msk.bf16.mxu1 %vm5809_vm0, %v5808_v4  ;;  %v5133_v48 = vcombine.low %v1224_v44, %v1228_v46  ;;  %v5134_v51 = vcombine.high %v1224_v44, %v1228_v46  ;;  %v1272_v44 = vld [vmem:[#allocation2 + $0x1c8] sm:$0xff] }
  0xac   :  { %5598 = vmatprep.subr.bf16.mxu1 %v5808_v4  ;;  %v1276_v46 = vld [vmem:[#allocation2 + $0x1e8] sm:$0xff] }
  0xad   :  { %v773_v61 = vpop.permute.xlu0 %772  ;;  %v775_v5 = vpop.permute.xlu1 %774 }
  0xae   :  { %v778_v15 = vsel %vm776_vm8, %v773_v61, %v775_v5  ;;  %v777_v19 = vsel %vm776_vm8, %v771_v57, %v773_v61  ;;  %v789_v20 = vsel %vm66_vm1, %v775_v5, 0  ;;  %v1232_v57 = vld [vmem:[#allocation2 + $0x88] sm:$0xff]  ;;  %v1239_v5 = vld [vmem:[#allocation2 + $0xc0] sm:$0xff] }
  0xaf   :  { %5095 = vmatmul.mubr.msk.bf16.vlgmr.msra.gmra.mrb[12].mxu0 %vm62_vm3, %v5093_v47  ;;  %v783_v22 = vsel %vm66_vm1, %v777_v19, 0  ;;  %v5131_v47 = vcombine.low %v1223_v42, %v1227_v43  ;;  %v1236_v61 = vld [vmem:[#allocation2 + $0xa8] sm:$0xff]  ;;  %v1271_v42 = vld [vmem:[#allocation2 + $0x1c0] sm:$0xff] }
  0xb0   :  { %542 = vmatpush1.bf16.msra.mxu0 %v533_v55  ;;  %573 = vmatprep.mubr.bf16.mxu0 %v5810_v6  ;;  %v1235_v55 = vld [vmem:[#allocation2 + $0xa0] sm:$0xff]  ;;  %v5141_v0 = vcombine.low %v1232_v57, %v1236_v61 }
  0xb1   :  { %5102 = vmatprep.subr.msk.bf16.mxu0 %vm66_vm1, %v653_v59  ;;  %v896_v11 = vpop.permute.xlu0 %895  ;;  %v898_v17 = vpop.permute.xlu1 %897  ;;  %v5140_v59 = vcombine.high %v1231_v54, %v1235_v55  ;;  %v1275_v43 = vld [vmem:[#allocation2 + $0x1e0] sm:$0xff] }
  0xb2   :  { %5595 = vmatmul.mubr.msk.bf16.vlgmr.msra.gmra.mrb[16].mxu1 %vm62_vm3, %v5097_v62  ;;  %v902_v26 = vsel %vm901_vm9, %v896_v11, %v898_v17  ;;  %v1240_v11 = vld [vmem:[#allocation2 + $0xc8] sm:$0xff] }
  0xb3   :  { %5599 = vmatpush3.bf16.msra.mxu1 %v664_v2  ;;  %5600 = vmatprep.mubr.msk.bf16.mxu1 %vm5809_vm0, %v5808_v4  ;;  %v908_v12 = vsel %vm66_vm1, %v902_v26, 0  ;;  %v5142_v2 = vcombine.high %v1232_v57, %v1236_v61  ;;  %v1280_v57 = vld [vmem:[#allocation2 + $0x208] sm:$0xff] }
  0xb4   :  { %5604 = vmatprep.subr.bf16.mxu1 %v5808_v4  ;;  %v1284_v61 = vld [vmem:[#allocation2 + $0x228] sm:$0xff] }
  0xb5   :  { %v900_v21 = vpop.permute.xlu0 %899  ;;  %v1021_v23 = vpop.permute.xlu1 %1020 }
  0xb6   :  { %v903_v24 = vsel %vm901_vm9, %v898_v17, %v900_v21  ;;  %v914_v27 = vsel %vm66_vm1, %v900_v21, 0  ;;  %v1244_v17 = vld [vmem:[#allocation2 + $0xe8] sm:$0xff]  ;;  %v1247_v21 = vld [vmem:[#allocation2 + $0x100] sm:$0xff] }
  0xb7   :  { %5099 = vmatmul.mubr.msk.bf16.vlgmr.msra.gmra.mrb[16].mxu0 %vm62_vm3, %v5097_v62  ;;  %v5139_v62 = vcombine.low %v1231_v54, %v1235_v55  ;;  %v5149_v19 = vcombine.low %v1240_v11, %v1244_v17  ;;  %v1279_v54 = vld [vmem:[#allocation2 + $0x200] sm:$0xff] }
  0xb8   :  { %667 = vmatpush1.bf16.msra.mxu0 %v658_v8  ;;  %698 = vmatprep.mubr.bf16.mxu0 %v5810_v6  ;;  %v1243_v8 = vld [vmem:[#allocation2 + $0xe0] sm:$0xff] }
  0xb9   :  { %5106 = vmatprep.subr.msk.bf16.mxu0 %vm66_vm1, %v778_v15  ;;  %v1023_v28 = vpop.permute.xlu0 %1022  ;;  %v1025_v29 = vpop.permute.xlu1 %1024  ;;  %v5148_v15 = vcombine.high %v1239_v5, %v1243_v8  ;;  %v1283_v55 = vld [vmem:[#allocation2 + $0x220] sm:$0xff] }
  0xba   :  { %5601 = vmatmul.mubr.msk.bf16.vlgmr.msra.gmra.mrb[20].mxu1 %vm62_vm3, %v5101_v18  ;;  %v1028_v30 = vsel %vm1026_vm10, %v1023_v28, %v1025_v29  ;;  %v1027_v13 = vsel %vm1026_vm10, %v1021_v23, %v1023_v28  ;;  %v1039_v31 = vsel %vm66_vm1, %v1025_v29, 0  ;;  %v1248_v23 = vld [vmem:[#allocation2 + $0x108] sm:$0xff]  ;;  %v1255_v29 = vld [vmem:[#allocation2 + $0x140] sm:$0xff] }
  0xbb   :  { %5605 = vmatpush3.bf16.msra.mxu1 %v789_v20  ;;  %5606 = vmatprep.mubr.msk.bf16.mxu1 %vm5809_vm0, %v5808_v4  ;;  %v1033_v32 = vsel %vm66_vm1, %v1027_v13, 0  ;;  %v5150_v20 = vcombine.high %v1240_v11, %v1244_v17  ;;  %v1260_v13 = vld [vmem:[#allocation2 + $0x168] sm:$0xff] }
  0xbc   :  { %5610 = vmatprep.subr.bf16.mxu1 %v5808_v4  ;;  %v1288_v11 = vld [vmem:[#allocation2 + $0x248] sm:$0xff] }
  0xbd   :  { %v1292_v17 = vld [vmem:[#allocation2 + $0x268] sm:$0xff] }
  0xbf   :  { %5103 = vmatmul.mubr.msk.bf16.vlgmr.msra.gmra.mrb[20].mxu0 %vm62_vm3, %v5101_v18  ;;  %v5147_v18 = vcombine.low %v1239_v5, %v1243_v8  ;;  %v1287_v5 = vld [vmem:[#allocation2 + $0x240] sm:$0xff] }
  0xc0   :  { %792 = vmatpush1.bf16.msra.mxu0 %v783_v22  ;;  %823 = vmatprep.mubr.bf16.mxu0 %v5810_v6  ;;  %v1251_v22 = vld [vmem:[#allocation2 + $0x120] sm:$0xff] }
  0xc1   :  { %5110 = vmatprep.subr.msk.bf16.mxu0 %vm66_vm1, %v903_v24  ;;  %v5156_v24 = vcombine.high %v1247_v21, %v1251_v22  ;;  %v5155_v26 = vcombine.low %v1247_v21, %v1251_v22  ;;  %v1291_v8 = vld [vmem:[#allocation2 + $0x260] sm:$0xff] }
  0xc2   :  { %5607 = vmatmul.mubr.msk.bf16.vlgmr.msra.gmra.mrb[24].mxu1 %vm62_vm3, %v5105_v25  ;;  %v1295_v21 = vld [vmem:[#allocation2 + $0x280] sm:$0xff] }
  0xc3   :  { %5611 = vmatpush3.bf16.msra.mxu1 %v914_v27  ;;  %5612 = vmatprep.mubr.msk.bf16.mxu1 %vm5809_vm0, %v5808_v4  ;;  %v1299_v22 = vld [vmem:[#allocation2 + $0x2a0] sm:$0xff] }
  0xc4   :  { %5616 = vmatprep.subr.bf16.mxu1 %v5808_v4 }
  0xc7   :  { %5107 = vmatmul.mubr.msk.bf16.vlgmr.msra.gmra.mrb[24].mxu0 %vm62_vm3, %v5105_v25  ;;  %v1252_v25 = vld [vmem:[#allocation2 + $0x128] sm:$0xff] }
  0xc8   :  { %917 = vmatpush1.bf16.msra.mxu0 %v908_v12  ;;  %948 = vmatprep.mubr.bf16.mxu0 %v5810_v6  ;;  %v5157_v27 = vcombine.low %v1248_v23, %v1252_v25  ;;  %v5158_v28 = vcombine.high %v1248_v23, %v1252_v25  ;;  %v1259_v12 = vld [vmem:[#allocation2 + $0x160] sm:$0xff]  ;;  %v1296_v23 = vld [vmem:[#allocation2 + $0x288] sm:$0xff] }
  0xc9   :  { %5114 = vmatprep.subr.msk.bf16.mxu0 %vm66_vm1, %v1028_v30  ;;  %v1256_v30 = vld [vmem:[#allocation2 + $0x148] sm:$0xff] }
  0xca   :  { %5613 = vmatmul.mubr.msk.bf16.vlgmr.msra.gmra.mrb[28].mxu1 %vm62_vm3, %v5109_v9  ;;  %v1300_v25 = vld [vmem:[#allocation2 + $0x2a8] sm:$0xff] }
  0xcb   :  { %5617 = vmatpush3.bf16.msra.mxu1 %v1039_v31  ;;  %5618 = vmatprep.mubr.msk.bf16.mxu1 %vm5809_vm0, %v5808_v4  ;;  %v5163_v31 = vcombine.low %v1255_v29, %v1259_v12 }
  0xcc   :  { %2309 = vmatprep.subr.bf16.mxu1 %v5126_v41  ;;  %v5174_v41 = vcombine.high %v1264_v36, %v1268_v38 }
  0xcf   :  { %5111 = vmatmul.mubr.msk.bf16.vlgmr.msra.gmra.mrb[28].mxu0 %vm62_vm3, %v5109_v9  ;;  %v5164_v9 = vcombine.high %v1255_v29, %v1259_v12  ;;  %v1303_v29 = vld [vmem:[#allocation2 + $0x2c0] sm:$0xff] }
  0xd0   :  { %1042 = vmatpush1.bf16.msra.mxu0 %v1033_v32  ;;  %1073 = vmatprep.mubr.bf16.mxu0 %v5810_v6  ;;  %v5165_v32 = vcombine.low %v1256_v30, %v1260_v13  ;;  %v1307_v12 = vld [vmem:[#allocation2 + $0x2e0] sm:$0xff] }
  0xd1   :  { %2227 = vmatprep.subr.bf16.mxu0 %v5124_v37  ;;  %v5172_v37 = vcombine.high %v1263_v34, %v1267_v35 }
  0xd2   :  { %5619 = vmatmul.mubr.msk.bf16.vlgmr.msra.gmra.mrb[32].mxu1 %vm62_vm3, %v5113_v33 }
  0xd3   :  { %2310 = vmatpush1.bf16.msra.mxu1 %v5125_v40  ;;  %v5173_v40 = vcombine.low %v1264_v36, %v1268_v38  ;;  %v1312_v36 = vld [vmem:[#allocation2 + $0x308] sm:$0xff] }
  0xd4   :  { %2311 = vmatprep.subr.bf16.mxu1 %v5134_v51  ;;  %v5182_v51 = vcombine.high %v1272_v44, %v1276_v46 }
  0xd7   :  { %5115 = vmatmul.mubr.msk.bf16.vlgmr.msra.gmra.mrb[32].mxu0 %vm62_vm3, %v5113_v33  ;;  %2312 = vmatpush1.bf16.msra.mxu1 %v5133_v48  ;;  %v5166_v33 = vcombine.high %v1256_v30, %v1260_v13  ;;  %v5181_v48 = vcombine.low %v1272_v44, %v1276_v46  ;;  %v1304_v30 = vld [vmem:[#allocation2 + $0x2c8] sm:$0xff]  ;;  %v1323_v44 = vld [vmem:[#allocation2 + $0x360] sm:$0xff] }
  0xd8   :  { %2228 = vmatpush1.bf16.msra.mxu0 %v5123_v39  ;;  %2313 = vmatprep.subr.bf16.mxu1 %v5142_v2  ;;  %v5171_v39 = vcombine.low %v1263_v34, %v1267_v35  ;;  %v5190_v2 = vcombine.high %v1280_v57, %v1284_v61  ;;  %v1308_v13 = vld [vmem:[#allocation2 + $0x2e8] sm:$0xff]  ;;  %v1311_v34 = vld [vmem:[#allocation2 + $0x300] sm:$0xff] }
  0xd9   :  { %2229 = vmatprep.subr.bf16.mxu0 %v5132_v45  ;;  %v5180_v45 = vcombine.high %v1271_v42, %v1275_v43  ;;  %v1315_v35 = vld [vmem:[#allocation2 + $0x320] sm:$0xff] }
  0xda   :  { %v5220_v38 = vcombine.high %v1311_v34, %v1315_v35 }
  0xdb   :  { %2314 = vmatpush1.bf16.msra.mxu1 %v5141_v0  ;;  %v5189_v0 = vcombine.low %v1280_v57, %v1284_v61  ;;  %v1331_v57 = vld [vmem:[#allocation2 + $0x3a0] sm:$0xff] }
  0xdc   :  { %2230 = vmatpush1.bf16.msra.mxu0 %v5131_v47  ;;  %2315 = vmatprep.subr.bf16.mxu1 %v5150_v20  ;;  %v5179_v47 = vcombine.low %v1271_v42, %v1275_v43  ;;  %v5198_v20 = vcombine.high %v1288_v11, %v1292_v17  ;;  %v1319_v43 = vld [vmem:[#allocation2 + $0x340] sm:$0xff] }
  0xdd   :  { %2231 = vmatprep.subr.bf16.mxu0 %v5140_v59  ;;  %v5188_v59 = vcombine.high %v1279_v54, %v1283_v55 }
  0xdf   :  { %2316 = vmatpush1.bf16.msra.mxu1 %v5149_v19  ;;  %v5197_v19 = vcombine.low %v1288_v11, %v1292_v17  ;;  %v1339_v11 = vld [vmem:[#allocation2 + $0x3e0] sm:$0xff] }
  0xe0   :  { %2232 = vmatpush1.bf16.msra.mxu0 %v5139_v62  ;;  %2317 = vmatprep.subr.bf16.mxu1 %v5158_v28  ;;  %v5187_v62 = vcombine.low %v1279_v54, %v1283_v55  ;;  %v5206_v28 = vcombine.high %v1296_v23, %v1300_v25  ;;  %v1327_v55 = vld [vmem:[#allocation2 + $0x380] sm:$0xff] }
  0xe1   :  { %2233 = vmatprep.subr.bf16.mxu0 %v5148_v15  ;;  %v5196_v15 = vcombine.high %v1287_v5, %v1291_v8  ;;  %v5236_v61 = vcombine.high %v1327_v55, %v1331_v57 }
  0xe3   :  { %2318 = vmatpush1.bf16.msra.mxu1 %v5157_v27  ;;  %v5205_v27 = vcombine.low %v1296_v23, %v1300_v25  ;;  %v6170_v23 = vld [vmem:[#allocation2 + $0x420] sm:$0xff]  ;;  %v6176_v25 = vld [vmem:[#allocation2 + $0x428] sm:$0xff] }
  0xe4   :  { %2234 = vmatpush1.bf16.msra.mxu0 %v5147_v18  ;;  %2319 = vmatprep.subr.bf16.mxu1 %v5166_v33  ;;  %v5195_v18 = vcombine.low %v1287_v5, %v1291_v8  ;;  %v5214_v33 = vcombine.high %v1304_v30, %v1308_v13  ;;  %v1335_v8 = vld [vmem:[#allocation2 + $0x3c0] sm:$0xff] }
  0xe5   :  { %2235 = vmatprep.subr.bf16.mxu0 %v5156_v24  ;;  %v5204_v24 = vcombine.high %v1295_v21, %v1299_v22  ;;  %v5244_v17 = vcombine.high %v1335_v8, %v1339_v11 }
  0xe7   :  { %2320 = vmatpush1.bf16.msra.mxu1 %v5165_v32  ;;  %v5213_v32 = vcombine.low %v1304_v30, %v1308_v13  ;;  %v2919_v13 = vcombine.high %v5969_v56, %v5969_v56  ;;  %v3027_v56 = vcombine.high %v5974_v58, %v5974_v58 }
  0xe8   :  { %2236 = vmatpush1.bf16.msra.mxu0 %v5155_v26  ;;  %2321 = vmatprep.subr.bf16.mxu1 %v5174_v41  ;;  %v5203_v26 = vcombine.low %v1295_v21, %v1299_v22  ;;  %v6168_v22 = vld [vmem:[#allocation2 + $0x400] sm:$0xff] }
  0xe9   :  { %2237 = vmatprep.subr.bf16.mxu0 %v5164_v9  ;;  %v5212_v9 = vcombine.high %v1303_v29, %v1307_v12 }
  0xeb   :  { %2322 = vmatpush1.bf16.msra.mxu1 %v5173_v40  ;;  %v5219_v40 = vcombine.low %v1311_v34, %v1315_v35 }
  0xec   :  { %2238 = vmatpush1.bf16.msra.mxu0 %v5163_v31  ;;  %2323 = vmatprep.subr.bf16.mxu1 %v5182_v51  ;;  %v5211_v31 = vcombine.low %v1303_v29, %v1307_v12  ;;  %v2781_v29 = vcombine.high %v5949_v50, %v5949_v50 }
  0xed   :  { %2239 = vmatprep.subr.bf16.mxu0 %v5172_v37  ;;  %v6156_v37 = vrot.slane %v5944_v49, %v5861_v7  ;;  %v5228_v49 = vcombine.high %v1319_v43, %v1323_v44 }
  0xee   :  { %v2795_v12 = vrot.slane %v2781_v29, %v5861_v7 }
  0xef   :  { %2324 = vmatpush1.bf16.msra.mxu1 %v5181_v48  ;;  %2584 = vrot.lane.b32.xlu1 %v6156_v37, %s5811_s6  ;;  %v6162_v46 = vcombine.high %v6156_v37, %v6156_v37  ;;  %v5227_v48 = vcombine.low %v1319_v43, %v1323_v44 }
  0xf0   :  { %2240 = vmatpush1.bf16.msra.mxu0 %v5171_v39  ;;  %2325 = vmatprep.subr.bf16.mxu1 %v5190_v2  ;;  %v1316_v39 = vld [vmem:[#allocation2 + $0x328] sm:$0xff] }
  0xf1   :  { %2241 = vmatprep.subr.bf16.mxu0 %v5180_v45  ;;  %v5221_v41 = vcombine.low %v1312_v36, %v1316_v39  ;;  %v5222_v42 = vcombine.high %v1312_v36, %v1316_v39  ;;  %v1320_v45 = vld [vmem:[#allocation2 + $0x348] sm:$0xff] }
  0xf3   :  { %2326 = vmatpush1.bf16.msra.mxu1 %v5189_v0  ;;  %2586 = vrot.lane.b32.xlu1 %v6162_v46, %s5811_s6  ;;  %v5235_v0 = vcombine.low %v1327_v55, %v1331_v57  ;;  %v3165_v57 = vcombine.high %v5991_v63, %v5991_v63 }
  0xf4   :  { %2242 = vmatpush1.bf16.msra.mxu0 %v5179_v47  ;;  %2327 = vmatprep.subr.bf16.mxu1 %v5198_v20  ;;  %v1324_v47 = vld [vmem:[#allocation2 + $0x368] sm:$0xff] }
  0xf5   :  { %2243 = vmatprep.subr.bf16.mxu0 %v5188_v59  ;;  %v5229_v51 = vcombine.low %v1320_v45, %v1324_v47  ;;  %v5230_v54 = vcombine.high %v1320_v45, %v1324_v47  ;;  %v1328_v59 = vld [vmem:[#allocation2 + $0x388] sm:$0xff] }
  0xf7   :  { %2328 = vmatpush1.bf16.msra.mxu1 %v5197_v19  ;;  %2797 = vrot.lane.b32.xlu1 %v5955_v52, %s5812_s9  ;;  %v5243_v19 = vcombine.low %v1335_v8, %v1339_v11  ;;  %v5252_v52 = vcombine.high %v6168_v22, %v6170_v23 }
  0xf8   :  { %2244 = vmatpush1.bf16.msra.mxu0 %v5187_v62  ;;  %2329 = vmatprep.subr.bf16.mxu1 %v5206_v28  ;;  %v1332_v62 = vld [vmem:[#allocation2 + $0x3a8] sm:$0xff] }
  0xf9   :  { %2245 = vmatprep.subr.bf16.mxu0 %v5196_v15  ;;  %v5237_v2 = vcombine.low %v1328_v59, %v1332_v62  ;;  %v5238_v5 = vcombine.high %v1328_v59, %v1332_v62  ;;  %v1336_v15 = vld [vmem:[#allocation2 + $0x3c8] sm:$0xff] }
  0xfb   :  { %2330 = vmatpush1.bf16.msra.mxu1 %v5205_v27  ;;  %2801 = vrot.lane.b32.xlu1 %v2795_v12, %s5812_s9 }
  0xfc   :  { %2246 = vmatpush1.bf16.msra.mxu0 %v5195_v18  ;;  %2331 = vmatprep.subr.bf16.mxu1 %v5214_v33  ;;  %v1340_v18 = vld [vmem:[#allocation2 + $0x3e8] sm:$0xff] }
  0xfd   :  { %2247 = vmatprep.subr.bf16.mxu0 %v5204_v24  ;;  %v5245_v20 = vcombine.low %v1336_v15, %v1340_v18  ;;  %v5246_v21 = vcombine.high %v1336_v15, %v1340_v18  ;;  %v6172_v24 = vld [vmem:[#allocation2 + $0x408] sm:$0xff] }
  0xfe   :  { %v5253_v27 = vcombine.low %v6172_v24, %v6176_v25  ;;  %v5254_v28 = vcombine.high %v6172_v24, %v6176_v25 }
  0xff   :  { %2332 = vmatpush1.bf16.msra.mxu1 %v5213_v32  ;;  %2922 = vrot.lane.b32.xlu1 %v2919_v13, %s5813_s12 }
 0x100   :  { %2248 = vmatpush1.bf16.msra.mxu0 %v5203_v26  ;;  %2333 = vmatprep.subr.bf16.mxu1 %v5222_v42  ;;  %v5251_v26 = vcombine.low %v6168_v22, %v6170_v23 }
 0x101   :  { %2249 = vmatprep.subr.bf16.mxu0 %v5212_v9 }
 0x103   :  { %2334 = vmatpush1.bf16.msra.mxu1 %v5221_v41  ;;  %3043 = vrot.lane.b32.xlu1 %v5981_v60, %s5814_s15 }
 0x104   :  { %2250 = vmatpush1.bf16.msra.mxu0 %v5211_v31  ;;  %2335 = vmatprep.subr.bf16.mxu1 %v5230_v54 }
 0x105   :  { %2251 = vmatprep.subr.bf16.mxu0 %v5220_v38 }
 0x107   :  { %2336 = vmatpush1.bf16.msra.mxu1 %v5229_v51 }
 0x108   :  { %2252 = vmatpush1.bf16.msra.mxu0 %v5219_v40  ;;  %2337 = vmatprep.subr.bf16.mxu1 %v5238_v5 }
 0x109   :  { %2253 = vmatprep.subr.bf16.mxu0 %v5228_v49 }
 0x10b   :  { %2338 = vmatpush1.bf16.msra.mxu1 %v5237_v2 }
 0x10c   :  { %2254 = vmatpush1.bf16.msra.mxu0 %v5227_v48  ;;  %2339 = vmatprep.subr.bf16.mxu1 %v5246_v21  ;;  %v3041_v48 = vrot.slane %v3027_v56, %v5861_v7 }
 0x10d   :  { %2255 = vmatprep.subr.bf16.mxu0 %v5236_v61 }
 0x10e   :  { %3047 = vrot.lane.b32.xlu1 %v3041_v48, %s5814_s15 }
 0x10f   :  { %2340 = vmatpush1.bf16.msra.mxu1 %v5245_v20 }
 0x110   :  { %2256 = vmatpush1.bf16.msra.mxu0 %v5235_v0  ;;  %2350 = vmatprep.subr.bf16.mxu1 %v5254_v28  ;;  %v3273_v28 = vcombine.high %v5996_v1, %v5996_v1 }
 0x111   :  { %2257 = vmatprep.subr.bf16.mxu0 %v5244_v17 }
 0x112   :  { %3168 = vrot.lane.b32.xlu1 %v3165_v57, %s5815_s18  ;;  %v3287_v12 = vrot.slane %v3273_v28, %v5861_v7  ;;  %v1129_v28 = vpop.permute.xlu0 %1128 }
 0x114   :  { %2258 = vmatpush1.bf16.msra.mxu0 %v5243_v19 }
 0x115   :  { %2268 = vmatprep.subr.bf16.mxu0 %v5252_v52 }
 0x116   :  { %3289 = vrot.lane.b32.xlu1 %v6003_v3, %s5816_s21 }
 0x11a   :  { %3293 = vrot.lane.b32.xlu1 %v3287_v12, %s5816_s21 }
 0x165   :  { %v151_v30 = vpop.f32.mrb[0].mxu1 }
 0x166   :  { %v5572_v9 = vpop.f32.mrb[1].mxu1 }
 0x167   :  { %v154_v31 = vpop.f32.mrb[2].mxu1 }
 0x168   :  { %v5573_v33 = vpop.f32.mrb[3].mxu1  ;;  %v3411_v31 = vcombine.high %v6013_v10, %v6013_v10 }
 0x16a   :  { %v110_v32 = vpop.f32.mrb[0].mxu0  ;;  %3414 = vrot.lane.b32.xlu1 %v3411_v31, %s5817_s24 }
 0x16b   :  { %v112_v34 = vpop.f32.mrb[1].mxu0 }
 0x16c   :  { %v114_v35 = vpop.f32.mrb[2].mxu0 }
 0x16d   :  { %v115_v36 = vpop.f32.mrb[3].mxu0  ;;  %v244_v38 = vpop.f32.mrb[4].mxu1 }
 0x16e   :  { %v245_v50 = vadd.f32 %v244_v38, %v151_v30  ;;  %v5578_v39 = vpop.f32.mrb[5].mxu1  ;;  %3535 = vrot.lane.b32.xlu1 %v6025_v16, %s5818_s25 }
 0x16f   :  { %v247_v40 = vpop.f32.mrb[6].mxu1 }
 0x170   :  { %v5579_v42 = vpop.f32.mrb[7].mxu1 }
 0x172   :  { %v203_v41 = vpop.f32.mrb[4].mxu0 }
 0x173   :  { %v204_v43 = vadd.f32 %v203_v41, %v110_v32  ;;  %v205_v44 = vpop.f32.mrb[5].mxu0 }
 0x174   :  { %v206_v45 = vadd.f32 %v205_v44, %v112_v34  ;;  %v207_v49 = vpop.f32.mrb[6].mxu0 }
 0x175   :  { %v208_v47 = vpop.f32.mrb[7].mxu0  ;;  %v366_v51 = vpop.f32.mrb[8].mxu1  ;;  %v3519_v49 = vcombine.high %v6018_v14, %v6018_v14 }
 0x176   :  { %v374_v54 = vadd.f32 %v366_v51, %v245_v50  ;;  %v5584_v60 = vpop.f32.mrb[9].mxu1 }
 0x177   :  { %v369_v55 = vpop.f32.mrb[10].mxu1  ;;  %v3533_v48 = vrot.slane %v3519_v49, %v5861_v7 }
 0x178   :  { %v5585_v61 = vpop.f32.mrb[11].mxu1 }
 0x179   :  { %3539 = vrot.lane.b32.xlu1 %v3533_v48, %s5818_s25 }
 0x17a   :  { %v325_v59 = vpop.f32.mrb[8].mxu0 }
 0x17b   :  { %v372_v62 = vadd.f32 %v325_v59, %v204_v43  ;;  %v327_v0 = vpop.f32.mrb[9].mxu0 }
 0x17c   :  { %v373_v58 = vadd.f32 %v327_v0, %v206_v45  ;;  %v329_v2 = vpop.f32.mrb[10].mxu0 }
 0x17d   :  { %v330_v5 = vpop.f32.mrb[11].mxu0  ;;  %v491_v8 = vpop.f32.mrb[12].mxu1 }
 0x17e   :  { %v499_v11 = vadd.f32 %v491_v8, %v374_v54  ;;  %v5590_v15 = vpop.f32.mrb[13].mxu1 }
 0x17f   :  { %v494_v17 = vpop.f32.mrb[14].mxu1 }
 0x180   :  { %v5591_v19 = vpop.f32.mrb[15].mxu1 }
 0x182   :  { %v450_v18 = vpop.f32.mrb[12].mxu0 }
 0x183   :  { %v497_v20 = vadd.f32 %v450_v18, %v372_v62  ;;  %v452_v63 = vpop.f32.mrb[13].mxu0 }
 0x184   :  { %v498_v21 = vadd.f32 %v452_v63, %v373_v58  ;;  %v454_v52 = vpop.f32.mrb[14].mxu0 }
 0x185   :  { %v455_v29 = vpop.f32.mrb[15].mxu0  ;;  %v616_v30 = vpop.f32.mrb[16].mxu1 }
 0x186   :  { %v624_v9 = vadd.f32 %v616_v30, %v499_v11  ;;  %v5596_v13 = vpop.f32.mrb[17].mxu1 }
 0x187   :  { %v619_v3 = vpop.f32.mrb[18].mxu1 }
 0x188   :  { %v5597_v33 = vpop.f32.mrb[19].mxu1 }
 0x18a   :  { %v575_v32 = vpop.f32.mrb[16].mxu0 }
 0x18b   :  { %v622_v34 = vadd.f32 %v575_v32, %v497_v20  ;;  %v577_v35 = vpop.f32.mrb[17].mxu0 }
 0x18c   :  { %v623_v36 = vadd.f32 %v577_v35, %v498_v21  ;;  %v579_v38 = vpop.f32.mrb[18].mxu0 }
 0x18d   :  { %v580_v1 = vpop.f32.mrb[19].mxu0  ;;  %v741_v50 = vpop.f32.mrb[20].mxu1 }
 0x18e   :  { %v749_v39 = vadd.f32 %v741_v50, %v624_v9  ;;  %v5602_v40 = vpop.f32.mrb[21].mxu1 }
 0x18f   :  { %v744_v41 = vpop.f32.mrb[22].mxu1 }
 0x190   :  { %v5603_v43 = vpop.f32.mrb[23].mxu1 }
 0x192   :  { %v700_v42 = vpop.f32.mrb[20].mxu0 }
 0x193   :  { %v747_v44 = vadd.f32 %v700_v42, %v622_v34  ;;  %v702_v10 = vpop.f32.mrb[21].mxu0 }
 0x194   :  { %v748_v56 = vadd.f32 %v702_v10, %v623_v36  ;;  %v704_v45 = vpop.f32.mrb[22].mxu0 }
 0x195   :  { %v705_v47 = vpop.f32.mrb[23].mxu0  ;;  %v866_v51 = vpop.f32.mrb[24].mxu1 }
 0x196   :  { %v874_v54 = vadd.f32 %v866_v51, %v749_v39  ;;  %v5608_v60 = vpop.f32.mrb[25].mxu1 }
 0x197   :  { %v869_v55 = vpop.f32.mrb[26].mxu1 }
 0x198   :  { %v5609_v57 = vpop.f32.mrb[27].mxu1 }
 0x19a   :  { %v825_v16 = vpop.f32.mrb[24].mxu0 }
 0x19b   :  { %v872_v59 = vadd.f32 %v825_v16, %v747_v44  ;;  %v827_v61 = vpop.f32.mrb[25].mxu0 }
 0x19c   :  { %v873_v62 = vadd.f32 %v827_v61, %v748_v56  ;;  %v829_v0 = vpop.f32.mrb[26].mxu0 }
 0x19d   :  { %v830_v58 = vpop.f32.mrb[27].mxu0  ;;  %v991_v2 = vpop.f32.mrb[28].mxu1 }
 0x19e   :  { %v999_v5 = vadd.f32 %v991_v2, %v874_v54  ;;  %v5614_v8 = vpop.f32.mrb[29].mxu1 }
 0x19f   :  { %v994_v14 = vpop.f32.mrb[30].mxu1 }
 0x1a0   :  { %v5615_v15 = vpop.f32.mrb[31].mxu1 }
 0x1a2   :  { %v950_v11 = vpop.f32.mrb[28].mxu0 }
 0x1a3   :  { %v997_v7 = vadd.f32 %v950_v11, %v872_v59  ;;  %v952_v17 = vpop.f32.mrb[29].mxu0 }
 0x1a4   :  { %v998_v18 = vadd.f32 %v952_v17, %v873_v62  ;;  %v954_v19 = vpop.f32.mrb[30].mxu0 }
 0x1a5   :  { %v955_v20 = vpop.f32.mrb[31].mxu0  ;;  %v1116_v63 = vpop.f32.mrb[32].mxu1 }
 0x1a6   :  { %v1124_v21 = vadd.f32 %v1116_v63, %v999_v5  ;;  %v5620_v52 = vpop.f32.mrb[33].mxu1 }
 0x1a7   :  { %v1119_v29 = vpop.f32.mrb[34].mxu1 }
 0x1a8   :  { %v6215_v12 = vadd.f32 %v1129_v28, %v1124_v21  ;;  %v5621_v9 = vpop.f32.mrb[35].mxu1 }
 0x1aa   :  { %v1075_v30 = vpop.f32.mrb[32].mxu0  ;;  %v6218_v31 = vmul.f32 0.70710677, %v6215_v12 }
 0x1ab   :  { %v1122_v13 = vadd.f32 %v1075_v30, %v997_v7  ;;  %v1077_v3 = vpop.f32.mrb[33].mxu0 }
 0x1ac   :  { %v1123_v32 = vadd.f32 %v1077_v3, %v998_v18  ;;  %v1079_v33 = vpop.f32.mrb[34].mxu0  ;;  %v1142_v36 = vand.u32 2147483647, %v6218_v31  ;;  %vm1199_vm13 = vcmp.lt.f32.partialorder %v6218_v31, 0.0  ;;  %v1221_v31 = vld [vmem:[#allocation2 + $0x30] sm:$0xff] }
 0x1ad   :  { %v6220_v34 = vadd.f32 %v1129_v28, %v1122_v13  ;;  %v1080_v35 = vpop.f32.mrb[35].mxu0 }
 0x1ae   :  { %v6223_v38 = vadd.f32 %v1129_v28, %v1123_v32  ;;  %v1145_v50 = vmul.f32 0.3275911, %v1142_v36  ;;  %v1181_v14 = vsub.f32 0.0, %v1142_v36 }
 0x1af   :  { %v6226_v1 = vmul.f32 0.70710677, %v6220_v34 }
 0x1b0   :  { %v6229_v39 = vmul.f32 0.70710677, %v6223_v38  ;;  %v1148_v41 = vadd.f32 1.0, %v1145_v50  ;;  %v1184_v19 = vmul.f32 %v1181_v14, %v1142_v36  ;;  %v1364_v14 = vld [vmem:[#allocation2 + $0x4a8] sm:$0xff] }
 0x1b1   :  { %v1140_v40 = vand.u32 2147483647, %v6226_v1  ;;  %vm1197_vm11 = vcmp.lt.f32.partialorder %v6226_v1, 0.0  ;;  %v1356_v1 = vld [vmem:[#allocation2 + $0x468] sm:$0xff] }
 0x1b2   :  { %v1141_v42 = vand.u32 2147483647, %v6229_v39  ;;  %5756 = vrcp.f32 %v1148_v41  ;;  %v1189_v29 = vmul.f32 1.442695, %v1184_v19  ;;  %vm1198_vm12 = vcmp.lt.f32.partialorder %v6229_v39, 0.0 }
 0x1b3   :  { %v1143_v43 = vmul.f32 0.3275911, %v1140_v40  ;;  %v1179_v45 = vsub.f32 0.0, %v1140_v40 }
 0x1b4   :  { %v1144_v44 = vmul.f32 0.3275911, %v1141_v42  ;;  %v1180_v47 = vsub.f32 0.0, %v1141_v42 }
 0x1b5   :  { %v1146_v10 = vadd.f32 1.0, %v1143_v43  ;;  %v1182_v60 = vmul.f32 %v1179_v45, %v1140_v40 }
 0x1b6   :  { %v1147_v56 = vadd.f32 1.0, %v1144_v44  ;;  %v1183_v57 = vmul.f32 %v1180_v47, %v1141_v42  ;;  %v1134_v47 = vmul.f32 0.5, %v6220_v34  ;;  %v1359_v34 = vld [vmem:[#allocation2 + $0x480] sm:$0xff] }
 0x1b7   :  { %5758 = vrcp.f32 %v1146_v10  ;;  %v1185_v0 = vmul.f32 1.442695, %v1182_v60 }
 0x1b8   :  { %5760 = vrcp.f32 %v1147_v56  ;;  %v1187_v8 = vmul.f32 1.442695, %v1183_v57  ;;  %v1351_v57 = vld [vmem:[#allocation2 + $0x440] sm:$0xff] }
 0x1b9   :  { %5762 = vpow2.f32 %v1185_v0  ;;  %v1352_v0 = vld [vmem:[#allocation2 + $0x448] sm:$0xff] }
 0x1ba   :  { %5764 = vpow2.f32 %v1187_v8  ;;  %v1360_v8 = vld [vmem:[#allocation2 + $0x488] sm:$0xff] }
 0x1bb   :  { %5766 = vpow2.f32 %v1189_v29  ;;  %v5269_v23 = vcombine.low %v1360_v8, %v1364_v14 }
 0x1bc   :  { %v5757_v49 = vpop.eup %5756 }
 0x1bd   :  { %v1154_v48 = vmul.f32 1.0614054, %v5757_v49 }
 0x1bf   :  { %v5119_v54 = vadd.f32 -1.4531521, %v1154_v48 }
 0x1c1   :  { %v5759_v51 = vpop.eup %5758  ;;  %v1160_v59 = vmul.f32 %v5757_v49, %v5119_v54  ;;  %v1135_v54 = vmul.f32 0.5, %v6223_v38  ;;  %v1363_v38 = vld [vmem:[#allocation2 + $0x4a0] sm:$0xff] }
 0x1c2   :  { %v5761_v55 = vpop.eup %5760  ;;  %v1152_v16 = vmul.f32 1.0614054, %v5759_v51  ;;  %v5267_v22 = vcombine.low %v1359_v34, %v1363_v38 }
 0x1c3   :  { %v1153_v61 = vmul.f32 1.0614054, %v5761_v55  ;;  %v1163_v2 = vadd.f32 1.4214138, %v1160_v59  ;;  %v5763_v33 = vpop.eup %5762 }
 0x1c4   :  { %v5117_v62 = vadd.f32 -1.4531521, %v1152_v16  ;;  %v5765_v50 = vpop.eup %5764 }
 0x1c5   :  { %v5118_v58 = vadd.f32 -1.4531521, %v1153_v61  ;;  %v1166_v17 = vmul.f32 %v5757_v49, %v1163_v2  ;;  %v5262_v2 = vcombine.high %v1352_v0, %v1356_v1 }
 0x1c6   :  { %v1158_v5 = vmul.f32 %v5759_v51, %v5117_v62  ;;  %v1355_v62 = vld [vmem:[#allocation2 + $0x460] sm:$0xff] }
 0x1c7   :  { %v1159_v11 = vmul.f32 %v5761_v55, %v5118_v58  ;;  %v5122_v52 = vadd.f32 -0.28449672, %v1166_v17  ;;  %v5260_v39 = vcombine.high %v1351_v57, %v1355_v62  ;;  %v5270_v17 = vcombine.high %v1360_v8, %v1364_v14 }
 0x1c8   :  { %v1161_v15 = vadd.f32 1.4214138, %v1158_v5 }
 0x1c9   :  { %v1162_v7 = vadd.f32 1.4214138, %v1159_v11  ;;  %v1172_v3 = vmul.f32 %v5757_v49, %v5122_v52  ;;  %v5259_v11 = vcombine.low %v1351_v57, %v1355_v62  ;;  %v1376_v52 = vld [vmem:[#allocation2 + $0x508] sm:$0x33]  ;;  %v1234_v57 = vld [vmem:[#allocation2 + $0x98] sm:$0xff] }
 0x1ca   :  { %v1164_v18 = vmul.f32 %v5759_v51, %v1161_v15  ;;  %v5261_v15 = vcombine.low %v1352_v0, %v1356_v1 }
 0x1cb   :  { %v1165_v20 = vmul.f32 %v5761_v55, %v1162_v7  ;;  %v1175_v42 = vadd.f32 0.2548296, %v1172_v3  ;;  %v5268_v7 = vcombine.high %v1359_v34, %v1363_v38  ;;  %v5286_v3 = vcombine.high %v1376_v52, %v1376_v52  ;;  %v1242_v34 = vld [vmem:[#allocation2 + $0xd8] sm:$0xff] }
 0x1cc   :  { %v5120_v63 = vadd.f32 -0.28449672, %v1164_v18  ;;  %v1367_v18 = vld [vmem:[#allocation2 + $0x4c0] sm:$0xff] }
 0x1cd   :  { %v5121_v21 = vadd.f32 -0.28449672, %v1165_v20  ;;  %v1178_v56 = vmul.f32 %v5757_v49, %v1175_v42  ;;  %v1371_v20 = vld [vmem:[#allocation2 + $0x4e0] sm:$0xff] }
 0x1ce   :  { %v1170_v28 = vmul.f32 %v5759_v51, %v5120_v63  ;;  %v1368_v63 = vld [vmem:[#allocation2 + $0x4c8] sm:$0xff]  ;;  %v5276_v24 = vcombine.high %v1367_v18, %v1371_v20 }
 0x1cf   :  { %v1171_v30 = vmul.f32 %v5761_v55, %v5121_v21  ;;  %v1372_v21 = vld [vmem:[#allocation2 + $0x4e8] sm:$0xff] }
 0x1d0   :  { %v1173_v9 = vadd.f32 0.2548296, %v1170_v28  ;;  %v5278_v25 = vcombine.high %v1368_v63, %v1372_v21  ;;  %v5275_v28 = vcombine.low %v1367_v18, %v1371_v20  ;;  %v5277_v29 = vcombine.low %v1368_v63, %v1372_v21  ;;  %v1257_v21 = vld [vmem:[#allocation2 + $0x150] sm:$0xff] }
 0x1d1   :  { %v1174_v13 = vadd.f32 0.2548296, %v1171_v30 }
 0x1d2   :  { %v1176_v32 = vmul.f32 %v5759_v51, %v1173_v9 }
 0x1d3   :  { %v1177_v35 = vmul.f32 %v5761_v55, %v1174_v13  ;;  %v5767_v55 = vpop.eup %5766 }
 0x1d4   :  { %v1191_v40 = vmul.f32 %v5763_v33, %v1176_v32  ;;  %v1193_v59 = vmul.f32 %v5767_v55, %v1178_v56  ;;  %v5285_v32 = vcombine.low %v1376_v52, %v1376_v52  ;;  %v1217_v33 = vld [vmem:[#allocation2 + $0x10] sm:$0xff] }
 0x1d5   :  { %v1192_v41 = vmul.f32 %v5765_v50, %v1177_v35  ;;  %v1218_v35 = vld [vmem:[#allocation2 + $0x18] sm:$0xff]  ;;  %v1229_v56 = vld [vmem:[#allocation2 + $0x70] sm:$0xff] }
 0x1d6   :  { %v1194_v43 = vsub.f32 1.0, %v1191_v40  ;;  %v1196_v5 = vsub.f32 1.0, %v1193_v59  ;;  %v1222_v50 = vld [vmem:[#allocation2 + $0x38] sm:$0xff]  ;;  %v1136_v40 = vmul.f32 0.5, %v6215_v12  ;;  %v5127_v12 = vcombine.low %v1217_v33, %v1221_v31  ;;  %v1233_v55 = vld [vmem:[#allocation2 + $0x90] sm:$0xff] }
 0x1d7   :  { %v1195_v36 = vsub.f32 1.0, %v1192_v41  ;;  %v1238_v59 = vld [vmem:[#allocation2 + $0xb8] sm:$0xff] }
 0x1d8   :  { %v1200_v44 = vsub.f32 0.0, %v1194_v43  ;;  %v1202_v19 = vsub.f32 0.0, %v1196_v5  ;;  %v5146_v1 = vcombine.high %v1234_v57, %v1238_v59  ;;  %v5145_v8 = vcombine.low %v1234_v57, %v1238_v59  ;;  %v1294_v57 = vld [vmem:[#allocation2 + $0x278] sm:$0xff] }
 0x1d9   :  { %v1201_v10 = vsub.f32 0.0, %v1195_v36 }
 0x1da   :  { %v1203_v45 = vsel %vm1197_vm11, %v1200_v44, %v1194_v43  ;;  %v2210_v43 = vsel %vm66_vm1, %v5285_v32, 0  ;;  %v5130_v44 = vcombine.high %v1218_v35, %v1222_v50 }
 0x1db   :  { %v1206_v48 = vadd.f32 1.0, %v1203_v45  ;;  %v1204_v51 = vsel %vm1198_vm12, %v1201_v10, %v1195_v36  ;;  %v5128_v36 = vcombine.high %v1217_v33, %v1221_v31  ;;  %v1225_v10 = vld [vmem:[#allocation2 + $0x50] sm:$0xff]  ;;  %v1226_v45 = vld [vmem:[#allocation2 + $0x58] sm:$0xff] }
 0x1dc   :  { %v1207_v60 = vadd.f32 1.0, %v1204_v51  ;;  %v5129_v51 = vcombine.low %v1218_v35, %v1222_v50  ;;  %v1273_v31 = vld [vmem:[#allocation2 + $0x1d0] sm:$0xff]  ;;  %v1274_v50 = vld [vmem:[#allocation2 + $0x1d8] sm:$0xff] }
 0x1dd   :  { %v1209_v16 = vmul.f32 %v1206_v48, %v1134_v47  ;;  %v1230_v47 = vld [vmem:[#allocation2 + $0x78] sm:$0xff]  ;;  %v1277_v35 = vld [vmem:[#allocation2 + $0x1f0] sm:$0xff] }
 0x1de   :  { %v1210_v61 = vmul.f32 %v1207_v60, %v1135_v54  ;;  %v5136_v54 = vcombine.high %v1225_v10, %v1229_v56  ;;  %v5138_v60 = vcombine.high %v1226_v45, %v1230_v47  ;;  %v5137_v62 = vcombine.low %v1226_v45, %v1230_v47  ;;  %v1286_v45 = vld [vmem:[#allocation2 + $0x238] sm:$0xff] }
 0x1df   :  { %v6239_v49 = vpack.c.bf16 %v1209_v16, %v1209_v16  ;;  %v1237_v16 = vld [vmem:[#allocation2 + $0xb0] sm:$0xff]  ;;  %v5183_v47 = vcombine.low %v1273_v31, %v1277_v35 }
 0x1e0   :  { %v6237_v58 = vpack.c.bf16 %v1210_v61, %v1210_v61  ;;  %v5135_v61 = vcombine.low %v1225_v10, %v1229_v56  ;;  %v5144_v0 = vcombine.high %v1233_v55, %v1237_v16  ;;  %v5143_v38 = vcombine.low %v1233_v55, %v1237_v16  ;;  %v1285_v10 = vld [vmem:[#allocation2 + $0x230] sm:$0xff]  ;;  %v1282_v56 = vld [vmem:[#allocation2 + $0x218] sm:$0xff] }
 0x1e1   :  { %v1293_v55 = vld [vmem:[#allocation2 + $0x270] sm:$0xff]  ;;  %v1290_v16 = vld [vmem:[#allocation2 + $0x258] sm:$0xff] }
 0x1e2   :  { %2259 = vmatprep.mubr.bf16.mxu0 %v6237_v58  ;;  %2341 = vmatprep.mubr.bf16.mxu1 %v6237_v58 }
 0x1e3   :  { %2260 = vmatmul.mubr.bf16.vlgmr.msra.gmra.mrb[36].mxu0 %v6239_v49  ;;  %2342 = vmatmul.mubr.bf16.vlgmr.msra.gmra.mrb[36].mxu1 %v6239_v49 }
 0x1e4   :  { %2269 = vmatpush1.bf16.msra.mxu0 %v5251_v26  ;;  %2351 = vmatpush1.bf16.msra.mxu1 %v5253_v27  ;;  %v1375_v26 = vld [vmem:[#allocation2 + $0x500] sm:$0x33]  ;;  %v1205_v27 = vsel %vm1199_vm13, %v1202_v19, %v1196_v5  ;;  %v1246_v5 = vld [vmem:[#allocation2 + $0xf8] sm:$0xff] }
 0x1e5   :  { %2270 = vmatprep.subr.bf16.mxu0 %v5260_v39  ;;  %2352 = vmatprep.subr.bf16.mxu1 %v5262_v2  ;;  %v5283_v30 = vcombine.low %v1375_v26, %v1375_v26  ;;  %v1208_v9 = vadd.f32 1.0, %v1205_v27  ;;  %v5284_v13 = vcombine.high %v1375_v26, %v1375_v26  ;;  %v1241_v39 = vld [vmem:[#allocation2 + $0xd0] sm:$0xff]  ;;  %v5153_v19 = vcombine.low %v1242_v34, %v1246_v5 }
 0x1e6   :  { %2300 = vmatprep.mubr.bf16.mxu0 %v5810_v6  ;;  %2382 = vmatprep.mubr.bf16.mxu1 %v5810_v6  ;;  %v1245_v2 = vld [vmem:[#allocation2 + $0xf0] sm:$0xff] }
 0x1e7   :  { %v2204_v41 = vsel %vm66_vm1, %v5283_v30, 0  ;;  %v1211_v42 = vmul.f32 %v1208_v9, %v1136_v40  ;;  %v5152_v14 = vcombine.high %v1241_v39, %v1245_v2  ;;  %v5151_v18 = vcombine.low %v1241_v39, %v1245_v2  ;;  %v1266_v30 = vld [vmem:[#allocation2 + $0x198] sm:$0xff]  ;;  %v1301_v39 = vld [vmem:[#allocation2 + $0x2b0] sm:$0xff] }
 0x1e8   :  { %2271 = vmatpush1.bf16.msra.mxu0 %v5259_v11  ;;  %2353 = vmatpush1.bf16.msra.mxu1 %v5261_v15  ;;  %v5154_v11 = vcombine.high %v1242_v34, %v1246_v5  ;;  %v1249_v15 = vld [vmem:[#allocation2 + $0x110] sm:$0xff]  ;;  %v1270_v9 = vld [vmem:[#allocation2 + $0x1b8] sm:$0xff] }
 0x1e9   :  { %2272 = vmatprep.subr.bf16.mxu0 %v5268_v7  ;;  %2354 = vmatprep.subr.bf16.mxu1 %v5270_v17  ;;  %v6259_v48 = vpack.c.bf16 %v1211_v42, %v1211_v42  ;;  %v1253_v7 = vld [vmem:[#allocation2 + $0x130] sm:$0xff]  ;;  %v1254_v17 = vld [vmem:[#allocation2 + $0x138] sm:$0xff]  ;;  %v5178_v33 = vcombine.high %v1266_v30, %v1270_v9  ;;  %v5177_v42 = vcombine.low %v1266_v30, %v1270_v9 }
 0x1ea   :  { %v5160_v20 = vcombine.high %v1249_v15, %v1253_v7  ;;  %v1278_v40 = vld [vmem:[#allocation2 + $0x1f8] sm:$0xff] }
 0x1eb   :  { %v1298_v2 = vld [vmem:[#allocation2 + $0x298] sm:$0xff] }
 0x1ec   :  { %2273 = vmatpush1.bf16.msra.mxu0 %v5267_v22  ;;  %2355 = vmatpush1.bf16.msra.mxu1 %v5269_v23  ;;  %v1261_v22 = vld [vmem:[#allocation2 + $0x170] sm:$0xff]  ;;  %v1258_v23 = vld [vmem:[#allocation2 + $0x158] sm:$0xff] }
 0x1ed   :  { %2274 = vmatprep.subr.bf16.mxu0 %v5276_v24  ;;  %2356 = vmatprep.subr.bf16.mxu1 %v5278_v25  ;;  %v1262_v24 = vld [vmem:[#allocation2 + $0x178] sm:$0xff]  ;;  %v5159_v25 = vcombine.low %v1249_v15, %v1253_v7  ;;  %v5168_v27 = vcombine.high %v1257_v21, %v1261_v22  ;;  %v1309_v15 = vld [vmem:[#allocation2 + $0x2f0] sm:$0xff] }
 0x1ee   :  { %v5170_v52 = vcombine.high %v1258_v23, %v1262_v24  ;;  %v1302_v34 = vld [vmem:[#allocation2 + $0x2b8] sm:$0xff] }
 0x1ef   :  { %v1306_v7 = vld [vmem:[#allocation2 + $0x2d8] sm:$0xff] }
 0x1f0   :  { %2275 = vmatpush1.bf16.msra.mxu0 %v5275_v28  ;;  %2357 = vmatpush1.bf16.msra.mxu1 %v5277_v29  ;;  %v1265_v28 = vld [vmem:[#allocation2 + $0x190] sm:$0xff]  ;;  %v1326_v30 = vld [vmem:[#allocation2 + $0x378] sm:$0xff] }
 0x1f1   :  { %5291 = vmatprep.subr.msk.bf16.mxu0 %vm66_vm1, %v5284_v13  ;;  %5293 = vmatprep.subr.msk.bf16.mxu1 %vm66_vm1, %v5286_v3  ;;  %v1269_v29 = vld [vmem:[#allocation2 + $0x1b0] sm:$0xff]  ;;  %v5167_v13 = vcombine.low %v1257_v21, %v1261_v22  ;;  %v5169_v3 = vcombine.low %v1258_v23, %v1262_v24  ;;  %v1314_v22 = vld [vmem:[#allocation2 + $0x318] sm:$0xff] }
 0x1f2   :  { %v5176_v32 = vcombine.high %v1265_v28, %v1269_v29  ;;  %v1317_v21 = vld [vmem:[#allocation2 + $0x330] sm:$0xff]  ;;  %v1318_v23 = vld [vmem:[#allocation2 + $0x338] sm:$0xff] }
 0x1f4   :  { %2277 = vmatpush1.bf16.msra.mxu0 %v2204_v41  ;;  %2359 = vmatpush1.bf16.msra.mxu1 %v2210_v43  ;;  %v5175_v41 = vcombine.low %v1265_v28, %v1269_v29  ;;  %v5184_v43 = vcombine.high %v1273_v31, %v1277_v35  ;;  %v1325_v28 = vld [vmem:[#allocation2 + $0x370] sm:$0xff]  ;;  %v1322_v29 = vld [vmem:[#allocation2 + $0x358] sm:$0xff] }
 0x1f5   :  { %2391 = vmatprep.subr.bf16.mxu0 %v5128_v36  ;;  %2473 = vmatprep.subr.bf16.mxu1 %v5130_v44  ;;  %v5186_v36 = vcombine.high %v1274_v50, %v1278_v40  ;;  %v1281_v44 = vld [vmem:[#allocation2 + $0x210] sm:$0xff]  ;;  %v1330_v35 = vld [vmem:[#allocation2 + $0x398] sm:$0xff] }
 0x1f6   :  { %v5191_v59 = vcombine.low %v1281_v44, %v1285_v10  ;;  %v1333_v31 = vld [vmem:[#allocation2 + $0x3b0] sm:$0xff] }
 0x1f7   :  { %5292 = vmatmul.mubr.msk.bf16.vlgmr.msra.gmra.mrb[36].mxu0 %vm2199_vm14, %v6259_v48  ;;  %5294 = vmatmul.mubr.msk.bf16.vlgmr.msra.gmra.mrb[36].mxu1 %vm2199_vm14, %v6259_v48 }
 0x1f8   :  { %2392 = vmatpush1.bf16.msra.mxu0 %v5127_v12  ;;  %2423 = vmatprep.mubr.bf16.mxu0 %v6237_v58  ;;  %v5185_v12 = vcombine.low %v1274_v50, %v1278_v40  ;;  %v1334_v50 = vld [vmem:[#allocation2 + $0x3b8] sm:$0xff] }
 0x1f9   :  { %2474 = vmatpush1.bf16.msra.mxu1 %v5129_v51  ;;  %2505 = vmatprep.mubr.bf16.mxu1 %v6237_v58  ;;  %v1250_v58 = vld [vmem:[#allocation2 + $0x118] sm:$0xff]  ;;  %v5192_v51 = vcombine.high %v1281_v44, %v1285_v10  ;;  %v1341_v44 = vld [vmem:[#allocation2 + $0x3f0] sm:$0xff] }
 0x1fa   :  { %2393 = vmatprep.subr.bf16.mxu0 %v5136_v54  ;;  %2475 = vmatprep.subr.bf16.mxu1 %v5138_v60  ;;  %v5162_v63 = vcombine.high %v1250_v58, %v1254_v17  ;;  %v5161_v26 = vcombine.low %v1250_v58, %v1254_v17  ;;  %v5194_v54 = vcombine.high %v1282_v56, %v1286_v45  ;;  %v1289_v60 = vld [vmem:[#allocation2 + $0x250] sm:$0xff]  ;;  %v1310_v58 = vld [vmem:[#allocation2 + $0x2f8] sm:$0xff] }
 0x1fb   :  { %v5199_v5 = vcombine.low %v1289_v60, %v1293_v55  ;;  %v1338_v10 = vld [vmem:[#allocation2 + $0x3d8] sm:$0xff] }
 0x1fc   :  { %2394 = vmatpush1.bf16.msra.mxu0 %v5135_v61  ;;  %v5193_v61 = vcombine.low %v1282_v56, %v1286_v45  ;;  %v1342_v56 = vld [vmem:[#allocation2 + $0x3f8] sm:$0xff] }
 0x1fd   :  { %2476 = vmatpush1.bf16.msra.mxu1 %v5137_v62  ;;  %2395 = vmatprep.subr.bf16.mxu0 %v5144_v0  ;;  %v5200_v62 = vcombine.high %v1289_v60, %v1293_v55  ;;  %v5202_v0 = vcombine.high %v1290_v16, %v1294_v57  ;;  %v1349_v60 = vld [vmem:[#allocation2 + $0x430] sm:$0xff]  ;;  %v1346_v55 = vld [vmem:[#allocation2 + $0x418] sm:$0xff] }
 0x1fe   :  { %2477 = vmatprep.subr.bf16.mxu1 %v5146_v1  ;;  %v1297_v1 = vld [vmem:[#allocation2 + $0x290] sm:$0xff] }
 0x1ff   :  { %v5207_v17 = vcombine.low %v1297_v1, %v1301_v39 }
 0x200   :  { %2396 = vmatpush1.bf16.msra.mxu0 %v5143_v38  ;;  %v5201_v38 = vcombine.low %v1290_v16, %v1294_v57  ;;  %v1350_v16 = vld [vmem:[#allocation2 + $0x438] sm:$0xff] }
 0x201   :  { %2478 = vmatpush1.bf16.msra.mxu1 %v5145_v8  ;;  %2397 = vmatprep.subr.bf16.mxu0 %v5152_v14  ;;  %v5208_v8 = vcombine.high %v1297_v1, %v1301_v39  ;;  %v5210_v14 = vcombine.high %v1298_v2, %v1302_v34  ;;  %v1357_v1 = vld [vmem:[#allocation2 + $0x470] sm:$0xff]  ;;  %v1354_v39 = vld [vmem:[#allocation2 + $0x458] sm:$0xff] }
 0x202   :  { %2479 = vmatprep.subr.bf16.mxu1 %v5154_v11  ;;  %v1305_v11 = vld [vmem:[#allocation2 + $0x2d0] sm:$0xff] }
 0x203   :  { %v5215_v24 = vcombine.low %v1305_v11, %v1309_v15 }
 0x204   :  { %2398 = vmatpush1.bf16.msra.mxu0 %v5151_v18  ;;  %v5209_v18 = vcombine.low %v1298_v2, %v1302_v34  ;;  %v1358_v2 = vld [vmem:[#allocation2 + $0x478] sm:$0xff] }
 0x205   :  { %2480 = vmatpush1.bf16.msra.mxu1 %v5153_v19  ;;  %2399 = vmatprep.subr.bf16.mxu0 %v5160_v20  ;;  %v5216_v19 = vcombine.high %v1305_v11, %v1309_v15  ;;  %v5218_v20 = vcombine.high %v1306_v7, %v1310_v58  ;;  %v1365_v11 = vld [vmem:[#allocation2 + $0x4b0] sm:$0xff]  ;;  %v1362_v15 = vld [vmem:[#allocation2 + $0x498] sm:$0xff] }
 0x206   :  { %2481 = vmatprep.subr.bf16.mxu1 %v5162_v63  ;;  %v1313_v63 = vld [vmem:[#allocation2 + $0x310] sm:$0xff] }
 0x207   :  { %v5223_v9 = vcombine.low %v1313_v63, %v1317_v21 }
 0x208   :  { %2400 = vmatpush1.bf16.msra.mxu0 %v5159_v25  ;;  %v5217_v25 = vcombine.low %v1306_v7, %v1310_v58  ;;  %v1366_v7 = vld [vmem:[#allocation2 + $0x4b8] sm:$0xff] }
 0x209   :  { %2482 = vmatpush1.bf16.msra.mxu1 %v5161_v26  ;;  %2401 = vmatprep.subr.bf16.mxu0 %v5168_v27  ;;  %v5224_v26 = vcombine.high %v1313_v63, %v1317_v21  ;;  %v5226_v27 = vcombine.high %v1314_v22, %v1318_v23  ;;  %v1373_v63 = vld [vmem:[#allocation2 + $0x4f0] sm:$0xff]  ;;  %v1370_v21 = vld [vmem:[#allocation2 + $0x4d8] sm:$0xff] }
 0x20a   :  { %2483 = vmatprep.subr.bf16.mxu1 %v5170_v52  ;;  %v1321_v52 = vld [vmem:[#allocation2 + $0x350] sm:$0xff] }
 0x20b   :  { %v5231_v40 = vcombine.low %v1321_v52, %v1325_v28 }
 0x20c   :  { %2402 = vmatpush1.bf16.msra.mxu0 %v5167_v13  ;;  %v5225_v13 = vcombine.low %v1314_v22, %v1318_v23  ;;  %v1374_v22 = vld [vmem:[#allocation2 + $0x4f8] sm:$0xff] }
 0x20d   :  { %2484 = vmatpush1.bf16.msra.mxu1 %v5169_v3  ;;  %2403 = vmatprep.subr.bf16.mxu0 %v5176_v32  ;;  %v5232_v3 = vcombine.high %v1321_v52, %v1325_v28  ;;  %v5234_v32 = vcombine.high %v1322_v29, %v1326_v30  ;;  %v1378_v52 = vld [vmem:[#allocation2 + $0x518] sm:$0x33] }
 0x20e   :  { %2485 = vmatprep.subr.bf16.mxu1 %v5178_v33  ;;  %v1329_v33 = vld [vmem:[#allocation2 + $0x390] sm:$0xff] }
 0x20f   :  { %v5239_v45 = vcombine.low %v1329_v33, %v1333_v31 }
 0x210   :  { %2404 = vmatpush1.bf16.msra.mxu0 %v5175_v41  ;;  %v5233_v41 = vcombine.low %v1322_v29, %v1326_v30  ;;  %v5281_v29 = vcombine.low %v1370_v21, %v1374_v22 }
 0x211   :  { %2486 = vmatpush1.bf16.msra.mxu1 %v5177_v42  ;;  %2405 = vmatprep.subr.bf16.mxu0 %v5184_v43  ;;  %v5240_v42 = vcombine.high %v1329_v33, %v1333_v31  ;;  %v5242_v43 = vcombine.high %v1330_v35, %v1334_v50  ;;  %v2589_v33 = vpop.permute.xlu0 %2588 }
 0x212   :  { %2487 = vmatprep.subr.bf16.mxu1 %v5186_v36  ;;  %v1337_v36 = vld [vmem:[#allocation2 + $0x3d0] sm:$0xff] }
 0x213   :  { %v5247_v57 = vcombine.low %v1337_v36, %v1341_v44 }
 0x214   :  { %2406 = vmatpush1.bf16.msra.mxu0 %v5183_v47  ;;  %v5241_v47 = vcombine.low %v1330_v35, %v1334_v50 }
 0x215   :  { %2488 = vmatpush1.bf16.msra.mxu1 %v5185_v12  ;;  %2407 = vmatprep.subr.bf16.mxu0 %v5192_v51  ;;  %v5248_v12 = vcombine.high %v1337_v36, %v1341_v44  ;;  %v5250_v51 = vcombine.high %v1338_v10, %v1342_v56 }
 0x216   :  { %2489 = vmatprep.subr.bf16.mxu1 %v5194_v54  ;;  %v1345_v54 = vld [vmem:[#allocation2 + $0x410] sm:$0xff] }
 0x217   :  { %v5255_v34 = vcombine.low %v1345_v54, %v1349_v60 }
 0x218   :  { %2408 = vmatpush1.bf16.msra.mxu0 %v5191_v59  ;;  %v5249_v59 = vcombine.low %v1338_v10, %v1342_v56  ;;  %v5300_v10 = vld [vmem:[%s6535_s1 + $0x4] sm:$0xf] }
 0x219   :  { %2490 = vmatpush1.bf16.msra.mxu1 %v5193_v61  ;;  %2409 = vmatprep.subr.bf16.mxu0 %v5200_v62  ;;  %v5256_v61 = vcombine.high %v1345_v54, %v1349_v60  ;;  %v5258_v62 = vcombine.high %v1346_v55, %v1350_v16 }
 0x21a   :  { %2491 = vmatprep.subr.bf16.mxu1 %v5202_v0  ;;  %v1353_v0 = vld [vmem:[#allocation2 + $0x450] sm:$0xff] }
 0x21b   :  { %v5263_v58 = vcombine.low %v1353_v0, %v1357_v1 }
 0x21c   :  { %2410 = vmatpush1.bf16.msra.mxu0 %v5199_v5  ;;  %v5257_v5 = vcombine.low %v1346_v55, %v1350_v16 }
 0x21d   :  { %2492 = vmatpush1.bf16.msra.mxu1 %v5201_v38  ;;  %2411 = vmatprep.subr.bf16.mxu0 %v5208_v8  ;;  %v5264_v38 = vcombine.high %v1353_v0, %v1357_v1  ;;  %v5266_v8 = vcombine.high %v1354_v39, %v1358_v2 }
 0x21e   :  { %2493 = vmatprep.subr.bf16.mxu1 %v5210_v14  ;;  %v1361_v14 = vld [vmem:[#allocation2 + $0x490] sm:$0xff] }
 0x21f   :  { %v5271_v23 = vcombine.low %v1361_v14, %v1365_v11 }
 0x220   :  { %2412 = vmatpush1.bf16.msra.mxu0 %v5207_v17  ;;  %v5265_v17 = vcombine.low %v1354_v39, %v1358_v2 }
 0x221   :  { %2494 = vmatpush1.bf16.msra.mxu1 %v5209_v18  ;;  %2413 = vmatprep.subr.bf16.mxu0 %v5216_v19  ;;  %v5272_v18 = vcombine.high %v1361_v14, %v1365_v11  ;;  %v5274_v19 = vcombine.high %v1362_v15, %v1366_v7 }
 0x222   :  { %2495 = vmatprep.subr.bf16.mxu1 %v5218_v20  ;;  %v1369_v20 = vld [vmem:[#allocation2 + $0x4d0] sm:$0xff] }
 0x223   :  { %v5279_v28 = vcombine.low %v1369_v20, %v1373_v63 }
 0x224   :  { %2414 = vmatpush1.bf16.msra.mxu0 %v5215_v24  ;;  %v2585_v24 = vpop.permute.xlu1 %2584 }
 0x225   :  { %2496 = vmatpush1.bf16.msra.mxu1 %v5217_v25  ;;  %2415 = vmatprep.subr.bf16.mxu0 %v5224_v26  ;;  %v5280_v25 = vcombine.high %v1369_v20, %v1373_v63  ;;  %v5282_v26 = vcombine.high %v1370_v21, %v1374_v22 }
 0x226   :  { %2497 = vmatprep.subr.bf16.mxu1 %v5226_v27  ;;  %v1377_v27 = vld [vmem:[#allocation2 + $0x510] sm:$0x33] }
 0x227   :  { %v5288_v30 = vcombine.high %v1377_v27, %v1377_v27 }
 0x228   :  { %2416 = vmatpush1.bf16.msra.mxu0 %v5223_v9  ;;  %v5287_v9 = vcombine.low %v1377_v27, %v1377_v27 }
 0x229   :  { %2498 = vmatpush1.bf16.msra.mxu1 %v5225_v13  ;;  %2417 = vmatprep.subr.bf16.mxu0 %v5232_v3  ;;  %v5290_v13 = vcombine.high %v1378_v52, %v1378_v52  ;;  %v5289_v3 = vcombine.low %v1378_v52, %v1378_v52 }
 0x22a   :  { %2499 = vmatprep.subr.bf16.mxu1 %v5234_v32  ;;  %v2587_v32 = vpop.permute.xlu1 %2586  ;;  %v2216_v31 = vsel %vm66_vm1, %v5287_v9, 0 }
 0x22b   :  { %v2590_v35 = vsel %vm59_vm2, %v2585_v24, %v2587_v32  ;;  %v2591_v50 = vsel %vm59_vm2, %v2587_v32, %v2589_v33 }
 0x22c   :  { %2418 = vmatpush1.bf16.msra.mxu0 %v5231_v40  ;;  %v2222_v40 = vsel %vm66_vm1, %v5289_v3, 0 }
 0x22d   :  { %2500 = vmatpush1.bf16.msra.mxu1 %v5233_v41  ;;  %2419 = vmatprep.subr.bf16.mxu0 %v5240_v42  ;;  %v2596_v41 = vsel %vm66_vm1, %v2590_v35, 0  ;;  %v2602_v42 = vsel %vm66_vm1, %v2589_v33, 0 }
 0x22e   :  { %2501 = vmatprep.subr.bf16.mxu1 %v5242_v43  ;;  %v2800_v43 = vpop.permute.xlu0 %2799  ;;  %v2798_v36 = vpop.permute.xlu1 %2797 }
 0x230   :  { %2420 = vmatpush1.bf16.msra.mxu0 %v5239_v45  ;;  %v2695_v45 = vsel %vm66_vm1, %v5958_v53, 0  ;;  %v2563_v53 = vld [vmem:[%s6535_s1] sm:$0xf] }
 0x231   :  { %2502 = vmatpush1.bf16.msra.mxu1 %v5241_v47  ;;  %2421 = vmatprep.subr.bf16.mxu0 %v5248_v12 }
 0x232   :  { %2503 = vmatprep.subr.bf16.mxu1 %v5250_v51  ;;  %v2921_v44 = vpop.permute.xlu0 %2920  ;;  %v2802_v56 = vpop.permute.xlu1 %2801  ;;  %v2803_v51 = vsel %vm276_vm4, %v2798_v36, %v2800_v43 }
 0x233   :  { %v2804_v47 = vsel %vm276_vm4, %v2800_v43, %v2802_v56  ;;  %v2815_v54 = vsel %vm66_vm1, %v2802_v56, 0 }
 0x234   :  { %2422 = vmatpush1.bf16.msra.mxu0 %v5247_v57 }
 0x235   :  { %2504 = vmatpush1.bf16.msra.mxu1 %v5249_v59  ;;  %2432 = vmatprep.subr.bf16.mxu0 %v5256_v61  ;;  %v5307_v59 = vld [vmem:[%s6535_s1 + $0x8] sm:$0xf] }
 0x236   :  { %2514 = vmatprep.subr.bf16.mxu1 %v5258_v62  ;;  %v2925_v12 = vpop.permute.xlu0 %2924 }
 0x237   :  { %2424 = vmatmul.mubr.bf16.vlgmr.msra.gmra.mrb[40].mxu0 %v6239_v49  ;;  %v2938_v0 = vsel %vm66_vm1, %v2925_v12, 0 }
 0x238   :  { %2506 = vmatmul.mubr.bf16.vlgmr.msra.gmra.mrb[40].mxu1 %v6239_v49  ;;  %2433 = vmatpush1.bf16.msra.mxu0 %v5255_v34  ;;  %v5273_v49 = vcombine.low %v1362_v15, %v1366_v7 }
 0x239   :  { %2515 = vmatpush1.bf16.msra.mxu1 %v5257_v5  ;;  %2434 = vmatprep.subr.bf16.mxu0 %v5264_v38  ;;  %v5312_v38 = vld [vmem:[%s6535_s1 + $0xc] sm:$0xf] }
 0x23a   :  { %2516 = vmatprep.subr.bf16.mxu1 %v5266_v8  ;;  %2464 = vmatprep.mubr.bf16.mxu0 %v5810_v6  ;;  %v3046_v16 = vpop.permute.xlu0 %3045 }
 0x23b   :  { %2546 = vmatprep.mubr.bf16.mxu1 %v5810_v6 }
 0x23c   :  { %2435 = vmatpush1.bf16.msra.mxu0 %v5263_v58 }
 0x23d   :  { %2517 = vmatpush1.bf16.msra.mxu1 %v5265_v17  ;;  %2436 = vmatprep.subr.bf16.mxu0 %v5272_v18  ;;  %v5317_v17 = vld [vmem:[%s6535_s1 + $0x10] sm:$0xf] }
 0x23e   :  { %2518 = vmatprep.subr.bf16.mxu1 %v5274_v19  ;;  %v3167_v1 = vpop.permute.xlu0 %3166 }
 0x240   :  { %2437 = vmatpush1.bf16.msra.mxu0 %v5271_v23 }
 0x241   :  { %2519 = vmatpush1.bf16.msra.mxu1 %v5273_v49  ;;  %2438 = vmatprep.subr.bf16.mxu0 %v5280_v25  ;;  %v5322_v49 = vld [vmem:[%s6535_s1 + $0x14] sm:$0xf] }
 0x242   :  { %2520 = vmatprep.subr.bf16.mxu1 %v5282_v26  ;;  %v3171_v5 = vpop.permute.xlu0 %3170 }
 0x243   :  { %v3184_v20 = vsel %vm66_vm1, %v3171_v5, 0 }
 0x244   :  { %2439 = vmatpush1.bf16.msra.mxu0 %v5279_v28 }
 0x245   :  { %2521 = vmatpush1.bf16.msra.mxu1 %v5281_v29  ;;  %5295 = vmatprep.subr.msk.bf16.mxu0 %vm66_vm1, %v5288_v30  ;;  %v5327_v29 = vld [vmem:[%s6535_s1 + $0x18] sm:$0xf] }
 0x246   :  { %5297 = vmatprep.subr.msk.bf16.mxu1 %vm66_vm1, %v5290_v13  ;;  %v3292_v7 = vpop.permute.xlu0 %3291 }
 0x248   :  { %2441 = vmatpush1.bf16.msra.mxu0 %v2216_v31  ;;  %v5332_v31 = vld [vmem:[%s6535_s1 + $0x1c] sm:$0xf] }
 0x249   :  { %2523 = vmatpush1.bf16.msra.mxu1 %v2222_v40  ;;  %5301 = vmatprep.subr.msk.bf16.mxu0 %vm66_vm1, %v2591_v50  ;;  %v5337_v40 = vld [vmem:[%s6535_s1 + $0x20] sm:$0xf] }
 0x24a   :  { %5622 = vmatprep.subr.bf16.mxu1 %v5808_v4  ;;  %v3413_v21 = vpop.permute.xlu0 %3412 }
 0x24b   :  { %5296 = vmatmul.mubr.msk.bf16.vlgmr.msra.gmra.mrb[40].mxu0 %vm2199_vm14, %v6259_v48 }
 0x24c   :  { %5298 = vmatmul.mubr.msk.bf16.vlgmr.msra.gmra.mrb[40].mxu1 %vm2199_vm14, %v6259_v48  ;;  %2605 = vmatpush1.bf16.msra.mxu0 %v2596_v41  ;;  %v2689_v48 = vsel %vm66_vm1, %v6156_v37, 0  ;;  %v2809_v37 = vsel %vm66_vm1, %v2803_v51, 0 }
 0x24d   :  { %5623 = vmatpush3.bf16.msra.mxu1 %v2602_v42  ;;  %2636 = vmatprep.mubr.bf16.mxu0 %v5810_v6 }
 0x24e   :  { %5624 = vmatprep.mubr.msk.bf16.mxu1 %vm5809_vm0, %v5808_v4  ;;  %5304 = vmatprep.subr.msk.bf16.mxu0 %vm66_vm1, %v6162_v46  ;;  %v2923_v46 = vpop.permute.xlu1 %2922  ;;  %v3417_v25 = vpop.permute.xlu0 %3416 }
 0x24f   :  { %5628 = vmatprep.subr.bf16.mxu1 %v5808_v4  ;;  %v2927_v55 = vsel %vm401_vm5, %v2923_v46, %v2925_v12  ;;  %v2926_v57 = vsel %vm401_vm5, %v2921_v44, %v2923_v46  ;;  %v3430_v13 = vsel %vm66_vm1, %v3417_v25, 0  ;;  %v3734_v12 = vld [vmem:[#allocation2 + $0x28] sm:$0xff] }
 0x250   :  { %v2932_v62 = vsel %vm66_vm1, %v2926_v57, 0 }
 0x252   :  { %v3044_v60 = vpop.permute.xlu1 %3043  ;;  %v3538_v3 = vpop.permute.xlu0 %3537 }
 0x253   :  { %5302 = vmatmul.mubr.msk.bf16.vlgmr.msra.gmra.mrb[44].mxu0 %vm62_vm3, %v5300_v10  ;;  %v3049_v34 = vsel %vm526_vm6, %v3044_v60, %v3046_v16  ;;  %v3741_v60 = vld [vmem:[#allocation2 + $0x60] sm:$0xff] }
 0x254   :  { %5625 = vmatmul.mubr.msk.bf16.vlgmr.msra.gmra.mrb[44].mxu1 %vm62_vm3, %v5300_v10  ;;  %2698 = vmatpush1.bf16.msra.mxu0 %v2689_v48  ;;  %v3055_v8 = vsel %vm66_vm1, %v3049_v34, 0  ;;  %v3729_v48 = vld [vmem:[#allocation2] sm:$0xff]  ;;  %v3750_v34 = vld [vmem:[#allocation2 + $0xa8] sm:$0xff] }
 0x255   :  { %5629 = vmatpush3.bf16.msra.mxu1 %v2695_v45  ;;  %2729 = vmatprep.mubr.bf16.mxu0 %v5810_v6  ;;  %v3733_v45 = vld [vmem:[#allocation2 + $0x20] sm:$0xff] }
 0x256   :  { %5630 = vmatprep.mubr.msk.bf16.mxu1 %vm5809_vm0, %v5808_v4  ;;  %5309 = vmatprep.subr.msk.bf16.mxu0 %vm66_vm1, %v2804_v47  ;;  %v3048_v61 = vpop.permute.xlu1 %3047  ;;  %v3730_v47 = vld [vmem:[#allocation2 + $0x8] sm:$0xff]  ;;  %v5349_v46 = vcombine.high %v3729_v48, %v3733_v45  ;;  %v5348_v51 = vcombine.low %v3729_v48, %v3733_v45  ;;  %v3793_v45 = vld [vmem:[#allocation2 + $0x200] sm:$0xff] }
 0x257   :  { %5634 = vmatprep.subr.bf16.mxu1 %v5808_v4  ;;  %v3050_v39 = vsel %vm526_vm6, %v3046_v16, %v3048_v61  ;;  %v3061_v14 = vsel %vm66_vm1, %v3048_v61, 0 }
 0x25a   :  { %v3169_v2 = vpop.permute.xlu1 %3168 }
 0x25b   :  { %5305 = vmatmul.mubr.msk.bf16.vlgmr.msra.gmra.mrb[48].mxu0 %vm62_vm3, %v2563_v53  ;;  %v3173_v15 = vsel %vm651_vm7, %v3169_v2, %v3171_v5  ;;  %v3172_v58 = vsel %vm651_vm7, %v3167_v1, %v3169_v2  ;;  %v3749_v1 = vld [vmem:[#allocation2 + $0xa0] sm:$0xff] }
 0x25c   :  { %5631 = vmatmul.mubr.msk.bf16.vlgmr.msra.gmra.mrb[48].mxu1 %vm62_vm3, %v2563_v53  ;;  %2818 = vmatpush1.bf16.msra.mxu0 %v2809_v37  ;;  %v3178_v19 = vsel %vm66_vm1, %v3172_v58, 0  ;;  %v5350_v53 = vcombine.low %v3730_v47, %v3734_v12  ;;  %v5351_v37 = vcombine.high %v3730_v47, %v3734_v12  ;;  %v3758_v58 = vld [vmem:[#allocation2 + $0xe8] sm:$0xff]  ;;  %v3797_v47 = vld [vmem:[#allocation2 + $0x220] sm:$0xff] }
 0x25d   :  { %5635 = vmatpush3.bf16.msra.mxu1 %v2815_v54  ;;  %2849 = vmatprep.mubr.bf16.mxu0 %v5810_v6  ;;  %v3737_v54 = vld [vmem:[#allocation2 + $0x40] sm:$0xff]  ;;  %v5413_v12 = vcombine.high %v3793_v45, %v3797_v47 }
 0x25e   :  { %5636 = vmatprep.mubr.msk.bf16.mxu1 %vm5809_vm0, %v5808_v4  ;;  %5314 = vmatprep.subr.msk.bf16.mxu0 %vm66_vm1, %v2927_v55  ;;  %v3290_v11 = vpop.permute.xlu1 %3289  ;;  %v3738_v55 = vld [vmem:[#allocation2 + $0x48] sm:$0xff]  ;;  %v5356_v16 = vcombine.low %v3737_v54, %v3741_v60  ;;  %v5357_v57 = vcombine.high %v3737_v54, %v3741_v60  ;;  %v3801_v60 = vld [vmem:[#allocation2 + $0x240] sm:$0xff] }
 0x25f   :  { %5640 = vmatprep.subr.bf16.mxu1 %v5808_v4  ;;  %v3295_v23 = vsel %vm776_vm8, %v3290_v11, %v3292_v7  ;;  %v3757_v11 = vld [vmem:[#allocation2 + $0xe0] sm:$0xff] }
 0x260   :  { %v3301_v24 = vsel %vm66_vm1, %v3295_v23, 0  ;;  %v3766_v23 = vld [vmem:[#allocation2 + $0x128] sm:$0xff] }
 0x262   :  { %v3294_v18 = vpop.permute.xlu1 %3293 }
 0x263   :  { %5310 = vmatmul.mubr.msk.bf16.vlgmr.msra.gmra.mrb[52].mxu0 %vm62_vm3, %v5307_v59  ;;  %v3296_v63 = vsel %vm776_vm8, %v3292_v7, %v3294_v18  ;;  %v3307_v26 = vsel %vm66_vm1, %v3294_v18, 0 }
 0x264   :  { %5637 = vmatmul.mubr.msk.bf16.vlgmr.msra.gmra.mrb[52].mxu1 %vm62_vm3, %v5307_v59  ;;  %2941 = vmatpush1.bf16.msra.mxu0 %v2932_v62  ;;  %v3742_v59 = vld [vmem:[#allocation2 + $0x68] sm:$0xff] }
 0x265   :  { %5641 = vmatpush3.bf16.msra.mxu1 %v2938_v0  ;;  %2972 = vmatprep.mubr.bf16.mxu0 %v5810_v6  ;;  %v5358_v61 = vcombine.low %v3738_v55, %v3742_v59  ;;  %v5359_v62 = vcombine.high %v3738_v55, %v3742_v59  ;;  %v3745_v0 = vld [vmem:[#allocation2 + $0x80] sm:$0xff]  ;;  %v3806_v59 = vld [vmem:[#allocation2 + $0x268] sm:$0xff] }
 0x266   :  { %5642 = vmatprep.mubr.msk.bf16.mxu1 %vm5809_vm0, %v5808_v4  ;;  %5319 = vmatprep.subr.msk.bf16.mxu0 %vm66_vm1, %v3050_v39  ;;  %v3415_v22 = vpop.permute.xlu1 %3414  ;;  %v3746_v39 = vld [vmem:[#allocation2 + $0x88] sm:$0xff]  ;;  %v5365_v2 = vcombine.high %v3745_v0, %v3749_v1  ;;  %v5364_v5 = vcombine.low %v3745_v0, %v3749_v1  ;;  %v3805_v55 = vld [vmem:[#allocation2 + $0x260] sm:$0xff] }
 0x267   :  { %5646 = vmatprep.subr.bf16.mxu1 %v5808_v4  ;;  %v3419_v52 = vsel %vm901_vm9, %v3415_v22, %v3417_v25  ;;  %v3418_v28 = vsel %vm901_vm9, %v3413_v21, %v3415_v22  ;;  %v3762_v21 = vld [vmem:[#allocation2 + $0x108] sm:$0xff]  ;;  %v3809_v1 = vld [vmem:[#allocation2 + $0x280] sm:$0xff] }
 0x268   :  { %v3424_v9 = vsel %vm66_vm1, %v3418_v28, 0  ;;  %v5383_v25 = vcombine.high %v3762_v21, %v3766_v23 }
 0x26a   :  { %v3536_v27 = vpop.permute.xlu1 %3535 }
 0x26b   :  { %5315 = vmatmul.mubr.msk.bf16.vlgmr.msra.gmra.mrb[56].mxu0 %vm62_vm3, %v5312_v38  ;;  %v3541_v33 = vsel %vm1026_vm10, %v3536_v27, %v3538_v3  ;;  %v3773_v27 = vld [vmem:[#allocation2 + $0x160] sm:$0xff] }
 0x26c   :  { %5643 = vmatmul.mubr.msk.bf16.vlgmr.msra.gmra.mrb[56].mxu1 %vm62_vm3, %v5312_v38  ;;  %3064 = vmatpush1.bf16.msra.mxu0 %v3055_v8  ;;  %v3547_v35 = vsel %vm66_vm1, %v3541_v33, 0  ;;  %v5366_v38 = vcombine.low %v3746_v39, %v3750_v34  ;;  %v5367_v8 = vcombine.high %v3746_v39, %v3750_v34  ;;  %v3778_v33 = vld [vmem:[#allocation2 + $0x188] sm:$0xff]  ;;  %v3813_v39 = vld [vmem:[#allocation2 + $0x2a0] sm:$0xff] }
 0x26d   :  { %5647 = vmatpush3.bf16.msra.mxu1 %v3061_v14  ;;  %3095 = vmatprep.mubr.bf16.mxu0 %v5810_v6  ;;  %v3753_v14 = vld [vmem:[#allocation2 + $0xc0] sm:$0xff]  ;;  %v5429_v34 = vcombine.high %v3809_v1, %v3813_v39 }
 0x26e   :  { %5648 = vmatprep.mubr.msk.bf16.mxu1 %vm5809_vm0, %v5808_v4  ;;  %5324 = vmatprep.subr.msk.bf16.mxu0 %vm66_vm1, %v3173_v15  ;;  %v3540_v30 = vpop.permute.xlu1 %3539  ;;  %v3754_v15 = vld [vmem:[#allocation2 + $0xc8] sm:$0xff]  ;;  %v5373_v7 = vcombine.high %v3753_v14, %v3757_v11 }
 0x26f   :  { %5652 = vmatprep.subr.bf16.mxu1 %v5808_v4  ;;  %v3542_v32 = vsel %vm1026_vm10, %v3538_v3, %v3540_v30  ;;  %v3553_v50 = vsel %vm66_vm1, %v3540_v30, 0  ;;  %v5374_v18 = vcombine.low %v3754_v15, %v3758_v58  ;;  %v3777_v3 = vld [vmem:[#allocation2 + $0x180] sm:$0xff] }
 0x273   :  { %5320 = vmatmul.mubr.msk.bf16.vlgmr.msra.gmra.mrb[60].mxu0 %vm62_vm3, %v5317_v17 }
 0x274   :  { %5649 = vmatmul.mubr.msk.bf16.vlgmr.msra.gmra.mrb[60].mxu1 %vm62_vm3, %v5317_v17  ;;  %3187 = vmatpush1.bf16.msra.mxu0 %v3178_v19  ;;  %v5372_v17 = vcombine.low %v3753_v14, %v3757_v11  ;;  %v5375_v19 = vcombine.high %v3754_v15, %v3758_v58  ;;  %v3817_v11 = vld [vmem:[#allocation2 + $0x2c0] sm:$0xff] }
 0x275   :  { %5653 = vmatpush3.bf16.msra.mxu1 %v3184_v20  ;;  %3218 = vmatprep.mubr.bf16.mxu0 %v5810_v6  ;;  %v3761_v20 = vld [vmem:[#allocation2 + $0x100] sm:$0xff] }
 0x276   :  { %5654 = vmatprep.mubr.msk.bf16.mxu1 %vm5809_vm0, %v5808_v4  ;;  %5329 = vmatprep.subr.msk.bf16.mxu0 %vm66_vm1, %v3296_v63  ;;  %v3765_v63 = vld [vmem:[#allocation2 + $0x120] sm:$0xff] }
 0x277   :  { %5658 = vmatprep.subr.bf16.mxu1 %v5808_v4  ;;  %v5381_v22 = vcombine.high %v3761_v20, %v3765_v63  ;;  %v3821_v15 = vld [vmem:[#allocation2 + $0x2e0] sm:$0xff] }
 0x278   :  { %v5437_v58 = vcombine.high %v3817_v11, %v3821_v15 }
 0x27b   :  { %5325 = vmatmul.mubr.msk.bf16.vlgmr.msra.gmra.mrb[64].mxu0 %vm62_vm3, %v5322_v49 }
 0x27c   :  { %5655 = vmatmul.mubr.msk.bf16.vlgmr.msra.gmra.mrb[64].mxu1 %vm62_vm3, %v5322_v49  ;;  %3310 = vmatpush1.bf16.msra.mxu0 %v3301_v24  ;;  %v5380_v49 = vcombine.low %v3761_v20, %v3765_v63  ;;  %v5382_v24 = vcombine.low %v3762_v21, %v3766_v23  ;;  %v3825_v63 = vld [vmem:[#allocation2 + $0x300] sm:$0xff] }
 0x27d   :  { %5659 = vmatpush3.bf16.msra.mxu1 %v3307_v26  ;;  %3341 = vmatprep.mubr.bf16.mxu0 %v5810_v6  ;;  %v3769_v26 = vld [vmem:[#allocation2 + $0x140] sm:$0xff] }
 0x27e   :  { %5660 = vmatprep.mubr.msk.bf16.mxu1 %vm5809_vm0, %v5808_v4  ;;  %5334 = vmatprep.subr.msk.bf16.mxu0 %vm66_vm1, %v3419_v52  ;;  %v3770_v52 = vld [vmem:[#allocation2 + $0x148] sm:$0xff]  ;;  %v5389_v28 = vcombine.high %v3769_v26, %v3773_v27  ;;  %v5388_v30 = vcombine.low %v3769_v26, %v3773_v27  ;;  %v3829_v21 = vld [vmem:[#allocation2 + $0x320] sm:$0xff] }
 0x27f   :  { %5664 = vmatprep.subr.bf16.mxu1 %v5808_v4  ;;  %v5445_v23 = vcombine.high %v3825_v63, %v3829_v21  ;;  %v3833_v27 = vld [vmem:[#allocation2 + $0x340] sm:$0xff] }
 0x283   :  { %5330 = vmatmul.mubr.msk.bf16.vlgmr.msra.gmra.mrb[68].mxu0 %vm62_vm3, %v5327_v29 }
 0x284   :  { %5661 = vmatmul.mubr.msk.bf16.vlgmr.msra.gmra.mrb[68].mxu1 %vm62_vm3, %v5327_v29  ;;  %3433 = vmatpush1.bf16.msra.mxu0 %v3424_v9  ;;  %v3774_v29 = vld [vmem:[#allocation2 + $0x168] sm:$0xff] }
 0x285   :  { %5665 = vmatpush3.bf16.msra.mxu1 %v3430_v13  ;;  %3464 = vmatprep.mubr.bf16.mxu0 %v5810_v6  ;;  %v5390_v9 = vcombine.low %v3770_v52, %v3774_v29  ;;  %v5391_v13 = vcombine.high %v3770_v52, %v3774_v29  ;;  %v3837_v52 = vld [vmem:[#allocation2 + $0x360] sm:$0xff] }
 0x286   :  { %5666 = vmatprep.mubr.msk.bf16.mxu1 %vm5809_vm0, %v5808_v4  ;;  %5339 = vmatprep.subr.msk.bf16.mxu0 %vm66_vm1, %v3542_v32  ;;  %v3781_v32 = vld [vmem:[#allocation2 + $0x1a0] sm:$0xff]  ;;  %v5453_v29 = vcombine.high %v3833_v27, %v3837_v52 }
 0x287   :  { %5670 = vmatprep.subr.bf16.mxu1 %v5808_v4 }
 0x28b   :  { %5335 = vmatmul.mubr.msk.bf16.vlgmr.msra.gmra.mrb[72].mxu0 %vm62_vm3, %v5332_v31 }
 0x28c   :  { %5667 = vmatmul.mubr.msk.bf16.vlgmr.msra.gmra.mrb[72].mxu1 %vm62_vm3, %v5332_v31  ;;  %3556 = vmatpush1.bf16.msra.mxu0 %v3547_v35  ;;  %v5397_v31 = vcombine.high %v3777_v3, %v3781_v32  ;;  %v3782_v35 = vld [vmem:[#allocation2 + $0x1a8] sm:$0xff] }
 0x28d   :  { %5671 = vmatpush3.bf16.msra.mxu1 %v3553_v50  ;;  %3587 = vmatprep.mubr.bf16.mxu0 %v5810_v6  ;;  %v5396_v50 = vcombine.low %v3777_v3, %v3781_v32  ;;  %v3841_v32 = vld [vmem:[#allocation2 + $0x380] sm:$0xff] }
 0x28e   :  { %5672 = vmatprep.mubr.msk.bf16.mxu1 %vm5809_vm0, %v5808_v4  ;;  %4740 = vmatprep.subr.bf16.mxu0 %v5349_v46  ;;  %v3794_v46 = vld [vmem:[#allocation2 + $0x208] sm:$0xff] }
 0x28f   :  { %4822 = vmatprep.subr.bf16.mxu1 %v5351_v37 }
 0x293   :  { %5340 = vmatmul.mubr.msk.bf16.vlgmr.msra.gmra.mrb[76].mxu0 %vm62_vm3, %v5337_v40 }
 0x294   :  { %5673 = vmatmul.mubr.msk.bf16.vlgmr.msra.gmra.mrb[76].mxu1 %vm62_vm3, %v5337_v40  ;;  %4741 = vmatpush1.bf16.msra.mxu0 %v5348_v51  ;;  %v5398_v40 = vcombine.low %v3778_v33, %v3782_v35  ;;  %v3798_v51 = vld [vmem:[#allocation2 + $0x228] sm:$0xff] }
 0x295   :  { %4823 = vmatpush1.bf16.msra.mxu1 %v5350_v53  ;;  %4742 = vmatprep.subr.bf16.mxu0 %v5357_v57  ;;  %v5412_v53 = vcombine.low %v3793_v45, %v3797_v47  ;;  %v5414_v37 = vcombine.low %v3794_v46, %v3798_v51  ;;  %v5415_v54 = vcombine.high %v3794_v46, %v3798_v51  ;;  %v6418_v46 = vld [vmem:[#allocation2 + $0x400] sm:$0xff]  ;;  %v6422_v51 = vld [vmem:[#allocation2 + $0x408] sm:$0xff] }
 0x296   :  { %4824 = vmatprep.subr.bf16.mxu1 %v5359_v62  ;;  %v5421_v57 = vcombine.high %v3801_v60, %v3805_v55 }
 0x298   :  { %4743 = vmatpush1.bf16.msra.mxu0 %v5356_v16  ;;  %v3802_v16 = vld [vmem:[#allocation2 + $0x248] sm:$0xff] }
 0x299   :  { %4825 = vmatpush1.bf16.msra.mxu1 %v5358_v61  ;;  %4744 = vmatprep.subr.bf16.mxu0 %v5365_v2  ;;  %v5420_v61 = vcombine.low %v3801_v60, %v3805_v55  ;;  %v5422_v62 = vcombine.low %v3802_v16, %v3806_v59  ;;  %v5423_v0 = vcombine.high %v3802_v16, %v3806_v59  ;;  %v3810_v2 = vld [vmem:[#allocation2 + $0x288] sm:$0xff] }
 0x29a   :  { %4826 = vmatprep.subr.bf16.mxu1 %v5367_v8  ;;  %v6429_v60 = vld [vmem:[#allocation2 + $0x428] sm:$0xff] }
 0x29b   :  { %v5478_v59 = vcombine.low %v6422_v51, %v6429_v60 }
 0x29c   :  { %4745 = vmatpush1.bf16.msra.mxu0 %v5364_v5  ;;  %v3814_v5 = vld [vmem:[#allocation2 + $0x2a8] sm:$0xff] }
 0x29d   :  { %4827 = vmatpush1.bf16.msra.mxu1 %v5366_v38  ;;  %4746 = vmatprep.subr.bf16.mxu0 %v5373_v7  ;;  %v5428_v38 = vcombine.low %v3809_v1, %v3813_v39  ;;  %v5430_v8 = vcombine.low %v3810_v2, %v3814_v5  ;;  %v5431_v14 = vcombine.high %v3810_v2, %v3814_v5  ;;  %v3818_v7 = vld [vmem:[#allocation2 + $0x2c8] sm:$0xff] }
 0x29e   :  { %4828 = vmatprep.subr.bf16.mxu1 %v5375_v19 }
 0x2a0   :  { %4747 = vmatpush1.bf16.msra.mxu0 %v5372_v17  ;;  %v3822_v17 = vld [vmem:[#allocation2 + $0x2e8] sm:$0xff] }
 0x2a1   :  { %4829 = vmatpush1.bf16.msra.mxu1 %v5374_v18  ;;  %4748 = vmatprep.subr.bf16.mxu0 %v5381_v22  ;;  %v5436_v18 = vcombine.low %v3817_v11, %v3821_v15  ;;  %v5438_v19 = vcombine.low %v3818_v7, %v3822_v17  ;;  %v5439_v20 = vcombine.high %v3818_v7, %v3822_v17  ;;  %v3826_v22 = vld [vmem:[#allocation2 + $0x308] sm:$0xff] }
 0x2a2   :  { %4830 = vmatprep.subr.bf16.mxu1 %v5383_v25 }
 0x2a4   :  { %4749 = vmatpush1.bf16.msra.mxu0 %v5380_v49  ;;  %v3830_v49 = vld [vmem:[#allocation2 + $0x328] sm:$0xff] }
 0x2a5   :  { %4831 = vmatpush1.bf16.msra.mxu1 %v5382_v24  ;;  %4750 = vmatprep.subr.bf16.mxu0 %v5389_v28  ;;  %v5444_v24 = vcombine.low %v3825_v63, %v3829_v21  ;;  %v5446_v25 = vcombine.low %v3826_v22, %v3830_v49  ;;  %v5447_v26 = vcombine.high %v3826_v22, %v3830_v49  ;;  %v3834_v28 = vld [vmem:[#allocation2 + $0x348] sm:$0xff] }
 0x2a6   :  { %4832 = vmatprep.subr.bf16.mxu1 %v5391_v13 }
 0x2a8   :  { %4751 = vmatpush1.bf16.msra.mxu0 %v5388_v30  ;;  %v3838_v30 = vld [vmem:[#allocation2 + $0x368] sm:$0xff] }
 0x2a9   :  { %4833 = vmatpush1.bf16.msra.mxu1 %v5390_v9  ;;  %4752 = vmatprep.subr.bf16.mxu0 %v5397_v31  ;;  %v5452_v9 = vcombine.low %v3833_v27, %v3837_v52  ;;  %v5454_v13 = vcombine.low %v3834_v28, %v3838_v30  ;;  %v5455_v3 = vcombine.high %v3834_v28, %v3838_v30  ;;  %v3842_v31 = vld [vmem:[#allocation2 + $0x388] sm:$0xff] }
 0x2ac   :  { %4753 = vmatpush1.bf16.msra.mxu0 %v5396_v50  ;;  %v3846_v50 = vld [vmem:[#allocation2 + $0x3a8] sm:$0xff] }
 0x2ca   :  { %v2302_v41 = vpop.f32.mrb[36].mxu0  ;;  %v2384_v42 = vpop.f32.mrb[36].mxu1 }
 0x2cb   :  { %2555 = vst [vmem:[%s6538_s4] sm:$0xff] %v2302_v41  ;;  %2557 = vst [vmem:[%s6538_s4 + $0x10] sm:$0xff] %v2384_v42  ;;  %v2304_v43 = vpop.f32.mrb[37].mxu0  ;;  %v2386_v4 = vpop.f32.mrb[37].mxu1  ;;  %v5399_v41 = vcombine.high %v3778_v33, %v3782_v35  ;;  %v3785_v42 = vld [vmem:[#allocation2 + $0x1c0] sm:$0xff] }
 0x2cc   :  { %2556 = vst [vmem:[%s6538_s4 + $0x8] sm:$0xff] %v2304_v43  ;;  %2558 = vst [vmem:[%s6538_s4 + $0x18] sm:$0xff] %v2386_v4  ;;  %v2306_v36 = vpop.f32.mrb[38].mxu0  ;;  %v2388_v44 = vpop.f32.mrb[38].mxu1  ;;  %v3789_v43 = vld [vmem:[#allocation2 + $0x1e0] sm:$0xff]  ;;  %v3786_v4 = vld [vmem:[#allocation2 + $0x1c8] sm:$0xff] }
 0x2cd   :  { %v2307_v10 = vpop.f32.mrb[39].mxu0  ;;  %v2389_v56 = vpop.f32.mrb[39].mxu1  ;;  %4834 = vmatprep.subr.bf16.mxu1 %v5399_v41  ;;  %v5405_v36 = vcombine.high %v3785_v42, %v3789_v43  ;;  %v3790_v44 = vld [vmem:[#allocation2 + $0x1e8] sm:$0xff]  ;;  %v3845_v33 = vld [vmem:[#allocation2 + $0x3a0] sm:$0xff]  ;;  %v5462_v41 = vcombine.low %v3842_v31, %v3846_v50 }
 0x2ce   :  { %4835 = vmatpush1.bf16.msra.mxu1 %v5398_v40  ;;  %v5404_v10 = vcombine.low %v3785_v42, %v3789_v43  ;;  %v5406_v56 = vcombine.low %v3786_v4, %v3790_v44  ;;  %v5407_v48 = vcombine.high %v3786_v4, %v3790_v44  ;;  %v5461_v35 = vcombine.high %v3841_v32, %v3845_v33  ;;  %v3849_v43 = vld [vmem:[#allocation2 + $0x3c0] sm:$0xff] }
 0x2cf   :  { %4754 = vmatprep.subr.bf16.mxu0 %v5405_v36  ;;  %v5460_v40 = vcombine.low %v3841_v32, %v3845_v33  ;;  %v5463_v42 = vcombine.high %v3842_v31, %v3846_v50  ;;  %v3853_v4 = vld [vmem:[#allocation2 + $0x3e0] sm:$0xff]  ;;  %v3850_v36 = vld [vmem:[#allocation2 + $0x3c8] sm:$0xff] }
 0x2d0   :  { %4836 = vmatprep.subr.bf16.mxu1 %v5407_v48  ;;  %4755 = vmatpush1.bf16.msra.mxu0 %v5404_v10  ;;  %v5469_v44 = vcombine.high %v3849_v43, %v3853_v4  ;;  %v3854_v10 = vld [vmem:[#allocation2 + $0x3e8] sm:$0xff] }
 0x2d1   :  { %4756 = vmatprep.subr.bf16.mxu0 %v5413_v12  ;;  %v5470_v48 = vcombine.low %v3850_v36, %v3854_v10  ;;  %v5471_v45 = vcombine.high %v3850_v36, %v3854_v10  ;;  %v6420_v12 = vld [vmem:[#allocation2 + $0x420] sm:$0xff] }
 0x2d2   :  { %4837 = vmatpush1.bf16.msra.mxu1 %v5406_v56  ;;  %v5468_v56 = vcombine.low %v3849_v43, %v3853_v4 }
 0x2d3   :  { %4838 = vmatprep.subr.bf16.mxu1 %v5415_v54  ;;  %v5477_v54 = vcombine.high %v6418_v46, %v6420_v12 }
 0x2d4   :  { %4757 = vmatpush1.bf16.msra.mxu0 %v5412_v53 }
 0x2d5   :  { %4758 = vmatprep.subr.bf16.mxu0 %v5421_v57  ;;  %v5476_v57 = vcombine.low %v6418_v46, %v6420_v12 }
 0x2d6   :  { %4839 = vmatpush1.bf16.msra.mxu1 %v5414_v37 }
 0x2d7   :  { %4840 = vmatprep.subr.bf16.mxu1 %v5423_v0 }
 0x2d8   :  { %4759 = vmatpush1.bf16.msra.mxu0 %v5420_v61  ;;  %v5479_v61 = vcombine.high %v6422_v51, %v6429_v60 }
 0x2d9   :  { %4760 = vmatprep.subr.bf16.mxu0 %v5429_v34 }
 0x2da   :  { %4841 = vmatpush1.bf16.msra.mxu1 %v5422_v62 }
 0x2db   :  { %4842 = vmatprep.subr.bf16.mxu1 %v5431_v14 }
 0x2dc   :  { %4761 = vmatpush1.bf16.msra.mxu0 %v5428_v38 }
 0x2dd   :  { %4762 = vmatprep.subr.bf16.mxu0 %v5437_v58 }
 0x2de   :  { %4843 = vmatpush1.bf16.msra.mxu1 %v5430_v8 }
 0x2df   :  { %4844 = vmatprep.subr.bf16.mxu1 %v5439_v20 }
 0x2e0   :  { %4763 = vmatpush1.bf16.msra.mxu0 %v5436_v18 }
 0x2e1   :  { %4764 = vmatprep.subr.bf16.mxu0 %v5445_v23 }
 0x2e2   :  { %4845 = vmatpush1.bf16.msra.mxu1 %v5438_v19 }
 0x2e3   :  { %4846 = vmatprep.subr.bf16.mxu1 %v5447_v26 }
 0x2e4   :  { %4765 = vmatpush1.bf16.msra.mxu0 %v5444_v24 }
 0x2e5   :  { %4766 = vmatprep.subr.bf16.mxu0 %v5453_v29 }
 0x2e6   :  { %4847 = vmatpush1.bf16.msra.mxu1 %v5446_v25 }
 0x2e7   :  { %4848 = vmatprep.subr.bf16.mxu1 %v5455_v3 }
 0x2e8   :  { %4767 = vmatpush1.bf16.msra.mxu0 %v5452_v9 }
 0x2e9   :  { %4768 = vmatprep.subr.bf16.mxu0 %v5461_v35 }
 0x2ea   :  { %4849 = vmatpush1.bf16.msra.mxu1 %v5454_v13 }
 0x2eb   :  { %4850 = vmatprep.subr.bf16.mxu1 %v5463_v42 }
 0x2ec   :  { %4769 = vmatpush1.bf16.msra.mxu0 %v5460_v40 }
 0x2ed   :  { %4770 = vmatprep.subr.bf16.mxu0 %v5469_v44 }
 0x2ee   :  { %4851 = vmatpush1.bf16.msra.mxu1 %v5462_v41 }
 0x2ef   :  { %4852 = vmatprep.subr.bf16.mxu1 %v5471_v45 }
 0x2f0   :  { %4771 = vmatpush1.bf16.msra.mxu0 %v5468_v56 }
 0x2f1   :  { %4781 = vmatprep.subr.bf16.mxu0 %v5477_v54 }
 0x2f2   :  { %4853 = vmatpush1.bf16.msra.mxu1 %v5470_v48 }
 0x2f3   :  { %4863 = vmatprep.subr.bf16.mxu1 %v5479_v61 }
 0x31e   :  { %v2466_v47 = vpop.f32.mrb[40].mxu0 }
 0x31f   :  { %2559 = vst [vmem:[%s6538_s4 + $0x20] sm:$0xff] %v2466_v47  ;;  %v2548_v53 = vpop.f32.mrb[40].mxu1  ;;  %v2468_v37 = vpop.f32.mrb[41].mxu0 }
 0x320   :  { %2561 = vst [vmem:[%s6538_s4 + $0x30] sm:$0xff] %v2548_v53  ;;  %2560 = vst [vmem:[%s6538_s4 + $0x28] sm:$0xff] %v2468_v37  ;;  %v2550_v55 = vpop.f32.mrb[41].mxu1  ;;  %v2470_v16 = vpop.f32.mrb[42].mxu0 }
 0x321   :  { %2562 = vst [vmem:[%s6538_s4 + $0x38] sm:$0xff] %v2550_v55  ;;  %v2552_v62 = vpop.f32.mrb[42].mxu1  ;;  %v2471_v0 = vpop.f32.mrb[43].mxu0 }
 0x322   :  { %v2553_v1 = vpop.f32.mrb[43].mxu1 }
 0x326   :  { %v2638_v39 = vpop.f32.mrb[44].mxu0 }
 0x327   :  { %v2640_v2 = vpop.f32.mrb[45].mxu0  ;;  %v2679_v34 = vpop.f32.mrb[44].mxu1 }
 0x328   :  { %v2642_v5 = vpop.f32.mrb[46].mxu0  ;;  %v5626_v38 = vpop.f32.mrb[45].mxu1 }
 0x329   :  { %v2643_v8 = vpop.f32.mrb[47].mxu0  ;;  %v2682_v14 = vpop.f32.mrb[46].mxu1 }
 0x32a   :  { %v5627_v11 = vpop.f32.mrb[47].mxu1 }
 0x32e   :  { %v2731_v15 = vpop.f32.mrb[48].mxu0 }
 0x32f   :  { %v2732_v7 = vadd.f32 %v2731_v15, %v2638_v39  ;;  %v2733_v58 = vpop.f32.mrb[49].mxu0  ;;  %v2772_v17 = vpop.f32.mrb[48].mxu1 }
 0x330   :  { %v2734_v18 = vadd.f32 %v2733_v58, %v2640_v2  ;;  %v2735_v19 = vpop.f32.mrb[50].mxu0  ;;  %v2773_v20 = vadd.f32 %v2772_v17, %v2679_v34  ;;  %v5632_v63 = vpop.f32.mrb[49].mxu1 }
 0x331   :  { %v2736_v21 = vpop.f32.mrb[51].mxu0  ;;  %v2775_v22 = vpop.f32.mrb[50].mxu1 }
 0x332   :  { %v5633_v23 = vpop.f32.mrb[51].mxu1 }
 0x336   :  { %v2851_v49 = vpop.f32.mrb[52].mxu0 }
 0x337   :  { %v2898_v24 = vadd.f32 %v2851_v49, %v2732_v7  ;;  %v2853_v25 = vpop.f32.mrb[53].mxu0  ;;  %v2892_v26 = vpop.f32.mrb[52].mxu1 }
 0x338   :  { %v2899_v27 = vadd.f32 %v2853_v25, %v2734_v18  ;;  %v2855_v52 = vpop.f32.mrb[54].mxu0  ;;  %v2900_v28 = vadd.f32 %v2892_v26, %v2773_v20  ;;  %v5638_v29 = vpop.f32.mrb[53].mxu1 }
 0x339   :  { %v2856_v30 = vpop.f32.mrb[55].mxu0  ;;  %v2895_v9 = vpop.f32.mrb[54].mxu1 }
 0x33a   :  { %v5639_v13 = vpop.f32.mrb[55].mxu1  ;;  %v3643_v9 = vpop.permute.xlu0 %3642 }
 0x33e   :  { %v2974_v3 = vpop.f32.mrb[56].mxu0 }
 0x33f   :  { %v3021_v32 = vadd.f32 %v2974_v3, %v2898_v24  ;;  %v2976_v33 = vpop.f32.mrb[57].mxu0  ;;  %v3015_v31 = vpop.f32.mrb[56].mxu1 }
 0x340   :  { %v3022_v35 = vadd.f32 %v2976_v33, %v2899_v27  ;;  %v2978_v50 = vpop.f32.mrb[58].mxu0  ;;  %v3023_v40 = vadd.f32 %v3015_v31, %v2900_v28  ;;  %v5644_v41 = vpop.f32.mrb[57].mxu1 }
 0x341   :  { %v2979_v42 = vpop.f32.mrb[59].mxu0  ;;  %v3018_v43 = vpop.f32.mrb[58].mxu1 }
 0x342   :  { %v5645_v4 = vpop.f32.mrb[59].mxu1 }
 0x346   :  { %v3097_v36 = vpop.f32.mrb[60].mxu0 }
 0x347   :  { %v3144_v44 = vadd.f32 %v3097_v36, %v3021_v32  ;;  %v3138_v10 = vpop.f32.mrb[60].mxu1  ;;  %v3099_v56 = vpop.f32.mrb[61].mxu0 }
 0x348   :  { %v3146_v48 = vadd.f32 %v3138_v10, %v3023_v40  ;;  %v3145_v45 = vadd.f32 %v3099_v56, %v3022_v35  ;;  %v3101_v47 = vpop.f32.mrb[62].mxu0  ;;  %v5650_v53 = vpop.f32.mrb[61].mxu1 }
 0x349   :  { %v3102_v37 = vpop.f32.mrb[63].mxu0  ;;  %v3141_v54 = vpop.f32.mrb[62].mxu1 }
 0x34a   :  { %v5651_v55 = vpop.f32.mrb[63].mxu1 }
 0x34e   :  { %v3220_v16 = vpop.f32.mrb[64].mxu0 }
 0x34f   :  { %v3267_v61 = vadd.f32 %v3220_v16, %v3144_v44  ;;  %v3261_v62 = vpop.f32.mrb[64].mxu1  ;;  %v3222_v0 = vpop.f32.mrb[65].mxu0 }
 0x350   :  { %v3269_v1 = vadd.f32 %v3261_v62, %v3146_v48  ;;  %v3268_v39 = vadd.f32 %v3222_v0, %v3145_v45  ;;  %v3224_v2 = vpop.f32.mrb[66].mxu0  ;;  %v5656_v34 = vpop.f32.mrb[65].mxu1 }
 0x351   :  { %v3225_v5 = vpop.f32.mrb[67].mxu0  ;;  %v3264_v38 = vpop.f32.mrb[66].mxu1 }
 0x352   :  { %v5657_v8 = vpop.f32.mrb[67].mxu1 }
 0x356   :  { %v3343_v14 = vpop.f32.mrb[68].mxu0 }
 0x357   :  { %v3390_v11 = vadd.f32 %v3343_v14, %v3267_v61  ;;  %v3384_v15 = vpop.f32.mrb[68].mxu1  ;;  %v3345_v7 = vpop.f32.mrb[69].mxu0 }
 0x358   :  { %v3392_v58 = vadd.f32 %v3384_v15, %v3269_v1  ;;  %v3391_v17 = vadd.f32 %v3345_v7, %v3268_v39  ;;  %v3347_v18 = vpop.f32.mrb[70].mxu0  ;;  %v5662_v19 = vpop.f32.mrb[69].mxu1 }
 0x359   :  { %v3348_v20 = vpop.f32.mrb[71].mxu0  ;;  %v3387_v63 = vpop.f32.mrb[70].mxu1 }
 0x35a   :  { %v5663_v21 = vpop.f32.mrb[71].mxu1 }
 0x35e   :  { %v3466_v22 = vpop.f32.mrb[72].mxu0 }
 0x35f   :  { %v3513_v23 = vadd.f32 %v3466_v22, %v3390_v11  ;;  %v3507_v49 = vpop.f32.mrb[72].mxu1  ;;  %v3468_v24 = vpop.f32.mrb[73].mxu0 }
 0x360   :  { %v3515_v25 = vadd.f32 %v3507_v49, %v3392_v58  ;;  %v3514_v26 = vadd.f32 %v3468_v24, %v3391_v17  ;;  %v3470_v27 = vpop.f32.mrb[74].mxu0  ;;  %v5668_v52 = vpop.f32.mrb[73].mxu1 }
 0x361   :  { %v3471_v28 = vpop.f32.mrb[75].mxu0  ;;  %v3510_v29 = vpop.f32.mrb[74].mxu1 }
 0x362   :  { %v5669_v30 = vpop.f32.mrb[75].mxu1 }
 0x366   :  { %v3589_v13 = vpop.f32.mrb[76].mxu0 }
 0x367   :  { %v3636_v3 = vadd.f32 %v3589_v13, %v3513_v23  ;;  %v3630_v32 = vpop.f32.mrb[76].mxu1  ;;  %v3591_v33 = vpop.f32.mrb[77].mxu0 }
 0x368   :  { %v3638_v31 = vadd.f32 %v3630_v32, %v3515_v25  ;;  %v3637_v35 = vadd.f32 %v3591_v33, %v3514_v26  ;;  %v3593_v50 = vpop.f32.mrb[78].mxu0  ;;  %v5674_v40 = vpop.f32.mrb[77].mxu1 }
 0x369   :  { %v6446_v41 = vadd.f32 %v3643_v9, %v3636_v3  ;;  %v3594_v42 = vpop.f32.mrb[79].mxu0  ;;  %v3633_v43 = vpop.f32.mrb[78].mxu1 }
 0x36a   :  { %v6448_v4 = vadd.f32 %v3643_v9, %v3638_v31  ;;  %v6450_v36 = vadd.f32 %v3643_v9, %v3637_v35  ;;  %v5675_v44 = vpop.f32.mrb[79].mxu1 }
 0x36b   :  { %v6453_v10 = vmul.f32 0.70710677, %v6446_v41 }
 0x36c   :  { %v6456_v56 = vmul.f32 0.70710677, %v6448_v4  ;;  %v6459_v48 = vmul.f32 0.70710677, %v6450_v36 }
 0x36d   :  { %v3654_v45 = vand.u32 2147483647, %v6453_v10  ;;  %vm3711_vm15 = vcmp.lt.f32.partialorder %v6453_v10, 0.0  ;;  %v3869_v10 = vld [vmem:[#allocation2 + $0x460] sm:$0xff] }
 0x36e   :  { %v3656_v47 = vand.u32 2147483647, %v6456_v56  ;;  %v3655_v53 = vand.u32 2147483647, %v6459_v48  ;;  %vm3712_vm0 = vcmp.lt.f32.partialorder %v6459_v48, 0.0  ;;  %vm3713_vm2 = vcmp.lt.f32.partialorder %v6456_v56, 0.0 }
 0x36f   :  { %v3657_v37 = vmul.f32 0.3275911, %v3654_v45  ;;  %v3693_v0 = vsub.f32 0.0, %v3654_v45  ;;  %v3735_v56 = vld [vmem:[#allocation2 + $0x30] sm:$0xff] }
 0x370   :  { %v3659_v54 = vmul.f32 0.3275911, %v3656_v47  ;;  %v3658_v55 = vmul.f32 0.3275911, %v3655_v53  ;;  %v3694_v2 = vsub.f32 0.0, %v3655_v53  ;;  %v3695_v23 = vsub.f32 0.0, %v3656_v47 }
 0x371   :  { %v3660_v16 = vadd.f32 1.0, %v3657_v37  ;;  %v3696_v39 = vmul.f32 %v3693_v0, %v3654_v45  ;;  %v3649_v0 = vmul.f32 0.5, %v6450_v36  ;;  %v3877_v36 = vld [vmem:[#allocation2 + $0x4a0] sm:$0xff] }
 0x372   :  { %v3662_v61 = vadd.f32 1.0, %v3659_v54  ;;  %v3661_v62 = vadd.f32 1.0, %v3658_v55  ;;  %v3697_v7 = vmul.f32 %v3694_v2, %v3655_v53  ;;  %v3698_v52 = vmul.f32 %v3695_v23, %v3656_v47 }
 0x373   :  { %5768 = vrcp.f32 %v3660_v16  ;;  %v3699_v11 = vmul.f32 1.442695, %v3696_v39 }
 0x374   :  { %5770 = vrcp.f32 %v3662_v61  ;;  %v3701_v21 = vmul.f32 1.442695, %v3697_v7  ;;  %v3703_v3 = vmul.f32 1.442695, %v3698_v52  ;;  %v3648_v61 = vmul.f32 0.5, %v6446_v41 }
 0x375   :  { %5772 = vrcp.f32 %v3661_v62 }
 0x376   :  { %5774 = vpow2.f32 %v3699_v11  ;;  %v3870_v11 = vld [vmem:[#allocation2 + $0x468] sm:$0xff] }
 0x377   :  { %5776 = vpow2.f32 %v3701_v21 }
 0x378   :  { %5778 = vpow2.f32 %v3703_v3  ;;  %v3731_v3 = vld [vmem:[#allocation2 + $0x10] sm:$0xff] }
 0x37d   :  { %v5769_v1 = vpop.eup %5768 }
 0x37e   :  { %v5771_v34 = vpop.eup %5770  ;;  %v3666_v5 = vmul.f32 1.0614054, %v5769_v1 }
 0x37f   :  { %v3668_v38 = vmul.f32 1.0614054, %v5771_v34  ;;  %v5773_v14 = vpop.eup %5772 }
 0x380   :  { %v5342_v8 = vadd.f32 -1.4531521, %v3666_v5  ;;  %v3667_v17 = vmul.f32 1.0614054, %v5773_v14  ;;  %v5775_v33 = vpop.eup %5774  ;;  %v3865_v5 = vld [vmem:[#allocation2 + $0x440] sm:$0xff] }
 0x381   :  { %v5344_v15 = vadd.f32 -1.4531521, %v3668_v38  ;;  %v5777_v43 = vpop.eup %5776 }
 0x382   :  { %v3672_v58 = vmul.f32 %v5769_v1, %v5342_v8  ;;  %v5343_v20 = vadd.f32 -1.4531521, %v3667_v17  ;;  %v5779_v39 = vpop.eup %5778  ;;  %v3874_v17 = vld [vmem:[#allocation2 + $0x488] sm:$0xff] }
 0x383   :  { %v3674_v18 = vmul.f32 %v5771_v34, %v5344_v15 }
 0x384   :  { %v3675_v19 = vadd.f32 1.4214138, %v3672_v58  ;;  %v3673_v49 = vmul.f32 %v5773_v14, %v5343_v20  ;;  %v3873_v58 = vld [vmem:[#allocation2 + $0x480] sm:$0xff] }
 0x385   :  { %v3677_v63 = vadd.f32 1.4214138, %v3674_v18  ;;  %v3878_v18 = vld [vmem:[#allocation2 + $0x4a8] sm:$0xff]  ;;  %v5492_v46 = vcombine.low %v3873_v58, %v3877_v36 }
 0x386   :  { %v3678_v22 = vmul.f32 %v5769_v1, %v3675_v19  ;;  %v3676_v25 = vadd.f32 1.4214138, %v3673_v49  ;;  %v5484_v19 = vcombine.low %v3865_v5, %v3869_v10  ;;  %v5495_v21 = vcombine.high %v3874_v17, %v3878_v18  ;;  %v3885_v49 = vld [vmem:[#allocation2 + $0x4e0] sm:$0xff] }
 0x387   :  { %v3680_v26 = vmul.f32 %v5771_v34, %v3677_v63  ;;  %v5493_v63 = vcombine.high %v3873_v58, %v3877_v36  ;;  %v5494_v12 = vcombine.low %v3874_v17, %v3878_v18  ;;  %v3763_v36 = vld [vmem:[#allocation2 + $0x110] sm:$0xff]  ;;  %v3768_v18 = vld [vmem:[#allocation2 + $0x138] sm:$0xff] }
 0x388   :  { %v5345_v24 = vadd.f32 -0.28449672, %v3678_v22  ;;  %v3679_v28 = vmul.f32 %v5773_v14, %v3676_v25  ;;  %v3881_v22 = vld [vmem:[#allocation2 + $0x4c0] sm:$0xff]  ;;  %v3886_v25 = vld [vmem:[#allocation2 + $0x4e8] sm:$0xff]  ;;  %v3767_v17 = vld [vmem:[#allocation2 + $0x130] sm:$0xff] }
 0x389   :  { %v5347_v9 = vadd.f32 -0.28449672, %v3680_v26  ;;  %v5501_v51 = vcombine.high %v3881_v22, %v3885_v49  ;;  %v3890_v26 = vld [vmem:[#allocation2 + $0x508] sm:$0x33] }
 0x38a   :  { %v3684_v27 = vmul.f32 %v5769_v1, %v5345_v24  ;;  %v5346_v30 = vadd.f32 -0.28449672, %v3679_v28  ;;  %v3882_v24 = vld [vmem:[#allocation2 + $0x4c8] sm:$0xff] }
 0x38b   :  { %v3686_v50 = vmul.f32 %v5771_v34, %v5347_v9  ;;  %v5503_v60 = vcombine.high %v3882_v24, %v3886_v25  ;;  %v5502_v52 = vcombine.low %v3882_v24, %v3886_v25  ;;  %v5511_v9 = vcombine.high %v3890_v26, %v3890_v26  ;;  %v3776_v24 = vld [vmem:[#allocation2 + $0x178] sm:$0xff] }
 0x38c   :  { %v3687_v29 = vadd.f32 0.2548296, %v3684_v27  ;;  %v3685_v32 = vmul.f32 %v5773_v14, %v5346_v30  ;;  %v5500_v27 = vcombine.low %v3881_v22, %v3885_v49  ;;  %v3771_v22 = vld [vmem:[#allocation2 + $0x150] sm:$0xff]  ;;  %v3772_v49 = vld [vmem:[#allocation2 + $0x158] sm:$0xff]  ;;  %v5384_v25 = vcombine.low %v3763_v36, %v3767_v17 }
 0x38d   :  { %v3689_v47 = vadd.f32 0.2548296, %v3686_v50 }
 0x38e   :  { %v3690_v13 = vmul.f32 %v5769_v1, %v3687_v29  ;;  %v3688_v35 = vadd.f32 0.2548296, %v3685_v32  ;;  %v3732_v32 = vld [vmem:[#allocation2 + $0x18] sm:$0xff] }
 0x38f   :  { %v3692_v16 = vmul.f32 %v5771_v34, %v3689_v47  ;;  %v5485_v34 = vcombine.high %v3865_v5, %v3869_v10  ;;  %v3740_v47 = vld [vmem:[#allocation2 + $0x58] sm:$0xff]  ;;  %v3759_v10 = vld [vmem:[#allocation2 + $0xf0] sm:$0xff] }
 0x390   :  { %v3705_v31 = vmul.f32 %v5775_v33, %v3690_v13  ;;  %v3691_v42 = vmul.f32 %v5773_v14, %v3688_v35  ;;  %v3866_v14 = vld [vmem:[#allocation2 + $0x448] sm:$0xff]  ;;  %v5510_v13 = vcombine.low %v3890_v26, %v3890_v26  ;;  %v3736_v33 = vld [vmem:[#allocation2 + $0x38] sm:$0xff] }
 0x391   :  { %v3707_v38 = vmul.f32 %v5779_v39, %v3692_v16  ;;  %v5487_v48 = vcombine.high %v3866_v14, %v3870_v11  ;;  %v5486_v20 = vcombine.low %v3866_v14, %v3870_v11  ;;  %v3756_v14 = vld [vmem:[#allocation2 + $0xd8] sm:$0xff] }
 0x392   :  { %v3708_v40 = vsub.f32 1.0, %v3705_v31  ;;  %v3706_v45 = vmul.f32 %v5777_v43, %v3691_v42  ;;  %v3650_v31 = vmul.f32 0.5, %v6448_v4  ;;  %v5353_v42 = vcombine.high %v3731_v3, %v3735_v56  ;;  %v3760_v11 = vld [vmem:[#allocation2 + $0xf8] sm:$0xff] }
 0x393   :  { %v3710_v41 = vsub.f32 1.0, %v3707_v38  ;;  %v5355_v43 = vcombine.high %v3732_v32, %v3736_v33  ;;  %v5352_v4 = vcombine.low %v3731_v3, %v3735_v56  ;;  %v3784_v26 = vld [vmem:[#allocation2 + $0x1b8] sm:$0xff] }
 0x394   :  { %v3714_v44 = vsub.f32 0.0, %v3708_v40  ;;  %v3709_v37 = vsub.f32 1.0, %v3706_v45  ;;  %v3743_v45 = vld [vmem:[#allocation2 + $0x70] sm:$0xff]  ;;  %v3792_v3 = vld [vmem:[#allocation2 + $0x1f8] sm:$0xff] }
 0x395   :  { %v3716_v23 = vsub.f32 0.0, %v3710_v41 }
 0x396   :  { %v3717_v53 = vsel %vm3711_vm15, %v3714_v44, %v3708_v40  ;;  %v3715_v55 = vsub.f32 0.0, %v3709_v37  ;;  %v4723_v40 = vsel %vm66_vm1, %v5510_v13, 0  ;;  %v3739_v44 = vld [vmem:[#allocation2 + $0x50] sm:$0xff]  ;;  %v3788_v13 = vld [vmem:[#allocation2 + $0x1d8] sm:$0xff] }
 0x397   :  { %v3720_v54 = vadd.f32 1.0, %v3717_v53  ;;  %v3744_v53 = vld [vmem:[#allocation2 + $0x78] sm:$0xff]  ;;  %v5360_v39 = vcombine.low %v3739_v44, %v3743_v45 }
 0x398   :  { %v3718_v62 = vsel %vm3712_vm0, %v3715_v55, %v3709_v37  ;;  %v5361_v55 = vcombine.high %v3739_v44, %v3743_v45  ;;  %v5363_v16 = vcombine.high %v3740_v47, %v3744_v53  ;;  %v5410_v44 = vcombine.low %v3788_v13, %v3792_v3 }
 0x399   :  { %v3721_v1 = vadd.f32 1.0, %v3718_v62  ;;  %v3723_v2 = vmul.f32 %v3720_v54, %v3648_v61  ;;  %v5354_v54 = vcombine.low %v3732_v32, %v3736_v33  ;;  %v3747_v61 = vld [vmem:[#allocation2 + $0x90] sm:$0xff] }
 0x39a   :  { %v3751_v62 = vld [vmem:[#allocation2 + $0xb0] sm:$0xff] }
 0x39b   :  { %v3724_v8 = vmul.f32 %v3721_v1, %v3649_v0  ;;  %v6470_v7 = vpack.c.bf16 %v3723_v2, %v3723_v2  ;;  %v3748_v0 = vld [vmem:[#allocation2 + $0x98] sm:$0xff]  ;;  %v5362_v2 = vcombine.low %v3740_v47, %v3744_v53  ;;  %v5369_v5 = vcombine.high %v3747_v61, %v3751_v62  ;;  %v3803_v53 = vld [vmem:[#allocation2 + $0x250] sm:$0xff] }
 0x39c   :  { %v3752_v1 = vld [vmem:[#allocation2 + $0xb8] sm:$0xff] }
 0x39d   :  { %v6468_v15 = vpack.c.bf16 %v3724_v8, %v3724_v8  ;;  %v5371_v38 = vcombine.high %v3748_v0, %v3752_v1  ;;  %v3755_v8 = vld [vmem:[#allocation2 + $0xd0] sm:$0xff] }
 0x39e   :  { %v5377_v58 = vcombine.high %v3755_v8, %v3759_v10 }
 0x39f   :  { %4772 = vmatprep.mubr.bf16.mxu0 %v6468_v15  ;;  %4854 = vmatprep.mubr.bf16.mxu1 %v6468_v15 }
 0x3a0   :  { %4773 = vmatmul.mubr.bf16.vlgmr.msra.gmra.mrb[80].mxu0 %v6470_v7  ;;  %4855 = vmatmul.mubr.bf16.vlgmr.msra.gmra.mrb[80].mxu1 %v6470_v7 }
 0x3a1   :  { %4782 = vmatpush1.bf16.msra.mxu0 %v5476_v57  ;;  %4864 = vmatpush1.bf16.msra.mxu1 %v5478_v59  ;;  %v3889_v57 = vld [vmem:[#allocation2 + $0x500] sm:$0x33]  ;;  %v3719_v59 = vsel %vm3713_vm2, %v3716_v23, %v3710_v41  ;;  %v5379_v41 = vcombine.high %v3756_v14, %v3760_v11  ;;  %v3775_v23 = vld [vmem:[#allocation2 + $0x170] sm:$0xff] }
 0x3a2   :  { %4783 = vmatprep.subr.bf16.mxu0 %v5485_v34  ;;  %4865 = vmatprep.subr.bf16.mxu1 %v5487_v48  ;;  %v5508_v28 = vcombine.low %v3889_v57, %v3889_v57  ;;  %v3722_v29 = vadd.f32 1.0, %v3719_v59  ;;  %v5509_v30 = vcombine.high %v3889_v57, %v3889_v57  ;;  %v5368_v34 = vcombine.low %v3747_v61, %v3751_v62  ;;  %v3783_v57 = vld [vmem:[#allocation2 + $0x1b0] sm:$0xff]  ;;  %v3780_v59 = vld [vmem:[#allocation2 + $0x198] sm:$0xff] }
 0x3a3   :  { %4813 = vmatprep.mubr.bf16.mxu0 %v5810_v6  ;;  %4895 = vmatprep.mubr.bf16.mxu1 %v5810_v6  ;;  %v5370_v48 = vcombine.low %v3748_v0, %v3752_v1  ;;  %v5402_v32 = vcombine.low %v3780_v59, %v3784_v26  ;;  %v3811_v1 = vld [vmem:[#allocation2 + $0x290] sm:$0xff] }
 0x3a4   :  { %v4717_v35 = vsel %vm66_vm1, %v5508_v28, 0  ;;  %v3725_v50 = vmul.f32 %v3722_v29, %v3650_v31  ;;  %v5403_v29 = vcombine.high %v3780_v59, %v3784_v26  ;;  %v5411_v31 = vcombine.high %v3788_v13, %v3792_v3  ;;  %v3843_v26 = vld [vmem:[#allocation2 + $0x390] sm:$0xff] }
 0x3a5   :  { %4784 = vmatpush1.bf16.msra.mxu0 %v5484_v19  ;;  %4866 = vmatpush1.bf16.msra.mxu1 %v5486_v20  ;;  %v5376_v19 = vcombine.low %v3755_v8, %v3759_v10  ;;  %v5378_v20 = vcombine.low %v3756_v14, %v3760_v11  ;;  %v3819_v11 = vld [vmem:[#allocation2 + $0x2d0] sm:$0xff] }
 0x3a6   :  { %4785 = vmatprep.subr.bf16.mxu0 %v5493_v63  ;;  %4867 = vmatprep.subr.bf16.mxu1 %v5495_v21  ;;  %v6490_v37 = vpack.c.bf16 %v3725_v50, %v3725_v50  ;;  %v5385_v63 = vcombine.high %v3763_v36, %v3767_v17  ;;  %v3799_v50 = vld [vmem:[#allocation2 + $0x230] sm:$0xff] }
 0x3a7   :  { %v3851_v3 = vld [vmem:[#allocation2 + $0x3d0] sm:$0xff] }
 0x3a9   :  { %4786 = vmatpush1.bf16.msra.mxu0 %v5492_v46  ;;  %4868 = vmatpush1.bf16.msra.mxu1 %v5494_v12  ;;  %v5393_v12 = vcombine.high %v3771_v22, %v3775_v23 }
 0x3aa   :  { %4787 = vmatprep.subr.bf16.mxu0 %v5501_v51  ;;  %4869 = vmatprep.subr.bf16.mxu1 %v5503_v60  ;;  %v5395_v51 = vcombine.high %v3772_v49, %v3776_v24  ;;  %v3779_v60 = vld [vmem:[#allocation2 + $0x190] sm:$0xff] }
 0x3ab   :  { %v5401_v28 = vcombine.high %v3779_v60, %v3783_v57  ;;  %v5400_v56 = vcombine.low %v3779_v60, %v3783_v57 }
 0x3ad   :  { %4788 = vmatpush1.bf16.msra.mxu0 %v5500_v27  ;;  %4870 = vmatpush1.bf16.msra.mxu1 %v5502_v52  ;;  %v5392_v27 = vcombine.low %v3771_v22, %v3775_v23  ;;  %v5394_v52 = vcombine.low %v3772_v49, %v3776_v24  ;;  %v3835_v24 = vld [vmem:[#allocation2 + $0x350] sm:$0xff] }
 0x3ae   :  { %5516 = vmatprep.subr.msk.bf16.mxu0 %vm66_vm1, %v5509_v30  ;;  %5518 = vmatprep.subr.msk.bf16.mxu1 %vm66_vm1, %v5511_v9  ;;  %v3787_v30 = vld [vmem:[#allocation2 + $0x1d0] sm:$0xff] }
 0x3af   :  { %v3791_v9 = vld [vmem:[#allocation2 + $0x1f0] sm:$0xff] }
 0x3b0   :  { %v5409_v33 = vcombine.high %v3787_v30, %v3791_v9 }
 0x3b1   :  { %4790 = vmatpush1.bf16.msra.mxu0 %v4717_v35  ;;  %4872 = vmatpush1.bf16.msra.mxu1 %v4723_v40  ;;  %v3795_v35 = vld [vmem:[#allocation2 + $0x210] sm:$0xff]  ;;  %v3796_v40 = vld [vmem:[#allocation2 + $0x218] sm:$0xff] }
 0x3b2   :  { %4904 = vmatprep.subr.bf16.mxu0 %v5353_v42  ;;  %4986 = vmatprep.subr.bf16.mxu1 %v5355_v43  ;;  %v3800_v42 = vld [vmem:[#allocation2 + $0x238] sm:$0xff]  ;;  %v5408_v43 = vcombine.low %v3787_v30, %v3791_v9  ;;  %v5417_v45 = vcombine.high %v3795_v35, %v3799_v50 }
 0x3b3   :  { %v5419_v47 = vcombine.high %v3796_v40, %v3800_v42  ;;  %v5418_v61 = vcombine.low %v3796_v40, %v3800_v42  ;;  %v3859_v42 = vld [vmem:[#allocation2 + $0x410] sm:$0xff] }
 0x3b4   :  { %5517 = vmatmul.mubr.msk.bf16.vlgmr.msra.gmra.mrb[80].mxu0 %vm2199_vm14, %v6490_v37  ;;  %5519 = vmatmul.mubr.msk.bf16.vlgmr.msra.gmra.mrb[80].mxu1 %vm2199_vm14, %v6490_v37 }
 0x3b5   :  { %4905 = vmatpush1.bf16.msra.mxu0 %v5352_v4  ;;  %4936 = vmatprep.mubr.bf16.mxu0 %v6468_v15  ;;  %v3807_v4 = vld [vmem:[#allocation2 + $0x270] sm:$0xff] }
 0x3b6   :  { %4987 = vmatpush1.bf16.msra.mxu1 %v5354_v54  ;;  %5018 = vmatprep.mubr.bf16.mxu1 %v6468_v15  ;;  %v3764_v15 = vld [vmem:[#allocation2 + $0x118] sm:$0xff]  ;;  %v5425_v62 = vcombine.high %v3803_v53, %v3807_v4 }
 0x3b7   :  { %4906 = vmatprep.subr.bf16.mxu0 %v5361_v55  ;;  %4988 = vmatprep.subr.bf16.mxu1 %v5363_v16  ;;  %v5387_v21 = vcombine.high %v3764_v15, %v3768_v18  ;;  %v5386_v46 = vcombine.low %v3764_v15, %v3768_v18  ;;  %v3804_v54 = vld [vmem:[#allocation2 + $0x258] sm:$0xff]  ;;  %v5416_v16 = vcombine.low %v3795_v35, %v3799_v50  ;;  %v3827_v18 = vld [vmem:[#allocation2 + $0x310] sm:$0xff] }
 0x3b8   :  { %v3808_v55 = vld [vmem:[#allocation2 + $0x278] sm:$0xff] }
 0x3b9   :  { %4907 = vmatpush1.bf16.msra.mxu0 %v5360_v39  ;;  %v5427_v0 = vcombine.high %v3804_v54, %v3808_v55  ;;  %v3815_v39 = vld [vmem:[#allocation2 + $0x2b0] sm:$0xff]  ;;  %v5426_v8 = vcombine.low %v3804_v54, %v3808_v55 }
 0x3ba   :  { %4989 = vmatpush1.bf16.msra.mxu1 %v5362_v2  ;;  %4908 = vmatprep.subr.bf16.mxu0 %v5369_v5  ;;  %v3812_v2 = vld [vmem:[#allocation2 + $0x298] sm:$0xff]  ;;  %v5433_v10 = vcombine.high %v3811_v1, %v3815_v39  ;;  %v3867_v55 = vld [vmem:[#allocation2 + $0x450] sm:$0xff] }
 0x3bb   :  { %4990 = vmatprep.subr.bf16.mxu1 %v5371_v38  ;;  %v3816_v5 = vld [vmem:[#allocation2 + $0x2b8] sm:$0xff]  ;;  %v5424_v38 = vcombine.low %v3803_v53, %v3807_v4 }
 0x3bc   :  { %v5435_v14 = vcombine.high %v3812_v2, %v3816_v5  ;;  %v5434_v36 = vcombine.low %v3812_v2, %v3816_v5  ;;  %v3875_v5 = vld [vmem:[#allocation2 + $0x490] sm:$0xff] }
 0x3bd   :  { %4909 = vmatpush1.bf16.msra.mxu0 %v5368_v34  ;;  %v3823_v34 = vld [vmem:[#allocation2 + $0x2f0] sm:$0xff] }
 0x3be   :  { %4991 = vmatpush1.bf16.msra.mxu1 %v5370_v48  ;;  %4910 = vmatprep.subr.bf16.mxu0 %v5377_v58  ;;  %v3820_v48 = vld [vmem:[#allocation2 + $0x2d8] sm:$0xff]  ;;  %v5441_v17 = vcombine.high %v3819_v11, %v3823_v34 }
 0x3bf   :  { %4992 = vmatprep.subr.bf16.mxu1 %v5379_v41  ;;  %v3824_v58 = vld [vmem:[#allocation2 + $0x2f8] sm:$0xff]  ;;  %v5432_v41 = vcombine.low %v3811_v1, %v3815_v39 }
 0x3c0   :  { %v5443_v15 = vcombine.high %v3820_v48, %v3824_v58  ;;  %v5442_v22 = vcombine.low %v3820_v48, %v3824_v58  ;;  %v3883_v58 = vld [vmem:[#allocation2 + $0x4d0] sm:$0xff] }
 0x3c1   :  { %4911 = vmatpush1.bf16.msra.mxu0 %v5376_v19  ;;  %v3831_v19 = vld [vmem:[#allocation2 + $0x330] sm:$0xff] }
 0x3c2   :  { %4993 = vmatpush1.bf16.msra.mxu1 %v5378_v20  ;;  %4912 = vmatprep.subr.bf16.mxu0 %v5385_v63  ;;  %v3828_v20 = vld [vmem:[#allocation2 + $0x318] sm:$0xff]  ;;  %v5449_v23 = vcombine.high %v3827_v18, %v3831_v19 }
 0x3c3   :  { %4994 = vmatprep.subr.bf16.mxu1 %v5387_v21  ;;  %v3832_v63 = vld [vmem:[#allocation2 + $0x338] sm:$0xff]  ;;  %v5440_v21 = vcombine.low %v3819_v11, %v3823_v34 }
 0x3c4   :  { %v5451_v49 = vcombine.high %v3828_v20, %v3832_v63  ;;  %v5450_v60 = vcombine.low %v3828_v20, %v3832_v63  ;;  %v3891_v20 = vld [vmem:[#allocation2 + $0x510] sm:$0x33]  ;;  %v3892_v63 = vld [vmem:[#allocation2 + $0x518] sm:$0x33] }
 0x3c5   :  { %4913 = vmatpush1.bf16.msra.mxu0 %v5384_v25  ;;  %v3839_v25 = vld [vmem:[#allocation2 + $0x370] sm:$0xff] }
 0x3c6   :  { %4995 = vmatpush1.bf16.msra.mxu1 %v5386_v46  ;;  %4914 = vmatprep.subr.bf16.mxu0 %v5393_v12  ;;  %v3836_v46 = vld [vmem:[#allocation2 + $0x358] sm:$0xff]  ;;  %v5457_v57 = vcombine.high %v3835_v24, %v3839_v25 }
 0x3c7   :  { %4996 = vmatprep.subr.bf16.mxu1 %v5395_v51  ;;  %v3840_v12 = vld [vmem:[#allocation2 + $0x378] sm:$0xff]  ;;  %v5448_v51 = vcombine.low %v3827_v18, %v3831_v19 }
 0x3c8   :  { %v5459_v59 = vcombine.high %v3836_v46, %v3840_v12  ;;  %v5458_v30 = vcombine.low %v3836_v46, %v3840_v12 }
 0x3c9   :  { %4915 = vmatpush1.bf16.msra.mxu0 %v5392_v27  ;;  %v3847_v27 = vld [vmem:[#allocation2 + $0x3b0] sm:$0xff] }
 0x3ca   :  { %4997 = vmatpush1.bf16.msra.mxu1 %v5394_v52  ;;  %4916 = vmatprep.subr.bf16.mxu0 %v5401_v28  ;;  %v3844_v52 = vld [vmem:[#allocation2 + $0x398] sm:$0xff]  ;;  %v5465_v9 = vcombine.high %v3843_v26, %v3847_v27 }
 0x3cb   :  { %4998 = vmatprep.subr.bf16.mxu1 %v5403_v29  ;;  %v3848_v28 = vld [vmem:[#allocation2 + $0x3b8] sm:$0xff]  ;;  %v5456_v29 = vcombine.low %v3835_v24, %v3839_v25  ;;  %v5515_v24 = vcombine.high %v3892_v63, %v3892_v63 }
 0x3cc   :  { %v5467_v13 = vcombine.high %v3844_v52, %v3848_v28  ;;  %v5466_v35 = vcombine.low %v3844_v52, %v3848_v28 }
 0x3cd   :  { %4917 = vmatpush1.bf16.msra.mxu0 %v5400_v56  ;;  %v3855_v56 = vld [vmem:[#allocation2 + $0x3f0] sm:$0xff] }
 0x3ce   :  { %4999 = vmatpush1.bf16.msra.mxu1 %v5402_v32  ;;  %4918 = vmatprep.subr.bf16.mxu0 %v5409_v33  ;;  %v3852_v32 = vld [vmem:[#allocation2 + $0x3d8] sm:$0xff]  ;;  %v5473_v50 = vcombine.high %v3851_v3, %v3855_v56 }
 0x3cf   :  { %5000 = vmatprep.subr.bf16.mxu1 %v5411_v31  ;;  %v3856_v33 = vld [vmem:[#allocation2 + $0x3f8] sm:$0xff]  ;;  %v5464_v31 = vcombine.low %v3843_v26, %v3847_v27 }
 0x3d0   :  { %v5475_v40 = vcombine.high %v3852_v32, %v3856_v33  ;;  %v5474_v53 = vcombine.low %v3852_v32, %v3856_v33 }
 0x3d1   :  { %4919 = vmatpush1.bf16.msra.mxu0 %v5408_v43  ;;  %v3863_v43 = vld [vmem:[#allocation2 + $0x430] sm:$0xff] }
 0x3d2   :  { %5001 = vmatpush1.bf16.msra.mxu1 %v5410_v44  ;;  %4920 = vmatprep.subr.bf16.mxu0 %v5417_v45  ;;  %v3860_v44 = vld [vmem:[#allocation2 + $0x418] sm:$0xff]  ;;  %v5481_v4 = vcombine.high %v3859_v42, %v3863_v43 }
 0x3d3   :  { %5002 = vmatprep.subr.bf16.mxu1 %v5419_v47  ;;  %v3864_v45 = vld [vmem:[#allocation2 + $0x438] sm:$0xff]  ;;  %v5472_v47 = vcombine.low %v3851_v3, %v3855_v56 }
 0x3d4   :  { %v5483_v54 = vcombine.high %v3860_v44, %v3864_v45  ;;  %v5482_v1 = vcombine.low %v3860_v44, %v3864_v45 }
 0x3d5   :  { %4921 = vmatpush1.bf16.msra.mxu0 %v5416_v16  ;;  %v3871_v16 = vld [vmem:[#allocation2 + $0x470] sm:$0xff] }
 0x3d6   :  { %5003 = vmatpush1.bf16.msra.mxu1 %v5418_v61  ;;  %4922 = vmatprep.subr.bf16.mxu0 %v5425_v62  ;;  %v3868_v61 = vld [vmem:[#allocation2 + $0x458] sm:$0xff]  ;;  %v5489_v39 = vcombine.high %v3867_v55, %v3871_v16 }
 0x3d7   :  { %5004 = vmatprep.subr.bf16.mxu1 %v5427_v0  ;;  %v3872_v62 = vld [vmem:[#allocation2 + $0x478] sm:$0xff]  ;;  %v5480_v0 = vcombine.low %v3859_v42, %v3863_v43 }
 0x3d8   :  { %v5491_v2 = vcombine.high %v3868_v61, %v3872_v62  ;;  %v5490_v11 = vcombine.low %v3868_v61, %v3872_v62 }
 0x3d9   :  { %4923 = vmatpush1.bf16.msra.mxu0 %v5424_v38  ;;  %v3879_v38 = vld [vmem:[#allocation2 + $0x4b0] sm:$0xff] }
 0x3da   :  { %5005 = vmatpush1.bf16.msra.mxu1 %v5426_v8  ;;  %4924 = vmatprep.subr.bf16.mxu0 %v5433_v10  ;;  %v3876_v8 = vld [vmem:[#allocation2 + $0x498] sm:$0xff]  ;;  %v5497_v34 = vcombine.high %v3875_v5, %v3879_v38 }
 0x3db   :  { %5006 = vmatprep.subr.bf16.mxu1 %v5435_v14  ;;  %v3880_v10 = vld [vmem:[#allocation2 + $0x4b8] sm:$0xff]  ;;  %v5488_v14 = vcombine.low %v3867_v55, %v3871_v16 }
 0x3dc   :  { %v5499_v48 = vcombine.high %v3876_v8, %v3880_v10 }
 0x3dd   :  { %4925 = vmatpush1.bf16.msra.mxu0 %v5432_v41  ;;  %v3887_v41 = vld [vmem:[#allocation2 + $0x4f0] sm:$0xff] }
 0x3de   :  { %5007 = vmatpush1.bf16.msra.mxu1 %v5434_v36  ;;  %4926 = vmatprep.subr.bf16.mxu0 %v5441_v17  ;;  %v3884_v36 = vld [vmem:[#allocation2 + $0x4d8] sm:$0xff]  ;;  %v5505_v18 = vcombine.high %v3883_v58, %v3887_v41 }
 0x3df   :  { %5008 = vmatprep.subr.bf16.mxu1 %v5443_v15  ;;  %v3888_v17 = vld [vmem:[#allocation2 + $0x4f8] sm:$0xff]  ;;  %v5496_v15 = vcombine.low %v3875_v5, %v3879_v38 }
 0x3e0   :  { %v5507_v19 = vcombine.high %v3884_v36, %v3888_v17 }
 0x3e1   :  { %4927 = vmatpush1.bf16.msra.mxu0 %v5440_v21  ;;  %v5504_v21 = vcombine.low %v3883_v58, %v3887_v41 }
 0x3e2   :  { %5009 = vmatpush1.bf16.msra.mxu1 %v5442_v22  ;;  %4928 = vmatprep.subr.bf16.mxu0 %v5449_v23  ;;  %v5506_v22 = vcombine.low %v3884_v36, %v3888_v17  ;;  %v5513_v23 = vcombine.high %v3891_v20, %v3891_v20 }
 0x3e3   :  { %5010 = vmatprep.subr.bf16.mxu1 %v5451_v49  ;;  %v5512_v49 = vcombine.low %v3891_v20, %v3891_v20 }
 0x3e5   :  { %4929 = vmatpush1.bf16.msra.mxu0 %v5448_v51  ;;  %v4729_v25 = vsel %vm66_vm1, %v5512_v49, 0 }
 0x3e6   :  { %5011 = vmatpush1.bf16.msra.mxu1 %v5450_v60  ;;  %4930 = vmatprep.subr.bf16.mxu0 %v5457_v57 }
 0x3e7   :  { %5012 = vmatprep.subr.bf16.mxu1 %v5459_v59 }
 0x3e9   :  { %4931 = vmatpush1.bf16.msra.mxu0 %v5456_v29 }
 0x3ea   :  { %5013 = vmatpush1.bf16.msra.mxu1 %v5458_v30  ;;  %4932 = vmatprep.subr.bf16.mxu0 %v5465_v9 }
 0x3eb   :  { %5014 = vmatprep.subr.bf16.mxu1 %v5467_v13 }
 0x3ed   :  { %4933 = vmatpush1.bf16.msra.mxu0 %v5464_v31 }
 0x3ee   :  { %5015 = vmatpush1.bf16.msra.mxu1 %v5466_v35  ;;  %4934 = vmatprep.subr.bf16.mxu0 %v5473_v50 }
 0x3ef   :  { %5016 = vmatprep.subr.bf16.mxu1 %v5475_v40 }
 0x3f1   :  { %4935 = vmatpush1.bf16.msra.mxu0 %v5472_v47 }
 0x3f2   :  { %5017 = vmatpush1.bf16.msra.mxu1 %v5474_v53  ;;  %4945 = vmatprep.subr.bf16.mxu0 %v5481_v4 }
 0x3f3   :  { %5027 = vmatprep.subr.bf16.mxu1 %v5483_v54 }
 0x3f4   :  { %4937 = vmatmul.mubr.bf16.vlgmr.msra.gmra.mrb[84].mxu0 %v6470_v7 }
 0x3f5   :  { %5019 = vmatmul.mubr.bf16.vlgmr.msra.gmra.mrb[84].mxu1 %v6470_v7  ;;  %4946 = vmatpush1.bf16.msra.mxu0 %v5480_v0  ;;  %v5498_v7 = vcombine.low %v3876_v8, %v3880_v10 }
 0x3f6   :  { %5028 = vmatpush1.bf16.msra.mxu1 %v5482_v1  ;;  %4947 = vmatprep.subr.bf16.mxu0 %v5489_v39 }
 0x3f7   :  { %5029 = vmatprep.subr.bf16.mxu1 %v5491_v2  ;;  %4977 = vmatprep.mubr.bf16.mxu0 %v5810_v6 }
 0x3f8   :  { %5059 = vmatprep.mubr.bf16.mxu1 %v5810_v6  ;;  %v5514_v6 = vcombine.low %v3892_v63, %v3892_v63 }
 0x3f9   :  { %4948 = vmatpush1.bf16.msra.mxu0 %v5488_v14 }
 0x3fa   :  { %5030 = vmatpush1.bf16.msra.mxu1 %v5490_v11  ;;  %4949 = vmatprep.subr.bf16.mxu0 %v5497_v34  ;;  %v4735_v46 = vsel %vm66_vm1, %v5514_v6, 0 }
 0x3fb   :  { %5031 = vmatprep.subr.bf16.mxu1 %v5499_v48 }
 0x3fd   :  { %4950 = vmatpush1.bf16.msra.mxu0 %v5496_v15 }
 0x3fe   :  { %5032 = vmatpush1.bf16.msra.mxu1 %v5498_v7  ;;  %4951 = vmatprep.subr.bf16.mxu0 %v5505_v18 }
 0x3ff   :  { %5033 = vmatprep.subr.bf16.mxu1 %v5507_v19 }
 0x401   :  { %4952 = vmatpush1.bf16.msra.mxu0 %v5504_v21 }
 0x402   :  { %5034 = vmatpush1.bf16.msra.mxu1 %v5506_v22  ;;  %5520 = vmatprep.subr.msk.bf16.mxu0 %vm66_vm1, %v5513_v23 }
 0x403   :  { %5522 = vmatprep.subr.msk.bf16.mxu1 %vm66_vm1, %v5515_v24 }
 0x405   :  { %4954 = vmatpush1.bf16.msra.mxu0 %v4729_v25 }
 0x406   :  { %5036 = vmatpush1.bf16.msra.mxu1 %v4735_v46 }
 0x408   :  { %5521 = vmatmul.mubr.msk.bf16.vlgmr.msra.gmra.mrb[84].mxu0 %vm2199_vm14, %v6490_v37 }
 0x409   :  { %5523 = vmatmul.mubr.msk.bf16.vlgmr.msra.gmra.mrb[84].mxu1 %vm2199_vm14, %v6490_v37 }
 0x487   :  { %v4815_v12 = vpop.f32.mrb[80].mxu0  ;;  %v4897_v51 = vpop.f32.mrb[80].mxu1 }
 0x488   :  { %5524 = vst [vmem:[%s6538_s4 + $0x40] sm:$0xff] %v4815_v12  ;;  %5526 = vst [vmem:[%s6538_s4 + $0x50] sm:$0xff] %v4897_v51  ;;  %v4817_v60 = vpop.f32.mrb[81].mxu0  ;;  %v4899_v57 = vpop.f32.mrb[81].mxu1 }
 0x489   :  { %5525 = vst [vmem:[%s6538_s4 + $0x48] sm:$0xff] %v4817_v60  ;;  %5527 = vst [vmem:[%s6538_s4 + $0x58] sm:$0xff] %v4899_v57  ;;  %v4819_v37 = vpop.f32.mrb[82].mxu0  ;;  %v4901_v59 = vpop.f32.mrb[82].mxu1 }
 0x48a   :  { %v4820_v26 = vpop.f32.mrb[83].mxu0  ;;  %v4902_v27 = vpop.f32.mrb[83].mxu1 }
 0x4db   :  { %v4979_v52 = vpop.f32.mrb[84].mxu0 }
 0x4dc   :  { %5528 = vst [vmem:[%s6538_s4 + $0x60] sm:$0xff] %v4979_v52  ;;  %v5061_v28 = vpop.f32.mrb[84].mxu1  ;;  %v4981_v29 = vpop.f32.mrb[85].mxu0 }
 0x4dd   :  { %5530 = vst [vmem:[%s6538_s4 + $0x70] sm:$0xff] %v5061_v28  ;;  %5529 = vst [vmem:[%s6538_s4 + $0x68] sm:$0xff] %v4981_v29  ;;  %v5063_v30 = vpop.f32.mrb[85].mxu1  ;;  %v4983_v9 = vpop.f32.mrb[86].mxu0 }
 0x4de   :  { %5531 = vst [vmem:[%s6538_s4 + $0x78] sm:$0xff] %v5063_v30  ;;  %v5065_v13 = vpop.f32.mrb[86].mxu1  ;;  %v4984_v3 = vpop.f32.mrb[87].mxu0 }
 0x4df   :  { %v5066_v56 = vpop.f32.mrb[87].mxu1 }
 0x4e0   :  { %5081 = vsyncpa [#allocation3], 1 }

</bundles_post_ra>
